<compile_context>
chip_gen: v7x
topology: tpu7x:2x2x1
jax: 0.10.0
libtpu: 0.0.40
codegen_flags: <defaults>
</compile_context>

<pallas_src>
import numpy as np
import jax
import jax.numpy as jnp
from jax.experimental import pallas as pl
from jax.experimental.pallas import tpu as pltpu

_PAD_TAIL = 2  # every conv in the fused tail has kernel_size=5, stride=1, padding=2


# ----------------------------- packing helpers (pure JAX glue) -----------------------------

def _pack_conv(layer, eps=1e-5):
    """Fold eval-mode BatchNorm into a Conv1d and pack the weight
    (Cout, Cin, K) -> (K*Cin, Cout) so the conv becomes one MXU matmul."""
    w, b = layer["w"], layer["b"]
    Cout, Cin, K = w.shape
    scale = layer["gamma"] / jnp.sqrt(layer["var"] + eps)
    shift = (b - layer["mean"]) * scale + layer["beta"]
    wp = jnp.transpose(w, (2, 1, 0)).reshape(K * Cin, Cout) * scale[None, :]
    return wp.astype(jnp.bfloat16), shift.reshape(1, Cout).astype(jnp.float32)


def _pack_linear(w, b):
    """PyTorch Linear (out, in) -> (in, out) bf16 weight + f32 bias row."""
    return w.T.astype(jnp.bfloat16), b.reshape(1, -1).astype(jnp.float32)


def _even_odd_patches(x, *, K, stride, pad):
    """im2col for strided Conv1d followed by MaxPool1d(2): packed (B, Lp, K*Cin)
    patches for the even / odd conv output positions (the pool becomes an
    elementwise max of the two conv results).  MaxPool1d(2) drops a trailing odd
    conv position, hence Lp = Lout // 2."""
    B, L, Cin = x.shape
    Lout = (L + 2 * pad - K) // stride + 1
    Lp = Lout // 2
    xp = jnp.pad(x, ((0, 0), (pad, pad), (0, 0)))
    step = 2 * stride

    def pack(start):
        taps = [xp[:, start + k: start + k + step * (Lp - 1) + 1: step, :]
                for k in range(K)]
        return jnp.concatenate(taps, axis=-1).astype(jnp.bfloat16)

    return pack(0), pack(stride), Lp


def _const_spec(a):
    n = a.ndim
    return pl.BlockSpec(a.shape, lambda b: (0,) * n)


def _batch_spec(a):
    n = a.ndim
    return pl.BlockSpec((None,) + a.shape[1:], lambda b: (b,) + (0,) * (n - 1))


# ----------------------------- kernel 1/2: strided reduce stage -----------------------------

def _reduce_stage_kernel(pe_ref, po_ref, w_ref, t_ref, o_ref):
    """Conv1d(stride) + folded BN + ReLU + MaxPool1d(2) as two packed matmuls + max."""
    w = w_ref[...]
    t = t_ref[...]
    ye = jnp.dot(pe_ref[...], w, preferred_element_type=jnp.float32) + t
    yo = jnp.dot(po_ref[...], w, preferred_element_type=jnp.float32) + t
    o_ref[...] = jnp.maximum(jnp.maximum(ye, yo), 0.0)  # ReLU commutes with the max-pool


def reduce_stage(x, layer, *, stride, pad):
    B = x.shape[0]
    K = layer["w"].shape[2]
    wp, t = _pack_conv(layer)
    KC, Cout = wp.shape
    pe, po, Lp = _even_odd_patches(x, K=K, stride=stride, pad=pad)
    return pl.pallas_call(
        _reduce_stage_kernel,
        out_shape=jax.ShapeDtypeStruct((B, Lp, Cout), jnp.float32),
        grid=(B,),
        in_specs=[
            pl.BlockSpec((None, Lp, KC), lambda b: (b, 0, 0)),
            pl.BlockSpec((None, Lp, KC), lambda b: (b, 0, 0)),
            pl.BlockSpec((KC, Cout), lambda b: (0, 0)),
            pl.BlockSpec((1, Cout), lambda b: (0, 0)),
        ],
        out_specs=pl.BlockSpec((None, Lp, Cout), lambda b: (b, 0, 0)),
        compiler_params=pltpu.CompilerParams(dimension_semantics=("parallel",)),
    )(pe, po, wp, t)


# ----------------------------- kernel 3: fused tail -----------------------------

def _tail_kernel(pe3_ref, po3_ref, demo_ref,
                 w3_ref, t3_ref,
                 rb1w1_ref, rb1t1_ref, rb1w2_ref, rb1t2_ref,
                 r4w_ref, r4t_ref,
                 rb2w1_ref, rb2t1_ref, rb2w2_ref, rb2t2_ref,
                 r5w_ref, r5t_ref,
                 rb3w1_ref, rb3t1_ref, rb3w2_ref, rb3t2_ref,
                 dw1_ref, db1_ref, dw2_ref, db2_ref, dw3_ref, db3_ref,
                 hwe_ref, hwd_ref, ht1_ref, hw2_ref, ht2_ref, hw3_ref, hb3_ref,
                 o_ref,
                 p1a, p1b, p2a, p2b, p3a, p3b):
    PAD = _PAD_TAIL

    def conv_from(src, L, w_ref, t_ref, relu=True, residual=None):
        """stride-1 'same' conv read from a zero-padded VMEM scratch ref."""
        Cin = src.shape[1]
        w = w_ref[...]
        K = w.shape[0] // Cin
        Cout = w.shape[1]
        acc = jnp.zeros((L, Cout), jnp.float32)
        for k in range(K):
            xk = src[k:k + L, :].astype(jnp.bfloat16)
            acc = acc + jnp.dot(xk, w[k * Cin:(k + 1) * Cin, :],
                                preferred_element_type=jnp.float32)
        y = acc + t_ref[...]
        if residual is not None:
            y = y + residual
        if relu:
            y = jnp.maximum(y, 0.0)
        return y

    def resblock(pa, pb, L, w1_ref, t1_ref, w2_ref, t2_ref):
        # out = ReLU( (conv2∘BN)( ReLU((conv1∘BN)(x)) ) + x ), written back into pa.
        h = conv_from(pa, L, w1_ref, t1_ref, relu=True)
        pb[PAD:PAD + L, :] = h
        out = conv_from(pb, L, w2_ref, t2_ref, relu=True,
                        residual=pa[PAD:PAD + L, :])
        pa[PAD:PAD + L, :] = out

    def reduce_pool(pa_src, L, w_ref, t_ref, pa_dst):
        # conv + BN + ReLU, then MaxPool1d(2) written row-by-row into the next scratch.
        y = conv_from(pa_src, L, w_ref, t_ref, relu=True)
        for j in range(L // 2):
            pa_dst[PAD + j:PAD + j + 1, :] = jnp.maximum(
                y[2 * j:2 * j + 1, :], y[2 * j + 1:2 * j + 2, :])

    # zero the padded scratch buffers so their pad rows read as zeros
    for buf in (p1a, p1b, p2a, p2b, p3a, p3b):
        buf[...] = jnp.zeros_like(buf)

    # ---- reduce3: stride-2 conv (+BN+ReLU) + MaxPool(2), packed even/odd patches
    w3 = w3_ref[...]
    t3 = t3_ref[...]
    ye = jnp.dot(pe3_ref[...], w3, preferred_element_type=jnp.float32) + t3
    yo = jnp.dot(po3_ref[...], w3, preferred_element_type=jnp.float32) + t3
    L1 = pe3_ref.shape[0]
    p1a[PAD:PAD + L1, :] = jnp.maximum(jnp.maximum(ye, yo), 0.0)

    # ---- resblock1 applied twice (intentional weight sharing, as in the PyTorch forward)
    resblock(p1a, p1b, L1, rb1w1_ref, rb1t1_ref, rb1w2_ref, rb1t2_ref)
    resblock(p1a, p1b, L1, rb1w1_ref, rb1t1_ref, rb1w2_ref, rb1t2_ref)

    # ---- reduce4 + resblock2 x2
    reduce_pool(p1a, L1, r4w_ref, r4t_ref, p2a)
    L2 = L1 // 2
    resblock(p2a, p2b, L2, rb2w1_ref, rb2t1_ref, rb2w2_ref, rb2t2_ref)
    resblock(p2a, p2b, L2, rb2w1_ref, rb2t1_ref, rb2w2_ref, rb2t2_ref)

    # ---- reduce5 + resblock3 x2
    reduce_pool(p2a, L2, r5w_ref, r5t_ref, p3a)
    L3 = L2 // 2
    resblock(p3a, p3b, L3, rb3w1_ref, rb3t1_ref, rb3w2_ref, rb3t2_ref)
    resblock(p3a, p3b, L3, rb3w1_ref, rb3t1_ref, rb3w2_ref, rb3t2_ref)

    # ---- demo MLP: Linear+ReLU, Linear+ReLU, Linear (per sample)
    d = demo_ref[...].astype(jnp.bfloat16)                                   # (1, 2)
    d = jnp.maximum(jnp.dot(d, dw1_ref[...],
                            preferred_element_type=jnp.float32) + db1_ref[...], 0.0)
    d = jnp.maximum(jnp.dot(d.astype(jnp.bfloat16), dw2_ref[...],
                            preferred_element_type=jnp.float32) + db2_ref[...], 0.0)
    d = jnp.dot(d.astype(jnp.bfloat16), dw3_ref[...],
                preferred_element_type=jnp.float32) + db3_ref[...]

    # ---- head: shared1(+BN)+ReLU -> fc2(+BN)+ReLU -> fc3.
    # The channel-major PyTorch flatten is folded into the (pre-permuted) hwe weight,
    # so the ECG contribution is just L3 row-matmuls against 64-row weight slabs.
    C3 = p3a.shape[1]
    hwe = hwe_ref[...]
    z = jnp.dot(d.astype(jnp.bfloat16), hwd_ref[...],
                preferred_element_type=jnp.float32)
    for l in range(L3):
        z = z + jnp.dot(p3a[PAD + l:PAD + l + 1, :].astype(jnp.bfloat16),
                        hwe[l * C3:(l + 1) * C3, :],
                        preferred_element_type=jnp.float32)
    z = jnp.maximum(z + ht1_ref[...], 0.0)
    z = jnp.maximum(jnp.dot(z.astype(jnp.bfloat16), hw2_ref[...],
                            preferred_element_type=jnp.float32) + ht2_ref[...], 0.0)
    z = jnp.dot(z.astype(jnp.bfloat16), hw3_ref[...],
                preferred_element_type=jnp.float32) + hb3_ref[...]
    o_ref[...] = z


def _tail_call(x2, demo, params):
    """reduce3 .. fc3 in one pallas_call (per-sample grid, everything in VMEM)."""
    B = x2.shape[0]
    PAD = _PAD_TAIL

    # reduce3 (stride 2, padding 11//2=5) even/odd packed patches
    pe3, po3, L1 = _even_odd_patches(x2, K=params["reduce3"]["w"].shape[2],
                                     stride=2, pad=5)
    w3, t3 = _pack_conv(params["reduce3"])

    # all tail convs must have kernel_size == 2*PAD + 1 (scratch padding assumption)
    tail_convs = [params["reduce4"], params["reduce5"],
                  params["resblock1"]["conv1"], params["resblock1"]["conv2"],
                  params["resblock2"]["conv1"], params["resblock2"]["conv2"],
                  params["resblock3"]["conv1"], params["resblock3"]["conv2"]]
    for layer in tail_convs:
        assert layer["w"].shape[2] == 2 * PAD + 1, "fused tail assumes kernel_size=5"

    rb1w1, rb1t1 = _pack_conv(params["resblock1"]["conv1"])
    rb1w2, rb1t2 = _pack_conv(params["resblock1"]["conv2"])
    r4w, r4t = _pack_conv(params["reduce4"])
    rb2w1, rb2t1 = _pack_conv(params["resblock2"]["conv1"])
    rb2w2, rb2t2 = _pack_conv(params["resblock2"]["conv2"])
    r5w, r5t = _pack_conv(params["reduce5"])
    rb3w1, rb3t1 = _pack_conv(params["resblock3"]["conv1"])
    rb3w2, rb3t2 = _pack_conv(params["resblock3"]["conv2"])

    C1 = params["reduce3"]["w"].shape[0]
    C2 = params["reduce4"]["w"].shape[0]
    C3 = params["reduce5"]["w"].shape[0]
    L2, L3 = L1 // 2, L1 // 4

    # demo MLP
    dp = params["demo"]
    dw1, db1 = _pack_linear(dp["w1"], dp["b1"])
    dw2, db2 = _pack_linear(dp["w2"], dp["b2"])
    dw3, db3 = _pack_linear(dp["w3"], dp["b3"])
    demo_feat = dp["w3"].shape[0]

    # head: split shared1 into ECG / demo parts, fold BN, permute the ECG part from
    # PyTorch's channel-major flatten (c*L3 + l) to the kernel's position-major order.
    h = params["head"]
    F = h["shared1_w"].shape[0]
    ecg_feat = C3 * L3
    assert h["shared1_w"].shape[1] == ecg_feat + demo_feat, (
        "shared1 in_features must equal flattened-ECG + demo features "
        f"({ecg_feat}+{demo_feat}), got {h['shared1_w'].shape[1]}")
    eps = 1e-5
    scale1 = h["bn1_gamma"] / jnp.sqrt(h["bn1_var"] + eps)
    shift1 = (h["shared1_b"] - h["bn1_mean"]) * scale1 + h["bn1_beta"]
    W = h["shared1_w"]
    Wecg = jnp.transpose(W[:, :ecg_feat].reshape(F, C3, L3), (2, 1, 0)).reshape(ecg_feat, F)
    hwe = (Wecg * scale1[None, :]).astype(jnp.bfloat16)
    hwd = (W[:, ecg_feat:].T * scale1[None, :]).astype(jnp.bfloat16)
    ht1 = shift1.reshape(1, F).astype(jnp.float32)
    scale2 = h["bn2_gamma"] / jnp.sqrt(h["bn2_var"] + eps)
    shift2 = (h["fc2_b"] - h["bn2_mean"]) * scale2 + h["bn2_beta"]
    hw2 = (h["fc2_w"].T * scale2[None, :]).astype(jnp.bfloat16)
    ht2 = shift2.reshape(1, F).astype(jnp.float32)
    hw3 = h["fc3_w"].T.astype(jnp.bfloat16)
    hb3 = h["fc3_b"].reshape(1, -1).astype(jnp.float32)
    last_node = hw3.shape[1]

    demo3 = demo.reshape(B, 1, demo.shape[1]).astype(jnp.float32)

    per_batch = [pe3, po3, demo3]
    consts = [w3, t3,
              rb1w1, rb1t1, rb1w2, rb1t2,
              r4w, r4t,
              rb2w1, rb2t1, rb2w2, rb2t2,
              r5w, r5t,
              rb3w1, rb3t1, rb3w2, rb3t2,
              dw1, db1, dw2, db2, dw3, db3,
              hwe, hwd, ht1, hw2, ht2, hw3, hb3]
    in_specs = [_batch_spec(a) for a in per_batch] + [_const_spec(a) for a in consts]

    out = pl.pallas_call(
        _tail_kernel,
        out_shape=jax.ShapeDtypeStruct((B, 1, last_node), jnp.float32),
        grid=(B,),
        in_specs=in_specs,
        out_specs=pl.BlockSpec((None, 1, last_node), lambda b: (b, 0, 0)),
        scratch_shapes=[
            pltpu.VMEM((L1 + 2 * PAD, C1), jnp.float32),
            pltpu.VMEM((L1 + 2 * PAD, C1), jnp.float32),
            pltpu.VMEM((L2 + 2 * PAD, C2), jnp.float32),
            pltpu.VMEM((L2 + 2 * PAD, C2), jnp.float32),
            pltpu.VMEM((L3 + 2 * PAD, C3), jnp.float32),
            pltpu.VMEM((L3 + 2 * PAD, C3), jnp.float32),
        ],
        compiler_params=pltpu.CompilerParams(dimension_semantics=("parallel",)),
    )(*(per_batch + consts))
    return out.reshape(B, last_node)


# ----------------------------- forward pass -----------------------------

def resnet_forward(params, ecg_ncl, demo):
    """Equivalent of ResNet.forward(ecg, demo, which='both') in eval mode."""
    x = jnp.transpose(ecg_ncl, (0, 2, 1)).astype(jnp.float32)   # NCL -> (B, L, lead)
    x = reduce_stage(x, params["reduce1"], stride=2, pad=5)     # padding = 11 // 2
    x = reduce_stage(x, params["reduce2"], stride=2, pad=5)     # padding = 11 // 2
    return _tail_call(x, demo, params)                          # reduce3 .. fc3, fused


# ----------------------------- deterministic params -----------------------------

def init_params(key, *, conv_dim=4, lead=4, fc_dim=32, last_node=2, length=1):
    c1 = lead * conv_dim
    c2 = c1 * 2
    c3 = c1 * 4
    keys = iter(jax.random.split(key, 128))
    nk = lambda: next(keys)

    def conv_layer(cout, cin, k):
        return dict(
            w=jax.random.normal(nk(), (cout, cin, k), jnp.float32) / np.sqrt(cin * k),
            b=0.1 * jax.random.normal(nk(), (cout,), jnp.float32),
            gamma=1.0 + 0.1 * jax.random.normal(nk(), (cout,), jnp.float32),
            beta=0.1 * jax.random.normal(nk(), (cout,), jnp.float32),
            mean=0.1 * jax.random.normal(nk(), (cout,), jnp.float32),
            var=1.0 + 0.5 * jax.random.uniform(nk(), (cout,), jnp.float32),
        )

    def linear(dout, din):
        return (jax.random.normal(nk(), (dout, din), jnp.float32) / np.sqrt(din),
                0.1 * jax.random.normal(nk(), (dout,), jnp.float32))

    def bn(c):
        return dict(gamma=1.0 + 0.1 * jax.random.normal(nk(), (c,), jnp.float32),
                    beta=0.1 * jax.random.normal(nk(), (c,), jnp.float32),
                    mean=0.1 * jax.random.normal(nk(), (c,), jnp.float32),
                    var=1.0 + 0.5 * jax.random.uniform(nk(), (c,), jnp.float32))

    params = dict(
        reduce1=conv_layer(c1, lead, 11),
        reduce2=conv_layer(c1, c1, 7),
        reduce3=conv_layer(c1, c1, 5),
        reduce4=conv_layer(c2, c1, 5),
        reduce5=conv_layer(c3, c2, 5),
        resblock1=dict(conv1=conv_layer(c1, c1, 5), conv2=conv_layer(c1, c1, 5)),
        resblock2=dict(conv1=conv_layer(c2, c2, 5), conv2=conv_layer(c2, c2, 5)),
        resblock3=dict(conv1=conv_layer(c3, c3, 5), conv2=conv_layer(c3, c3, 5)),
    )

    dw1, db1 = linear(32, 2)
    dw2, db2 = linear(64, 32)
    dw3, db3 = linear(64, 64)
    params["demo"] = dict(w1=dw1, b1=db1, w2=dw2, b2=db2, w3=dw3, b3=db3)

    fc_in = int(64 * length * lead)   # module hard-codes the flattened ECG feature size
    sw, sb = linear(fc_dim, fc_in + 64)
    fw2, fb2 = linear(fc_dim, fc_dim)
    fw3, fb3 = linear(last_node, fc_dim)
    bn1, bn2 = bn(fc_dim), bn(fc_dim)
    params["head"] = dict(
        shared1_w=sw, shared1_b=sb,
        bn1_gamma=bn1["gamma"], bn1_beta=bn1["beta"], bn1_mean=bn1["mean"], bn1_var=bn1["var"],
        fc2_w=fw2, fc2_b=fb2,
        bn2_gamma=bn2["gamma"], bn2_beta=bn2["beta"], bn2_mean=bn2["mean"], bn2_var=bn2["var"],
        fc3_w=fw3, fc3_b=fb3)
    return params


# ----------------------------- main -----------------------------

if __name__ == "__main__":
    key = jax.random.PRNGKey(0)
    kp, kx, kd = jax.random.split(key, 3)

    # Small synthetic config: conv_dim=4, lead=4, fc_dim=32, last_node=2, length=1.
    # L=908 reduces to spatial length 4 with 64 channels, so the flattened ECG
    # feature size (256) matches the module's hard-coded 64*length*lead.
    B, lead, L = 2, 4, 908
    params = init_params(kp, conv_dim=4, lead=lead, fc_dim=32, last_node=2, length=1)

    ecg = jax.random.normal(kx, (B, lead, L), jnp.float32)   # PyTorch NCL layout
    demo = jax.random.normal(kd, (B, 2), jnp.float32)

    fwd = jax.jit(resnet_forward)
    out = jax.block_until_ready(fwd(params, ecg, demo))
    assert out.shape == (B, 2), out.shape
    assert bool(jnp.all(jnp.isfinite(out)))
    print("KERNEL_OK")
</pallas_src>

<mosaic_0001>
module attributes {stable_mosaic.version = 11 : i64} {
  func.func @_reduce_stage_kernel(%arg0: i32, %arg1: memref<1x227x44xbf16, #tpu.memory_space<vmem>>, %arg2: memref<1x227x44xbf16, #tpu.memory_space<vmem>>, %arg3: memref<44x16xbf16, #tpu.memory_space<vmem>>, %arg4: memref<1x16xf32, #tpu.memory_space<vmem>>, %arg5: memref<1x227x16xf32, #tpu.memory_space<vmem>>) attributes {dimension_semantics = [#tpu.dimension_semantics<parallel>], iteration_bounds = array<i64: 2>, scalar_prefetch = 0 : i64, scratch_operands = 0 : i64, tpu.core_type = #tpu.core_type<tc>, window_params = [{transform_indices = @transform_0, window_bounds = array<i64: 1, 227, 44>}, {transform_indices = @transform_1, window_bounds = array<i64: 1, 227, 44>}, {pipeline_mode = #tpu.pipeline_mode<synchronous>, transform_indices = @transform_2, window_bounds = array<i64: 44, 16>}, {pipeline_mode = #tpu.pipeline_mode<synchronous>, transform_indices = @transform_3, window_bounds = array<i64: 1, 16>}, {transform_indices = @transform_4, window_bounds = array<i64: 1, 227, 16>}]} {
    %c0 = arith.constant 0 : index
    %c0_0 = arith.constant 0 : index
    %0 = vector.load %arg3[%c0, %c0_0] : memref<44x16xbf16, #tpu.memory_space<vmem>>, vector<44x16xbf16>
    %c0_1 = arith.constant 0 : index
    %c0_2 = arith.constant 0 : index
    %1 = vector.load %arg4[%c0_1, %c0_2] : memref<1x16xf32, #tpu.memory_space<vmem>>, vector<1x16xf32>
    %c0_3 = arith.constant 0 : index
    %c0_4 = arith.constant 0 : index
    %c0_5 = arith.constant 0 : index
    %2 = vector.load %arg1[%c0_3, %c0_4, %c0_5] : memref<1x227x44xbf16, #tpu.memory_space<vmem>>, vector<1x227x44xbf16>
    %3 = vector.shape_cast %2 : vector<1x227x44xbf16> to vector<227x44xbf16>
    %cst = arith.constant dense<0.000000e+00> : vector<227x16xf32>
    %4 = tpu.matmul %3, %0, %cst {dimension_numbers = #tpu.dot_dimension_numbers<[1], [0], [0], [1], [0, 0, 1, 1], [], []>} : vector<227x44xbf16>, vector<44x16xbf16>, vector<227x16xf32> -> vector<227x16xf32>
    %5 = vector.broadcast %1 : vector<1x16xf32> to vector<227x16xf32>
    %6 = arith.addf %4, %5 : vector<227x16xf32>
    %c0_6 = arith.constant 0 : index
    %c0_7 = arith.constant 0 : index
    %c0_8 = arith.constant 0 : index
    %7 = vector.load %arg2[%c0_6, %c0_7, %c0_8] : memref<1x227x44xbf16, #tpu.memory_space<vmem>>, vector<1x227x44xbf16>
    %8 = vector.shape_cast %7 : vector<1x227x44xbf16> to vector<227x44xbf16>
    %cst_9 = arith.constant dense<0.000000e+00> : vector<227x16xf32>
    %9 = tpu.matmul %8, %0, %cst_9 {dimension_numbers = #tpu.dot_dimension_numbers<[1], [0], [0], [1], [0, 0, 1, 1], [], []>} : vector<227x44xbf16>, vector<44x16xbf16>, vector<227x16xf32> -> vector<227x16xf32>
    %10 = vector.broadcast %1 : vector<1x16xf32> to vector<227x16xf32>
    %11 = arith.addf %9, %10 : vector<227x16xf32>
    %12 = arith.maximumf %6, %11 : vector<227x16xf32>
    %cst_10 = arith.constant 0.000000e+00 : f32
    %13 = vector.broadcast %cst_10 : f32 to vector<227x16xf32>
    %14 = arith.maximumf %12, %13 : vector<227x16xf32>
    %c0_11 = arith.constant 0 : index
    %c0_12 = arith.constant 0 : index
    %c0_13 = arith.constant 0 : index
    %15 = vector.load %arg5[%c0_11, %c0_12, %c0_13] : memref<1x227x16xf32, #tpu.memory_space<vmem>>, vector<1x227x16xf32>
    %16 = vector.shape_cast %15 : vector<1x227x16xf32> to vector<227x16xf32>
    %17 = vector.shape_cast %14 : vector<227x16xf32> to vector<1x227x16xf32>
    tpu.vector_store %arg5[%c0_11, %c0_12, %c0_13], %17 {strides = array<i32>} : memref<1x227x16xf32, #tpu.memory_space<vmem>>, vector<1x227x16xf32>,
    return
  }
  func.func @transform_0(%arg0: i32) -> (i32, i32, i32) {
    %c0_i32 = arith.constant 0 : i32
    %c0_i32_0 = arith.constant 0 : i32
    %c0_i32_1 = arith.constant 0 : i32
    return %arg0, %c0_i32, %c0_i32_0 : i32, i32, i32
  }
  func.func @transform_1(%arg0: i32) -> (i32, i32, i32) {
    %c0_i32 = arith.constant 0 : i32
    %c0_i32_0 = arith.constant 0 : i32
    %c0_i32_1 = arith.constant 0 : i32
    return %arg0, %c0_i32, %c0_i32_0 : i32, i32, i32
  }
  func.func @transform_2(%arg0: i32) -> (i32, i32) {
    %c0_i32 = arith.constant 0 : i32
    %c0_i32_0 = arith.constant 0 : i32
    %c0_i32_1 = arith.constant 0 : i32
    return %c0_i32, %c0_i32_0 : i32, i32
  }
  func.func @transform_3(%arg0: i32) -> (i32, i32) {
    %c0_i32 = arith.constant 0 : i32
    %c0_i32_0 = arith.constant 0 : i32
    %c0_i32_1 = arith.constant 0 : i32
    return %c0_i32, %c0_i32_0 : i32, i32
  }
  func.func @transform_4(%arg0: i32) -> (i32, i32, i32) {
    %c0_i32 = arith.constant 0 : i32
    %c0_i32_0 = arith.constant 0 : i32
    %c0_i32_1 = arith.constant 0 : i32
    return %arg0, %c0_i32, %c0_i32_0 : i32, i32, i32
  }
}

module attributes {stable_mosaic.version = 11 : i64} {
  func.func @_reduce_stage_kernel(%arg0: i32, %arg1: memref<1x58x112xbf16, #tpu.memory_space<vmem>>, %arg2: memref<1x58x112xbf16, #tpu.memory_space<vmem>>, %arg3: memref<112x16xbf16, #tpu.memory_space<vmem>>, %arg4: memref<1x16xf32, #tpu.memory_space<vmem>>, %arg5: memref<1x58x16xf32, #tpu.memory_space<vmem>>) attributes {dimension_semantics = [#tpu.dimension_semantics<parallel>], iteration_bounds = array<i64: 2>, scalar_prefetch = 0 : i64, scratch_operands = 0 : i64, tpu.core_type = #tpu.core_type<tc>, window_params = [{transform_indices = @transform_0, window_bounds = array<i64: 1, 58, 112>}, {transform_indices = @transform_1, window_bounds = array<i64: 1, 58, 112>}, {pipeline_mode = #tpu.pipeline_mode<synchronous>, transform_indices = @transform_2, window_bounds = array<i64: 112, 16>}, {pipeline_mode = #tpu.pipeline_mode<synchronous>, transform_indices = @transform_3, window_bounds = array<i64: 1, 16>}, {transform_indices = @transform_4, window_bounds = array<i64: 1, 58, 16>}]} {
    %c0 = arith.constant 0 : index
    %c0_0 = arith.constant 0 : index
    %0 = vector.load %arg3[%c0, %c0_0] : memref<112x16xbf16, #tpu.memory_space<vmem>>, vector<112x16xbf16>
    %c0_1 = arith.constant 0 : index
    %c0_2 = arith.constant 0 : index
    %1 = vector.load %arg4[%c0_1, %c0_2] : memref<1x16xf32, #tpu.memory_space<vmem>>, vector<1x16xf32>
    %c0_3 = arith.constant 0 : index
    %c0_4 = arith.constant 0 : index
    %c0_5 = arith.constant 0 : index
    %2 = vector.load %arg1[%c0_3, %c0_4, %c0_5] : memref<1x58x112xbf16, #tpu.memory_space<vmem>>, vector<1x58x112xbf16>
    %3 = vector.shape_cast %2 : vector<1x58x112xbf16> to vector<58x112xbf16>
    %cst = arith.constant dense<0.000000e+00> : vector<58x16xf32>
    %4 = tpu.matmul %3, %0, %cst {dimension_numbers = #tpu.dot_dimension_numbers<[1], [0], [0], [1], [0, 0, 1, 1], [], []>} : vector<58x112xbf16>, vector<112x16xbf16>, vector<58x16xf32> -> vector<58x16xf32>
    %5 = vector.broadcast %1 : vector<1x16xf32> to vector<58x16xf32>
    %6 = arith.addf %4, %5 : vector<58x16xf32>
    %c0_6 = arith.constant 0 : index
    %c0_7 = arith.constant 0 : index
    %c0_8 = arith.constant 0 : index
    %7 = vector.load %arg2[%c0_6, %c0_7, %c0_8] : memref<1x58x112xbf16, #tpu.memory_space<vmem>>, vector<1x58x112xbf16>
    %8 = vector.shape_cast %7 : vector<1x58x112xbf16> to vector<58x112xbf16>
    %cst_9 = arith.constant dense<0.000000e+00> : vector<58x16xf32>
    %9 = tpu.matmul %8, %0, %cst_9 {dimension_numbers = #tpu.dot_dimension_numbers<[1], [0], [0], [1], [0, 0, 1, 1], [], []>} : vector<58x112xbf16>, vector<112x16xbf16>, vector<58x16xf32> -> vector<58x16xf32>
    %10 = vector.broadcast %1 : vector<1x16xf32> to vector<58x16xf32>
    %11 = arith.addf %9, %10 : vector<58x16xf32>
    %12 = arith.maximumf %6, %11 : vector<58x16xf32>
    %cst_10 = arith.constant 0.000000e+00 : f32
    %13 = vector.broadcast %cst_10 : f32 to vector<58x16xf32>
    %14 = arith.maximumf %12, %13 : vector<58x16xf32>
    %c0_11 = arith.constant 0 : index
    %c0_12 = arith.constant 0 : index
    %c0_13 = arith.constant 0 : index
    %15 = vector.load %arg5[%c0_11, %c0_12, %c0_13] : memref<1x58x16xf32, #tpu.memory_space<vmem>>, vector<1x58x16xf32>
    %16 = vector.shape_cast %15 : vector<1x58x16xf32> to vector<58x16xf32>
    %17 = vector.shape_cast %14 : vector<58x16xf32> to vector<1x58x16xf32>
    tpu.vector_store %arg5[%c0_11, %c0_12, %c0_13], %17 {strides = array<i32>} : memref<1x58x16xf32, #tpu.memory_space<vmem>>, vector<1x58x16xf32>,
    return
  }
  func.func @transform_0(%arg0: i32) -> (i32, i32, i32) {
    %c0_i32 = arith.constant 0 : i32
    %c0_i32_0 = arith.constant 0 : i32
    %c0_i32_1 = arith.constant 0 : i32
    return %arg0, %c0_i32, %c0_i32_0 : i32, i32, i32
  }
  func.func @transform_1(%arg0: i32) -> (i32, i32, i32) {
    %c0_i32 = arith.constant 0 : i32
    %c0_i32_0 = arith.constant 0 : i32
    %c0_i32_1 = arith.constant 0 : i32
    return %arg0, %c0_i32, %c0_i32_0 : i32, i32, i32
  }
  func.func @transform_2(%arg0: i32) -> (i32, i32) {
    %c0_i32 = arith.constant 0 : i32
    %c0_i32_0 = arith.constant 0 : i32
    %c0_i32_1 = arith.constant 0 : i32
    return %c0_i32, %c0_i32_0 : i32, i32
  }
  func.func @transform_3(%arg0: i32) -> (i32, i32) {
    %c0_i32 = arith.constant 0 : i32
    %c0_i32_0 = arith.constant 0 : i32
    %c0_i32_1 = arith.constant 0 : i32
    return %c0_i32, %c0_i32_0 : i32, i32
  }
  func.func @transform_4(%arg0: i32) -> (i32, i32, i32) {
    %c0_i32 = arith.constant 0 : i32
    %c0_i32_0 = arith.constant 0 : i32
    %c0_i32_1 = arith.constant 0 : i32
    return %arg0, %c0_i32, %c0_i32_0 : i32, i32, i32
  }
}

module attributes {stable_mosaic.version = 11 : i64} {
  func.func @_tail_kernel(%arg0: i32, %arg1: memref<1x16x80xbf16, #tpu.memory_space<vmem>>, %arg2: memref<1x16x80xbf16, #tpu.memory_space<vmem>>, %arg3: memref<1x1x2xf32, #tpu.memory_space<vmem>>, %arg4: memref<80x16xbf16, #tpu.memory_space<vmem>>, %arg5: memref<1x16xf32, #tpu.memory_space<vmem>>, %arg6: memref<80x16xbf16, #tpu.memory_space<vmem>>, %arg7: memref<1x16xf32, #tpu.memory_space<vmem>>, %arg8: memref<80x16xbf16, #tpu.memory_space<vmem>>, %arg9: memref<1x16xf32, #tpu.memory_space<vmem>>, %arg10: memref<80x32xbf16, #tpu.memory_space<vmem>>, %arg11: memref<1x32xf32, #tpu.memory_space<vmem>>, %arg12: memref<160x32xbf16, #tpu.memory_space<vmem>>, %arg13: memref<1x32xf32, #tpu.memory_space<vmem>>, %arg14: memref<160x32xbf16, #tpu.memory_space<vmem>>, %arg15: memref<1x32xf32, #tpu.memory_space<vmem>>, %arg16: memref<160x64xbf16, #tpu.memory_space<vmem>>, %arg17: memref<1x64xf32, #tpu.memory_space<vmem>>, %arg18: memref<320x64xbf16, #tpu.memory_space<vmem>>, %arg19: memref<1x64xf32, #tpu.memory_space<vmem>>, %arg20: memref<320x64xbf16, #tpu.memory_space<vmem>>, %arg21: memref<1x64xf32, #tpu.memory_space<vmem>>, %arg22: memref<2x32xbf16, #tpu.memory_space<vmem>>, %arg23: memref<1x32xf32, #tpu.memory_space<vmem>>, %arg24: memref<32x64xbf16, #tpu.memory_space<vmem>>, %arg25: memref<1x64xf32, #tpu.memory_space<vmem>>, %arg26: memref<64x64xbf16, #tpu.memory_space<vmem>>, %arg27: memref<1x64xf32, #tpu.memory_space<vmem>>, %arg28: memref<256x32xbf16, #tpu.memory_space<vmem>>, %arg29: memref<64x32xbf16, #tpu.memory_space<vmem>>, %arg30: memref<1x32xf32, #tpu.memory_space<vmem>>, %arg31: memref<32x32xbf16, #tpu.memory_space<vmem>>, %arg32: memref<1x32xf32, #tpu.memory_space<vmem>>, %arg33: memref<32x2xbf16, #tpu.memory_space<vmem>>, %arg34: memref<1x2xf32, #tpu.memory_space<vmem>>, %arg35: memref<1x1x2xf32, #tpu.memory_space<vmem>>, %arg36: memref<20x16xf32, #tpu.memory_space<vmem>>, %arg37: memref<20x16xf32, #tpu.memory_space<vmem>>, %arg38: memref<12x32xf32, #tpu.memory_space<vmem>>, %arg39: memref<12x32xf32, #tpu.memory_space<vmem>>, %arg40: memref<8x64xf32, #tpu.memory_space<vmem>>, %arg41: memref<8x64xf32, #tpu.memory_space<vmem>>) attributes {dimension_semantics = [#tpu.dimension_semantics<parallel>], iteration_bounds = array<i64: 2>, scalar_prefetch = 0 : i64, scratch_operands = 6 : i64, tpu.core_type = #tpu.core_type<tc>, window_params = [{transform_indices = @transform_0, window_bounds = array<i64: 1, 16, 80>}, {transform_indices = @transform_1, window_bounds = array<i64: 1, 16, 80>}, {transform_indices = @transform_2, window_bounds = array<i64: 1, 1, 2>}, {pipeline_mode = #tpu.pipeline_mode<synchronous>, transform_indices = @transform_3, window_bounds = array<i64: 80, 16>}, {pipeline_mode = #tpu.pipeline_mode<synchronous>, transform_indices = @transform_4, window_bounds = array<i64: 1, 16>}, {pipeline_mode = #tpu.pipeline_mode<synchronous>, transform_indices = @transform_5, window_bounds = array<i64: 80, 16>}, {pipeline_mode = #tpu.pipeline_mode<synchronous>, transform_indices = @transform_6, window_bounds = array<i64: 1, 16>}, {pipeline_mode = #tpu.pipeline_mode<synchronous>, transform_indices = @transform_7, window_bounds = array<i64: 80, 16>}, {pipeline_mode = #tpu.pipeline_mode<synchronous>, transform_indices = @transform_8, window_bounds = array<i64: 1, 16>}, {pipeline_mode = #tpu.pipeline_mode<synchronous>, transform_indices = @transform_9, window_bounds = array<i64: 80, 32>}, {pipeline_mode = #tpu.pipeline_mode<synchronous>, transform_indices = @transform_10, window_bounds = array<i64: 1, 32>}, {pipeline_mode = #tpu.pipeline_mode<synchronous>, transform_indices = @transform_11, window_bounds = array<i64: 160, 32>}, {pipeline_mode = #tpu.pipeline_mode<synchronous>, transform_indices = @transform_12, window_bounds = array<i64: 1, 32>}, {pipeline_mode = #tpu.pipeline_mode<synchronous>, transform_indices = @transform_13, window_bounds = array<i64: 160, 32>}, {pipeline_mode = #tpu.pipeline_mode<synchronous>, transform_indices = @transform_14, window_bounds = array<i64: 1, 32>}, {pipeline_mode = #tpu.pipeline_mode<synchronous>, transform_indices = @transform_15, window_bounds = array<i64: 160, 64>}, {pipeline_mode = #tpu.pipeline_mode<synchronous>, transform_indices = @transform_16, window_bounds = array<i64: 1, 64>}, {pipeline_mode = #tpu.pipeline_mode<synchronous>, transform_indices = @transform_17, window_bounds = array<i64: 320, 64>}, {pipeline_mode = #tpu.pipeline_mode<synchronous>, transform_indices = @transform_18, window_bounds = array<i64: 1, 64>}, {pipeline_mode = #tpu.pipeline_mode<synchronous>, transform_indices = @transform_19, window_bounds = array<i64: 320, 64>}, {pipeline_mode = #tpu.pipeline_mode<synchronous>, transform_indices = @transform_20, window_bounds = array<i64: 1, 64>}, {pipeline_mode = #tpu.pipeline_mode<synchronous>, transform_indices = @transform_21, window_bounds = array<i64: 2, 32>}, {pipeline_mode = #tpu.pipeline_mode<synchronous>, transform_indices = @transform_22, window_bounds = array<i64: 1, 32>}, {pipeline_mode = #tpu.pipeline_mode<synchronous>, transform_indices = @transform_23, window_bounds = array<i64: 32, 64>}, {pipeline_mode = #tpu.pipeline_mode<synchronous>, transform_indices = @transform_24, window_bounds = array<i64: 1, 64>}, {pipeline_mode = #tpu.pipeline_mode<synchronous>, transform_indices = @transform_25, window_bounds = array<i64: 64, 64>}, {pipeline_mode = #tpu.pipeline_mode<synchronous>, transform_indices = @transform_26, window_bounds = array<i64: 1, 64>}, {pipeline_mode = #tpu.pipeline_mode<synchronous>, transform_indices = @transform_27, window_bounds = array<i64: 256, 32>}, {pipeline_mode = #tpu.pipeline_mode<synchronous>, transform_indices = @transform_28, window_bounds = array<i64: 64, 32>}, {pipeline_mode = #tpu.pipeline_mode<synchronous>, transform_indices = @transform_29, window_bounds = array<i64: 1, 32>}, {pipeline_mode = #tpu.pipeline_mode<synchronous>, transform_indices = @transform_30, window_bounds = array<i64: 32, 32>}, {pipeline_mode = #tpu.pipeline_mode<synchronous>, transform_indices = @transform_31, window_bounds = array<i64: 1, 32>}, {pipeline_mode = #tpu.pipeline_mode<synchronous>, transform_indices = @transform_32, window_bounds = array<i64: 32, 2>}, {pipeline_mode = #tpu.pipeline_mode<synchronous>, transform_indices = @transform_33, window_bounds = array<i64: 1, 2>}, {transform_indices = @transform_34, window_bounds = array<i64: 1, 1, 2>}]} {
    %cst = arith.constant 0.000000e+00 : f32
    %0 = vector.broadcast %cst : f32 to vector<20x16xf32>
    %c0 = arith.constant 0 : index
    %c0_0 = arith.constant 0 : index
    %1 = vector.load %arg36[%c0, %c0_0] : memref<20x16xf32, #tpu.memory_space<vmem>>, vector<20x16xf32>
    tpu.vector_store %arg36[%c0, %c0_0], %0 {strides = array<i32>} : memref<20x16xf32, #tpu.memory_space<vmem>>, vector<20x16xf32>,
    %cst_1 = arith.constant 0.000000e+00 : f32
    %2 = vector.broadcast %cst_1 : f32 to vector<20x16xf32>
    %c0_2 = arith.constant 0 : index
    %c0_3 = arith.constant 0 : index
    %3 = vector.load %arg37[%c0_2, %c0_3] : memref<20x16xf32, #tpu.memory_space<vmem>>, vector<20x16xf32>
    tpu.vector_store %arg37[%c0_2, %c0_3], %2 {strides = array<i32>} : memref<20x16xf32, #tpu.memory_space<vmem>>, vector<20x16xf32>,
    %cst_4 = arith.constant 0.000000e+00 : f32
    %4 = vector.broadcast %cst_4 : f32 to vector<12x32xf32>
    %c0_5 = arith.constant 0 : index
    %c0_6 = arith.constant 0 : index
    %5 = vector.load %arg38[%c0_5, %c0_6] : memref<12x32xf32, #tpu.memory_space<vmem>>, vector<12x32xf32>
    tpu.vector_store %arg38[%c0_5, %c0_6], %4 {strides = array<i32>} : memref<12x32xf32, #tpu.memory_space<vmem>>, vector<12x32xf32>,
    %cst_7 = arith.constant 0.000000e+00 : f32
    %6 = vector.broadcast %cst_7 : f32 to vector<12x32xf32>
    %c0_8 = arith.constant 0 : index
    %c0_9 = arith.constant 0 : index
    %7 = vector.load %arg39[%c0_8, %c0_9] : memref<12x32xf32, #tpu.memory_space<vmem>>, vector<12x32xf32>
    tpu.vector_store %arg39[%c0_8, %c0_9], %6 {strides = array<i32>} : memref<12x32xf32, #tpu.memory_space<vmem>>, vector<12x32xf32>,
    %cst_10 = arith.constant 0.000000e+00 : f32
    %8 = vector.broadcast %cst_10 : f32 to vector<8x64xf32>
    %c0_11 = arith.constant 0 : index
    %c0_12 = arith.constant 0 : index
    %9 = vector.load %arg40[%c0_11, %c0_12] : memref<8x64xf32, #tpu.memory_space<vmem>>, vector<8x64xf32>
    tpu.vector_store %arg40[%c0_11, %c0_12], %8 {strides = array<i32>} : memref<8x64xf32, #tpu.memory_space<vmem>>, vector<8x64xf32>,
    %cst_13 = arith.constant 0.000000e+00 : f32
    %10 = vector.broadcast %cst_13 : f32 to vector<8x64xf32>
    %c0_14 = arith.constant 0 : index
    %c0_15 = arith.constant 0 : index
    %11 = vector.load %arg41[%c0_14, %c0_15] : memref<8x64xf32, #tpu.memory_space<vmem>>, vector<8x64xf32>
    tpu.vector_store %arg41[%c0_14, %c0_15], %10 {strides = array<i32>} : memref<8x64xf32, #tpu.memory_space<vmem>>, vector<8x64xf32>,
    %c0_16 = arith.constant 0 : index
    %c0_17 = arith.constant 0 : index
    %12 = vector.load %arg4[%c0_16, %c0_17] : memref<80x16xbf16, #tpu.memory_space<vmem>>, vector<80x16xbf16>
    %c0_18 = arith.constant 0 : index
    %c0_19 = arith.constant 0 : index
    %13 = vector.load %arg5[%c0_18, %c0_19] : memref<1x16xf32, #tpu.memory_space<vmem>>, vector<1x16xf32>
    %c0_20 = arith.constant 0 : index
    %c0_21 = arith.constant 0 : index
    %c0_22 = arith.constant 0 : index
    %14 = vector.load %arg1[%c0_20, %c0_21, %c0_22] : memref<1x16x80xbf16, #tpu.memory_space<vmem>>, vector<1x16x80xbf16>
    %15 = vector.shape_cast %14 : vector<1x16x80xbf16> to vector<16x80xbf16>
    %cst_23 = arith.constant dense<0.000000e+00> : vector<16x16xf32>
    %16 = tpu.matmul %15, %12, %cst_23 {dimension_numbers = #tpu.dot_dimension_numbers<[1], [0], [0], [1], [0, 0, 1, 1], [], []>} : vector<16x80xbf16>, vector<80x16xbf16>, vector<16x16xf32> -> vector<16x16xf32>
    %17 = vector.broadcast %13 : vector<1x16xf32> to vector<16x16xf32>
    %18 = arith.addf %16, %17 : vector<16x16xf32>
    %c0_24 = arith.constant 0 : index
    %c0_25 = arith.constant 0 : index
    %c0_26 = arith.constant 0 : index
    %19 = vector.load %arg2[%c0_24, %c0_25, %c0_26] : memref<1x16x80xbf16, #tpu.memory_space<vmem>>, vector<1x16x80xbf16>
    %20 = vector.shape_cast %19 : vector<1x16x80xbf16> to vector<16x80xbf16>
    %cst_27 = arith.constant dense<0.000000e+00> : vector<16x16xf32>
    %21 = tpu.matmul %20, %12, %cst_27 {dimension_numbers = #tpu.dot_dimension_numbers<[1], [0], [0], [1], [0, 0, 1, 1], [], []>} : vector<16x80xbf16>, vector<80x16xbf16>, vector<16x16xf32> -> vector<16x16xf32>
    %22 = vector.broadcast %13 : vector<1x16xf32> to vector<16x16xf32>
    %23 = arith.addf %21, %22 : vector<16x16xf32>
    %24 = arith.maximumf %18, %23 : vector<16x16xf32>
    %cst_28 = arith.constant 0.000000e+00 : f32
    %25 = vector.broadcast %cst_28 : f32 to vector<16x16xf32>
    %26 = arith.maximumf %24, %25 : vector<16x16xf32>
    %c2 = arith.constant 2 : index
    %c0_29 = arith.constant 0 : index
    %27 = vector.load %arg36[%c2, %c0_29] : memref<20x16xf32, #tpu.memory_space<vmem>>, vector<16x16xf32>
    tpu.vector_store %arg36[%c2, %c0_29], %26 {strides = array<i32>} : memref<20x16xf32, #tpu.memory_space<vmem>>, vector<16x16xf32>,
    %c0_30 = arith.constant 0 : index
    %c0_31 = arith.constant 0 : index
    %28 = vector.load %arg6[%c0_30, %c0_31] : memref<80x16xbf16, #tpu.memory_space<vmem>>, vector<80x16xbf16>
    %cst_32 = arith.constant 0.000000e+00 : f32
    %29 = vector.broadcast %cst_32 : f32 to vector<16x16xf32>
    %c0_33 = arith.constant 0 : index
    %c0_34 = arith.constant 0 : index
    %30 = vector.load %arg36[%c0_33, %c0_34] : memref<20x16xf32, #tpu.memory_space<vmem>>, vector<16x16xf32>
    %31 = arith.truncf %30 : vector<16x16xf32> to vector<16x16xbf16>
    %32 = vector.extract_strided_slice %28 {offsets = [0, 0], sizes = [16, 16], strides = [1, 1]} : vector<80x16xbf16> to vector<16x16xbf16>
    %cst_35 = arith.constant dense<0.000000e+00> : vector<16x16xf32>
    %33 = tpu.matmul %31, %32, %cst_35 {dimension_numbers = #tpu.dot_dimension_numbers<[1], [0], [0], [1], [0, 0, 1, 1], [], []>} : vector<16x16xbf16>, vector<16x16xbf16>, vector<16x16xf32> -> vector<16x16xf32>
    %34 = arith.addf %29, %33 : vector<16x16xf32>
    %c1 = arith.constant 1 : index
    %c0_36 = arith.constant 0 : index
    %35 = vector.load %arg36[%c1, %c0_36] : memref<20x16xf32, #tpu.memory_space<vmem>>, vector<16x16xf32>
    %36 = arith.truncf %35 : vector<16x16xf32> to vector<16x16xbf16>
    %37 = vector.extract_strided_slice %28 {offsets = [16, 0], sizes = [16, 16], strides = [1, 1]} : vector<80x16xbf16> to vector<16x16xbf16>
    %cst_37 = arith.constant dense<0.000000e+00> : vector<16x16xf32>
    %38 = tpu.matmul %36, %37, %cst_37 {dimension_numbers = #tpu.dot_dimension_numbers<[1], [0], [0], [1], [0, 0, 1, 1], [], []>} : vector<16x16xbf16>, vector<16x16xbf16>, vector<16x16xf32> -> vector<16x16xf32>
    %39 = arith.addf %34, %38 : vector<16x16xf32>
    %c2_38 = arith.constant 2 : index
    %c0_39 = arith.constant 0 : index
    %40 = vector.load %arg36[%c2_38, %c0_39] : memref<20x16xf32, #tpu.memory_space<vmem>>, vector<16x16xf32>
    %41 = arith.truncf %40 : vector<16x16xf32> to vector<16x16xbf16>
    %42 = vector.extract_strided_slice %28 {offsets = [32, 0], sizes = [16, 16], strides = [1, 1]} : vector<80x16xbf16> to vector<16x16xbf16>
    %cst_40 = arith.constant dense<0.000000e+00> : vector<16x16xf32>
    %43 = tpu.matmul %41, %42, %cst_40 {dimension_numbers = #tpu.dot_dimension_numbers<[1], [0], [0], [1], [0, 0, 1, 1], [], []>} : vector<16x16xbf16>, vector<16x16xbf16>, vector<16x16xf32> -> vector<16x16xf32>
    %44 = arith.addf %39, %43 : vector<16x16xf32>
    %c3 = arith.constant 3 : index
    %c0_41 = arith.constant 0 : index
    %45 = vector.load %arg36[%c3, %c0_41] : memref<20x16xf32, #tpu.memory_space<vmem>>, vector<16x16xf32>
    %46 = arith.truncf %45 : vector<16x16xf32> to vector<16x16xbf16>
    %47 = vector.extract_strided_slice %28 {offsets = [48, 0], sizes = [16, 16], strides = [1, 1]} : vector<80x16xbf16> to vector<16x16xbf16>
    %cst_42 = arith.constant dense<0.000000e+00> : vector<16x16xf32>
    %48 = tpu.matmul %46, %47, %cst_42 {dimension_numbers = #tpu.dot_dimension_numbers<[1], [0], [0], [1], [0, 0, 1, 1], [], []>} : vector<16x16xbf16>, vector<16x16xbf16>, vector<16x16xf32> -> vector<16x16xf32>
    %49 = arith.addf %44, %48 : vector<16x16xf32>
    %c4 = arith.constant 4 : index
    %c0_43 = arith.constant 0 : index
    %50 = vector.load %arg36[%c4, %c0_43] : memref<20x16xf32, #tpu.memory_space<vmem>>, vector<16x16xf32>
    %51 = arith.truncf %50 : vector<16x16xf32> to vector<16x16xbf16>
    %52 = vector.extract_strided_slice %28 {offsets = [64, 0], sizes = [16, 16], strides = [1, 1]} : vector<80x16xbf16> to vector<16x16xbf16>
    %cst_44 = arith.constant dense<0.000000e+00> : vector<16x16xf32>
    %53 = tpu.matmul %51, %52, %cst_44 {dimension_numbers = #tpu.dot_dimension_numbers<[1], [0], [0], [1], [0, 0, 1, 1], [], []>} : vector<16x16xbf16>, vector<16x16xbf16>, vector<16x16xf32> -> vector<16x16xf32>
    %54 = arith.addf %49, %53 : vector<16x16xf32>
    %c0_45 = arith.constant 0 : index
    %c0_46 = arith.constant 0 : index
    %55 = vector.load %arg7[%c0_45, %c0_46] : memref<1x16xf32, #tpu.memory_space<vmem>>, vector<1x16xf32>
    %56 = vector.broadcast %55 : vector<1x16xf32> to vector<16x16xf32>
    %57 = arith.addf %54, %56 : vector<16x16xf32>
    %cst_47 = arith.constant 0.000000e+00 : f32
    %58 = vector.broadcast %cst_47 : f32 to vector<16x16xf32>
    %59 = arith.maximumf %57, %58 : vector<16x16xf32>
    %c2_48 = arith.constant 2 : index
    %c0_49 = arith.constant 0 : index
    %60 = vector.load %arg37[%c2_48, %c0_49] : memref<20x16xf32, #tpu.memory_space<vmem>>, vector<16x16xf32>
    tpu.vector_store %arg37[%c2_48, %c0_49], %59 {strides = array<i32>} : memref<20x16xf32, #tpu.memory_space<vmem>>, vector<16x16xf32>,
    %c2_50 = arith.constant 2 : index
    %c0_51 = arith.constant 0 : index
    %61 = vector.load %arg36[%c2_50, %c0_51] : memref<20x16xf32, #tpu.memory_space<vmem>>, vector<16x16xf32>
    %c0_52 = arith.constant 0 : index
    %c0_53 = arith.constant 0 : index
    %62 = vector.load %arg8[%c0_52, %c0_53] : memref<80x16xbf16, #tpu.memory_space<vmem>>, vector<80x16xbf16>
    %cst_54 = arith.constant 0.000000e+00 : f32
    %63 = vector.broadcast %cst_54 : f32 to vector<16x16xf32>
    %c0_55 = arith.constant 0 : index
    %c0_56 = arith.constant 0 : index
    %64 = vector.load %arg37[%c0_55, %c0_56] : memref<20x16xf32, #tpu.memory_space<vmem>>, vector<16x16xf32>
    %65 = arith.truncf %64 : vector<16x16xf32> to vector<16x16xbf16>
    %66 = vector.extract_strided_slice %62 {offsets = [0, 0], sizes = [16, 16], strides = [1, 1]} : vector<80x16xbf16> to vector<16x16xbf16>
    %cst_57 = arith.constant dense<0.000000e+00> : vector<16x16xf32>
    %67 = tpu.matmul %65, %66, %cst_57 {dimension_numbers = #tpu.dot_dimension_numbers<[1], [0], [0], [1], [0, 0, 1, 1], [], []>} : vector<16x16xbf16>, vector<16x16xbf16>, vector<16x16xf32> -> vector<16x16xf32>
    %68 = arith.addf %63, %67 : vector<16x16xf32>
    %c1_58 = arith.constant 1 : index
    %c0_59 = arith.constant 0 : index
    %69 = vector.load %arg37[%c1_58, %c0_59] : memref<20x16xf32, #tpu.memory_space<vmem>>, vector<16x16xf32>
    %70 = arith.truncf %69 : vector<16x16xf32> to vector<16x16xbf16>
    %71 = vector.extract_strided_slice %62 {offsets = [16, 0], sizes = [16, 16], strides = [1, 1]} : vector<80x16xbf16> to vector<16x16xbf16>
    %cst_60 = arith.constant dense<0.000000e+00> : vector<16x16xf32>
    %72 = tpu.matmul %70, %71, %cst_60 {dimension_numbers = #tpu.dot_dimension_numbers<[1], [0], [0], [1], [0, 0, 1, 1], [], []>} : vector<16x16xbf16>, vector<16x16xbf16>, vector<16x16xf32> -> vector<16x16xf32>
    %73 = arith.addf %68, %72 : vector<16x16xf32>
    %c2_61 = arith.constant 2 : index
    %c0_62 = arith.constant 0 : index
    %74 = vector.load %arg37[%c2_61, %c0_62] : memref<20x16xf32, #tpu.memory_space<vmem>>, vector<16x16xf32>
    %75 = arith.truncf %74 : vector<16x16xf32> to vector<16x16xbf16>
    %76 = vector.extract_strided_slice %62 {offsets = [32, 0], sizes = [16, 16], strides = [1, 1]} : vector<80x16xbf16> to vector<16x16xbf16>
    %cst_63 = arith.constant dense<0.000000e+00> : vector<16x16xf32>
    %77 = tpu.matmul %75, %76, %cst_63 {dimension_numbers = #tpu.dot_dimension_numbers<[1], [0], [0], [1], [0, 0, 1, 1], [], []>} : vector<16x16xbf16>, vector<16x16xbf16>, vector<16x16xf32> -> vector<16x16xf32>
    %78 = arith.addf %73, %77 : vector<16x16xf32>
    %c3_64 = arith.constant 3 : index
    %c0_65 = arith.constant 0 : index
    %79 = vector.load %arg37[%c3_64, %c0_65] : memref<20x16xf32, #tpu.memory_space<vmem>>, vector<16x16xf32>
    %80 = arith.truncf %79 : vector<16x16xf32> to vector<16x16xbf16>
    %81 = vector.extract_strided_slice %62 {offsets = [48, 0], sizes = [16, 16], strides = [1, 1]} : vector<80x16xbf16> to vector<16x16xbf16>
    %cst_66 = arith.constant dense<0.000000e+00> : vector<16x16xf32>
    %82 = tpu.matmul %80, %81, %cst_66 {dimension_numbers = #tpu.dot_dimension_numbers<[1], [0], [0], [1], [0, 0, 1, 1], [], []>} : vector<16x16xbf16>, vector<16x16xbf16>, vector<16x16xf32> -> vector<16x16xf32>
    %83 = arith.addf %78, %82 : vector<16x16xf32>
    %c4_67 = arith.constant 4 : index
    %c0_68 = arith.constant 0 : index
    %84 = vector.load %arg37[%c4_67, %c0_68] : memref<20x16xf32, #tpu.memory_space<vmem>>, vector<16x16xf32>
    %85 = arith.truncf %84 : vector<16x16xf32> to vector<16x16xbf16>
    %86 = vector.extract_strided_slice %62 {offsets = [64, 0], sizes = [16, 16], strides = [1, 1]} : vector<80x16xbf16> to vector<16x16xbf16>
    %cst_69 = arith.constant dense<0.000000e+00> : vector<16x16xf32>
    %87 = tpu.matmul %85, %86, %cst_69 {dimension_numbers = #tpu.dot_dimension_numbers<[1], [0], [0], [1], [0, 0, 1, 1], [], []>} : vector<16x16xbf16>, vector<16x16xbf16>, vector<16x16xf32> -> vector<16x16xf32>
    %88 = arith.addf %83, %87 : vector<16x16xf32>
    %c0_70 = arith.constant 0 : index
    %c0_71 = arith.constant 0 : index
    %89 = vector.load %arg9[%c0_70, %c0_71] : memref<1x16xf32, #tpu.memory_space<vmem>>, vector<1x16xf32>
    %90 = vector.broadcast %89 : vector<1x16xf32> to vector<16x16xf32>
    %91 = arith.addf %88, %90 : vector<16x16xf32>
    %92 = arith.addf %91, %61 : vector<16x16xf32>
    %cst_72 = arith.constant 0.000000e+00 : f32
    %93 = vector.broadcast %cst_72 : f32 to vector<16x16xf32>
    %94 = arith.maximumf %92, %93 : vector<16x16xf32>
    %c2_73 = arith.constant 2 : index
    %c0_74 = arith.constant 0 : index
    %95 = vector.load %arg36[%c2_73, %c0_74] : memref<20x16xf32, #tpu.memory_space<vmem>>, vector<16x16xf32>
    tpu.vector_store %arg36[%c2_73, %c0_74], %94 {strides = array<i32>} : memref<20x16xf32, #tpu.memory_space<vmem>>, vector<16x16xf32>,
    %c0_75 = arith.constant 0 : index
    %c0_76 = arith.constant 0 : index
    %96 = vector.load %arg6[%c0_75, %c0_76] : memref<80x16xbf16, #tpu.memory_space<vmem>>, vector<80x16xbf16>
    %cst_77 = arith.constant 0.000000e+00 : f32
    %97 = vector.broadcast %cst_77 : f32 to vector<16x16xf32>
    %c0_78 = arith.constant 0 : index
    %c0_79 = arith.constant 0 : index
    %98 = vector.load %arg36[%c0_78, %c0_79] : memref<20x16xf32, #tpu.memory_space<vmem>>, vector<16x16xf32>
    %99 = arith.truncf %98 : vector<16x16xf32> to vector<16x16xbf16>
    %100 = vector.extract_strided_slice %96 {offsets = [0, 0], sizes = [16, 16], strides = [1, 1]} : vector<80x16xbf16> to vector<16x16xbf16>
    %cst_80 = arith.constant dense<0.000000e+00> : vector<16x16xf32>
    %101 = tpu.matmul %99, %100, %cst_80 {dimension_numbers = #tpu.dot_dimension_numbers<[1], [0], [0], [1], [0, 0, 1, 1], [], []>} : vector<16x16xbf16>, vector<16x16xbf16>, vector<16x16xf32> -> vector<16x16xf32>
    %102 = arith.addf %97, %101 : vector<16x16xf32>
    %c1_81 = arith.constant 1 : index
    %c0_82 = arith.constant 0 : index
    %103 = vector.load %arg36[%c1_81, %c0_82] : memref<20x16xf32, #tpu.memory_space<vmem>>, vector<16x16xf32>
    %104 = arith.truncf %103 : vector<16x16xf32> to vector<16x16xbf16>
    %105 = vector.extract_strided_slice %96 {offsets = [16, 0], sizes = [16, 16], strides = [1, 1]} : vector<80x16xbf16> to vector<16x16xbf16>
    %cst_83 = arith.constant dense<0.000000e+00> : vector<16x16xf32>
    %106 = tpu.matmul %104, %105, %cst_83 {dimension_numbers = #tpu.dot_dimension_numbers<[1], [0], [0], [1], [0, 0, 1, 1], [], []>} : vector<16x16xbf16>, vector<16x16xbf16>, vector<16x16xf32> -> vector<16x16xf32>
    %107 = arith.addf %102, %106 : vector<16x16xf32>
    %c2_84 = arith.constant 2 : index
    %c0_85 = arith.constant 0 : index
    %108 = vector.load %arg36[%c2_84, %c0_85] : memref<20x16xf32, #tpu.memory_space<vmem>>, vector<16x16xf32>
    %109 = arith.truncf %108 : vector<16x16xf32> to vector<16x16xbf16>
    %110 = vector.extract_strided_slice %96 {offsets = [32, 0], sizes = [16, 16], strides = [1, 1]} : vector<80x16xbf16> to vector<16x16xbf16>
    %cst_86 = arith.constant dense<0.000000e+00> : vector<16x16xf32>
    %111 = tpu.matmul %109, %110, %cst_86 {dimension_numbers = #tpu.dot_dimension_numbers<[1], [0], [0], [1], [0, 0, 1, 1], [], []>} : vector<16x16xbf16>, vector<16x16xbf16>, vector<16x16xf32> -> vector<16x16xf32>
    %112 = arith.addf %107, %111 : vector<16x16xf32>
    %c3_87 = arith.constant 3 : index
    %c0_88 = arith.constant 0 : index
    %113 = vector.load %arg36[%c3_87, %c0_88] : memref<20x16xf32, #tpu.memory_space<vmem>>, vector<16x16xf32>
    %114 = arith.truncf %113 : vector<16x16xf32> to vector<16x16xbf16>
    %115 = vector.extract_strided_slice %96 {offsets = [48, 0], sizes = [16, 16], strides = [1, 1]} : vector<80x16xbf16> to vector<16x16xbf16>
    %cst_89 = arith.constant dense<0.000000e+00> : vector<16x16xf32>
    %116 = tpu.matmul %114, %115, %cst_89 {dimension_numbers = #tpu.dot_dimension_numbers<[1], [0], [0], [1], [0, 0, 1, 1], [], []>} : vector<16x16xbf16>, vector<16x16xbf16>, vector<16x16xf32> -> vector<16x16xf32>
    %117 = arith.addf %112, %116 : vector<16x16xf32>
    %c4_90 = arith.constant 4 : index
    %c0_91 = arith.constant 0 : index
    %118 = vector.load %arg36[%c4_90, %c0_91] : memref<20x16xf32, #tpu.memory_space<vmem>>, vector<16x16xf32>
    %119 = arith.truncf %118 : vector<16x16xf32> to vector<16x16xbf16>
    %120 = vector.extract_strided_slice %96 {offsets = [64, 0], sizes = [16, 16], strides = [1, 1]} : vector<80x16xbf16> to vector<16x16xbf16>
    %cst_92 = arith.constant dense<0.000000e+00> : vector<16x16xf32>
    %121 = tpu.matmul %119, %120, %cst_92 {dimension_numbers = #tpu.dot_dimension_numbers<[1], [0], [0], [1], [0, 0, 1, 1], [], []>} : vector<16x16xbf16>, vector<16x16xbf16>, vector<16x16xf32> -> vector<16x16xf32>
    %122 = arith.addf %117, %121 : vector<16x16xf32>
    %c0_93 = arith.constant 0 : index
    %c0_94 = arith.constant 0 : index
    %123 = vector.load %arg7[%c0_93, %c0_94] : memref<1x16xf32, #tpu.memory_space<vmem>>, vector<1x16xf32>
    %124 = vector.broadcast %123 : vector<1x16xf32> to vector<16x16xf32>
    %125 = arith.addf %122, %124 : vector<16x16xf32>
    %cst_95 = arith.constant 0.000000e+00 : f32
    %126 = vector.broadcast %cst_95 : f32 to vector<16x16xf32>
    %127 = arith.maximumf %125, %126 : vector<16x16xf32>
    %c2_96 = arith.constant 2 : index
    %c0_97 = arith.constant 0 : index
    %128 = vector.load %arg37[%c2_96, %c0_97] : memref<20x16xf32, #tpu.memory_space<vmem>>, vector<16x16xf32>
    tpu.vector_store %arg37[%c2_96, %c0_97], %127 {strides = array<i32>} : memref<20x16xf32, #tpu.memory_space<vmem>>, vector<16x16xf32>,
    %c2_98 = arith.constant 2 : index
    %c0_99 = arith.constant 0 : index
    %129 = vector.load %arg36[%c2_98, %c0_99] : memref<20x16xf32, #tpu.memory_space<vmem>>, vector<16x16xf32>
    %c0_100 = arith.constant 0 : index
    %c0_101 = arith.constant 0 : index
    %130 = vector.load %arg8[%c0_100, %c0_101] : memref<80x16xbf16, #tpu.memory_space<vmem>>, vector<80x16xbf16>
    %cst_102 = arith.constant 0.000000e+00 : f32
    %131 = vector.broadcast %cst_102 : f32 to vector<16x16xf32>
    %c0_103 = arith.constant 0 : index
    %c0_104 = arith.constant 0 : index
    %132 = vector.load %arg37[%c0_103, %c0_104] : memref<20x16xf32, #tpu.memory_space<vmem>>, vector<16x16xf32>
    %133 = arith.truncf %132 : vector<16x16xf32> to vector<16x16xbf16>
    %134 = vector.extract_strided_slice %130 {offsets = [0, 0], sizes = [16, 16], strides = [1, 1]} : vector<80x16xbf16> to vector<16x16xbf16>
    %cst_105 = arith.constant dense<0.000000e+00> : vector<16x16xf32>
    %135 = tpu.matmul %133, %134, %cst_105 {dimension_numbers = #tpu.dot_dimension_numbers<[1], [0], [0], [1], [0, 0, 1, 1], [], []>} : vector<16x16xbf16>, vector<16x16xbf16>, vector<16x16xf32> -> vector<16x16xf32>
    %136 = arith.addf %131, %135 : vector<16x16xf32>
    %c1_106 = arith.constant 1 : index
    %c0_107 = arith.constant 0 : index
    %137 = vector.load %arg37[%c1_106, %c0_107] : memref<20x16xf32, #tpu.memory_space<vmem>>, vector<16x16xf32>
    %138 = arith.truncf %137 : vector<16x16xf32> to vector<16x16xbf16>
    %139 = vector.extract_strided_slice %130 {offsets = [16, 0], sizes = [16, 16], strides = [1, 1]} : vector<80x16xbf16> to vector<16x16xbf16>
    %cst_108 = arith.constant dense<0.000000e+00> : vector<16x16xf32>
    %140 = tpu.matmul %138, %139, %cst_108 {dimension_numbers = #tpu.dot_dimension_numbers<[1], [0], [0], [1], [0, 0, 1, 1], [], []>} : vector<16x16xbf16>, vector<16x16xbf16>, vector<16x16xf32> -> vector<16x16xf32>
    %141 = arith.addf %136, %140 : vector<16x16xf32>
    %c2_109 = arith.constant 2 : index
    %c0_110 = arith.constant 0 : index
    %142 = vector.load %arg37[%c2_109, %c0_110] : memref<20x16xf32, #tpu.memory_space<vmem>>, vector<16x16xf32>
    %143 = arith.truncf %142 : vector<16x16xf32> to vector<16x16xbf16>
    %144 = vector.extract_strided_slice %130 {offsets = [32, 0], sizes = [16, 16], strides = [1, 1]} : vector<80x16xbf16> to vector<16x16xbf16>
    %cst_111 = arith.constant dense<0.000000e+00> : vector<16x16xf32>
    %145 = tpu.matmul %143, %144, %cst_111 {dimension_numbers = #tpu.dot_dimension_numbers<[1], [0], [0], [1], [0, 0, 1, 1], [], []>} : vector<16x16xbf16>, vector<16x16xbf16>, vector<16x16xf32> -> vector<16x16xf32>
    %146 = arith.addf %141, %145 : vector<16x16xf32>
    %c3_112 = arith.constant 3 : index
    %c0_113 = arith.constant 0 : index
    %147 = vector.load %arg37[%c3_112, %c0_113] : memref<20x16xf32, #tpu.memory_space<vmem>>, vector<16x16xf32>
    %148 = arith.truncf %147 : vector<16x16xf32> to vector<16x16xbf16>
    %149 = vector.extract_strided_slice %130 {offsets = [48, 0], sizes = [16, 16], strides = [1, 1]} : vector<80x16xbf16> to vector<16x16xbf16>
    %cst_114 = arith.constant dense<0.000000e+00> : vector<16x16xf32>
    %150 = tpu.matmul %148, %149, %cst_114 {dimension_numbers = #tpu.dot_dimension_numbers<[1], [0], [0], [1], [0, 0, 1, 1], [], []>} : vector<16x16xbf16>, vector<16x16xbf16>, vector<16x16xf32> -> vector<16x16xf32>
    %151 = arith.addf %146, %150 : vector<16x16xf32>
    %c4_115 = arith.constant 4 : index
    %c0_116 = arith.constant 0 : index
    %152 = vector.load %arg37[%c4_115, %c0_116] : memref<20x16xf32, #tpu.memory_space<vmem>>, vector<16x16xf32>
    %153 = arith.truncf %152 : vector<16x16xf32> to vector<16x16xbf16>
    %154 = vector.extract_strided_slice %130 {offsets = [64, 0], sizes = [16, 16], strides = [1, 1]} : vector<80x16xbf16> to vector<16x16xbf16>
    %cst_117 = arith.constant dense<0.000000e+00> : vector<16x16xf32>
    %155 = tpu.matmul %153, %154, %cst_117 {dimension_numbers = #tpu.dot_dimension_numbers<[1], [0], [0], [1], [0, 0, 1, 1], [], []>} : vector<16x16xbf16>, vector<16x16xbf16>, vector<16x16xf32> -> vector<16x16xf32>
    %156 = arith.addf %151, %155 : vector<16x16xf32>
    %c0_118 = arith.constant 0 : index
    %c0_119 = arith.constant 0 : index
    %157 = vector.load %arg9[%c0_118, %c0_119] : memref<1x16xf32, #tpu.memory_space<vmem>>, vector<1x16xf32>
    %158 = vector.broadcast %157 : vector<1x16xf32> to vector<16x16xf32>
    %159 = arith.addf %156, %158 : vector<16x16xf32>
    %160 = arith.addf %159, %129 : vector<16x16xf32>
    %cst_120 = arith.constant 0.000000e+00 : f32
    %161 = vector.broadcast %cst_120 : f32 to vector<16x16xf32>
    %162 = arith.maximumf %160, %161 : vector<16x16xf32>
    %c2_121 = arith.constant 2 : index
    %c0_122 = arith.constant 0 : index
    %163 = vector.load %arg36[%c2_121, %c0_122] : memref<20x16xf32, #tpu.memory_space<vmem>>, vector<16x16xf32>
    tpu.vector_store %arg36[%c2_121, %c0_122], %162 {strides = array<i32>} : memref<20x16xf32, #tpu.memory_space<vmem>>, vector<16x16xf32>,
    %c0_123 = arith.constant 0 : index
    %c0_124 = arith.constant 0 : index
    %164 = vector.load %arg10[%c0_123, %c0_124] : memref<80x32xbf16, #tpu.memory_space<vmem>>, vector<80x32xbf16>
    %cst_125 = arith.constant 0.000000e+00 : f32
    %165 = vector.broadcast %cst_125 : f32 to vector<16x32xf32>
    %c0_126 = arith.constant 0 : index
    %c0_127 = arith.constant 0 : index
    %166 = vector.load %arg36[%c0_126, %c0_127] : memref<20x16xf32, #tpu.memory_space<vmem>>, vector<16x16xf32>
    %167 = arith.truncf %166 : vector<16x16xf32> to vector<16x16xbf16>
    %168 = vector.extract_strided_slice %164 {offsets = [0, 0], sizes = [16, 32], strides = [1, 1]} : vector<80x32xbf16> to vector<16x32xbf16>
    %cst_128 = arith.constant dense<0.000000e+00> : vector<16x32xf32>
    %169 = tpu.matmul %167, %168, %cst_128 {dimension_numbers = #tpu.dot_dimension_numbers<[1], [0], [0], [1], [0, 0, 1, 1], [], []>} : vector<16x16xbf16>, vector<16x32xbf16>, vector<16x32xf32> -> vector<16x32xf32>
    %170 = arith.addf %165, %169 : vector<16x32xf32>
    %c1_129 = arith.constant 1 : index
    %c0_130 = arith.constant 0 : index
    %171 = vector.load %arg36[%c1_129, %c0_130] : memref<20x16xf32, #tpu.memory_space<vmem>>, vector<16x16xf32>
    %172 = arith.truncf %171 : vector<16x16xf32> to vector<16x16xbf16>
    %173 = vector.extract_strided_slice %164 {offsets = [16, 0], sizes = [16, 32], strides = [1, 1]} : vector<80x32xbf16> to vector<16x32xbf16>
    %cst_131 = arith.constant dense<0.000000e+00> : vector<16x32xf32>
    %174 = tpu.matmul %172, %173, %cst_131 {dimension_numbers = #tpu.dot_dimension_numbers<[1], [0], [0], [1], [0, 0, 1, 1], [], []>} : vector<16x16xbf16>, vector<16x32xbf16>, vector<16x32xf32> -> vector<16x32xf32>
    %175 = arith.addf %170, %174 : vector<16x32xf32>
    %c2_132 = arith.constant 2 : index
    %c0_133 = arith.constant 0 : index
    %176 = vector.load %arg36[%c2_132, %c0_133] : memref<20x16xf32, #tpu.memory_space<vmem>>, vector<16x16xf32>
    %177 = arith.truncf %176 : vector<16x16xf32> to vector<16x16xbf16>
    %178 = vector.extract_strided_slice %164 {offsets = [32, 0], sizes = [16, 32], strides = [1, 1]} : vector<80x32xbf16> to vector<16x32xbf16>
    %cst_134 = arith.constant dense<0.000000e+00> : vector<16x32xf32>
    %179 = tpu.matmul %177, %178, %cst_134 {dimension_numbers = #tpu.dot_dimension_numbers<[1], [0], [0], [1], [0, 0, 1, 1], [], []>} : vector<16x16xbf16>, vector<16x32xbf16>, vector<16x32xf32> -> vector<16x32xf32>
    %180 = arith.addf %175, %179 : vector<16x32xf32>
    %c3_135 = arith.constant 3 : index
    %c0_136 = arith.constant 0 : index
    %181 = vector.load %arg36[%c3_135, %c0_136] : memref<20x16xf32, #tpu.memory_space<vmem>>, vector<16x16xf32>
    %182 = arith.truncf %181 : vector<16x16xf32> to vector<16x16xbf16>
    %183 = vector.extract_strided_slice %164 {offsets = [48, 0], sizes = [16, 32], strides = [1, 1]} : vector<80x32xbf16> to vector<16x32xbf16>
    %cst_137 = arith.constant dense<0.000000e+00> : vector<16x32xf32>
    %184 = tpu.matmul %182, %183, %cst_137 {dimension_numbers = #tpu.dot_dimension_numbers<[1], [0], [0], [1], [0, 0, 1, 1], [], []>} : vector<16x16xbf16>, vector<16x32xbf16>, vector<16x32xf32> -> vector<16x32xf32>
    %185 = arith.addf %180, %184 : vector<16x32xf32>
    %c4_138 = arith.constant 4 : index
    %c0_139 = arith.constant 0 : index
    %186 = vector.load %arg36[%c4_138, %c0_139] : memref<20x16xf32, #tpu.memory_space<vmem>>, vector<16x16xf32>
    %187 = arith.truncf %186 : vector<16x16xf32> to vector<16x16xbf16>
    %188 = vector.extract_strided_slice %164 {offsets = [64, 0], sizes = [16, 32], strides = [1, 1]} : vector<80x32xbf16> to vector<16x32xbf16>
    %cst_140 = arith.constant dense<0.000000e+00> : vector<16x32xf32>
    %189 = tpu.matmul %187, %188, %cst_140 {dimension_numbers = #tpu.dot_dimension_numbers<[1], [0], [0], [1], [0, 0, 1, 1], [], []>} : vector<16x16xbf16>, vector<16x32xbf16>, vector<16x32xf32> -> vector<16x32xf32>
    %190 = arith.addf %185, %189 : vector<16x32xf32>
    %c0_141 = arith.constant 0 : index
    %c0_142 = arith.constant 0 : index
    %191 = vector.load %arg11[%c0_141, %c0_142] : memref<1x32xf32, #tpu.memory_space<vmem>>, vector<1x32xf32>
    %192 = vector.broadcast %191 : vector<1x32xf32> to vector<16x32xf32>
    %193 = arith.addf %190, %192 : vector<16x32xf32>
    %cst_143 = arith.constant 0.000000e+00 : f32
    %194 = vector.broadcast %cst_143 : f32 to vector<16x32xf32>
    %195 = arith.maximumf %193, %194 : vector<16x32xf32>
    %196 = vector.extract_strided_slice %195 {offsets = [0, 0], sizes = [1, 32], strides = [1, 1]} : vector<16x32xf32> to vector<1x32xf32>
    %197 = vector.extract_strided_slice %195 {offsets = [1, 0], sizes = [1, 32], strides = [1, 1]} : vector<16x32xf32> to vector<1x32xf32>
    %198 = arith.maximumf %196, %197 : vector<1x32xf32>
    %c2_144 = arith.constant 2 : index
    %c0_145 = arith.constant 0 : index
    %199 = vector.load %arg38[%c2_144, %c0_145] : memref<12x32xf32, #tpu.memory_space<vmem>>, vector<1x32xf32>
    tpu.vector_store %arg38[%c2_144, %c0_145], %198 {strides = array<i32>} : memref<12x32xf32, #tpu.memory_space<vmem>>, vector<1x32xf32>,
    %200 = vector.extract_strided_slice %195 {offsets = [2, 0], sizes = [1, 32], strides = [1, 1]} : vector<16x32xf32> to vector<1x32xf32>
    %201 = vector.extract_strided_slice %195 {offsets = [3, 0], sizes = [1, 32], strides = [1, 1]} : vector<16x32xf32> to vector<1x32xf32>
    %202 = arith.maximumf %200, %201 : vector<1x32xf32>
    %c3_146 = arith.constant 3 : index
    %c0_147 = arith.constant 0 : index
    %203 = vector.load %arg38[%c3_146, %c0_147] : memref<12x32xf32, #tpu.memory_space<vmem>>, vector<1x32xf32>
    tpu.vector_store %arg38[%c3_146, %c0_147], %202 {strides = array<i32>} : memref<12x32xf32, #tpu.memory_space<vmem>>, vector<1x32xf32>,
    %204 = vector.extract_strided_slice %195 {offsets = [4, 0], sizes = [1, 32], strides = [1, 1]} : vector<16x32xf32> to vector<1x32xf32>
    %205 = vector.extract_strided_slice %195 {offsets = [5, 0], sizes = [1, 32], strides = [1, 1]} : vector<16x32xf32> to vector<1x32xf32>
    %206 = arith.maximumf %204, %205 : vector<1x32xf32>
    %c4_148 = arith.constant 4 : index
    %c0_149 = arith.constant 0 : index
    %207 = vector.load %arg38[%c4_148, %c0_149] : memref<12x32xf32, #tpu.memory_space<vmem>>, vector<1x32xf32>
    tpu.vector_store %arg38[%c4_148, %c0_149], %206 {strides = array<i32>} : memref<12x32xf32, #tpu.memory_space<vmem>>, vector<1x32xf32>,
    %208 = vector.extract_strided_slice %195 {offsets = [6, 0], sizes = [1, 32], strides = [1, 1]} : vector<16x32xf32> to vector<1x32xf32>
    %209 = vector.extract_strided_slice %195 {offsets = [7, 0], sizes = [1, 32], strides = [1, 1]} : vector<16x32xf32> to vector<1x32xf32>
    %210 = arith.maximumf %208, %209 : vector<1x32xf32>
    %c5 = arith.constant 5 : index
    %c0_150 = arith.constant 0 : index
    %211 = vector.load %arg38[%c5, %c0_150] : memref<12x32xf32, #tpu.memory_space<vmem>>, vector<1x32xf32>
    tpu.vector_store %arg38[%c5, %c0_150], %210 {strides = array<i32>} : memref<12x32xf32, #tpu.memory_space<vmem>>, vector<1x32xf32>,
    %212 = vector.extract_strided_slice %195 {offsets = [8, 0], sizes = [1, 32], strides = [1, 1]} : vector<16x32xf32> to vector<1x32xf32>
    %213 = vector.extract_strided_slice %195 {offsets = [9, 0], sizes = [1, 32], strides = [1, 1]} : vector<16x32xf32> to vector<1x32xf32>
    %214 = arith.maximumf %212, %213 : vector<1x32xf32>
    %c6 = arith.constant 6 : index
    %c0_151 = arith.constant 0 : index
    %215 = vector.load %arg38[%c6, %c0_151] : memref<12x32xf32, #tpu.memory_space<vmem>>, vector<1x32xf32>
    tpu.vector_store %arg38[%c6, %c0_151], %214 {strides = array<i32>} : memref<12x32xf32, #tpu.memory_space<vmem>>, vector<1x32xf32>,
    %216 = vector.extract_strided_slice %195 {offsets = [10, 0], sizes = [1, 32], strides = [1, 1]} : vector<16x32xf32> to vector<1x32xf32>
    %217 = vector.extract_strided_slice %195 {offsets = [11, 0], sizes = [1, 32], strides = [1, 1]} : vector<16x32xf32> to vector<1x32xf32>
    %218 = arith.maximumf %216, %217 : vector<1x32xf32>
    %c7 = arith.constant 7 : index
    %c0_152 = arith.constant 0 : index
    %219 = vector.load %arg38[%c7, %c0_152] : memref<12x32xf32, #tpu.memory_space<vmem>>, vector<1x32xf32>
    tpu.vector_store %arg38[%c7, %c0_152], %218 {strides = array<i32>} : memref<12x32xf32, #tpu.memory_space<vmem>>, vector<1x32xf32>,
    %220 = vector.extract_strided_slice %195 {offsets = [12, 0], sizes = [1, 32], strides = [1, 1]} : vector<16x32xf32> to vector<1x32xf32>
    %221 = vector.extract_strided_slice %195 {offsets = [13, 0], sizes = [1, 32], strides = [1, 1]} : vector<16x32xf32> to vector<1x32xf32>
    %222 = arith.maximumf %220, %221 : vector<1x32xf32>
    %c8 = arith.constant 8 : index
    %c0_153 = arith.constant 0 : index
    %223 = vector.load %arg38[%c8, %c0_153] : memref<12x32xf32, #tpu.memory_space<vmem>>, vector<1x32xf32>
    tpu.vector_store %arg38[%c8, %c0_153], %222 {strides = array<i32>} : memref<12x32xf32, #tpu.memory_space<vmem>>, vector<1x32xf32>,
    %224 = vector.extract_strided_slice %195 {offsets = [14, 0], sizes = [1, 32], strides = [1, 1]} : vector<16x32xf32> to vector<1x32xf32>
    %225 = vector.extract_strided_slice %195 {offsets = [15, 0], sizes = [1, 32], strides = [1, 1]} : vector<16x32xf32> to vector<1x32xf32>
    %226 = arith.maximumf %224, %225 : vector<1x32xf32>
    %c9 = arith.constant 9 : index
    %c0_154 = arith.constant 0 : index
    %227 = vector.load %arg38[%c9, %c0_154] : memref<12x32xf32, #tpu.memory_space<vmem>>, vector<1x32xf32>
    tpu.vector_store %arg38[%c9, %c0_154], %226 {strides = array<i32>} : memref<12x32xf32, #tpu.memory_space<vmem>>, vector<1x32xf32>,
    %c0_155 = arith.constant 0 : index
    %c0_156 = arith.constant 0 : index
    %228 = vector.load %arg12[%c0_155, %c0_156] : memref<160x32xbf16, #tpu.memory_space<vmem>>, vector<160x32xbf16>
    %cst_157 = arith.constant 0.000000e+00 : f32
    %229 = vector.broadcast %cst_157 : f32 to vector<8x32xf32>
    %c0_158 = arith.constant 0 : index
    %c0_159 = arith.constant 0 : index
    %230 = vector.load %arg38[%c0_158, %c0_159] : memref<12x32xf32, #tpu.memory_space<vmem>>, vector<8x32xf32>
    %231 = arith.truncf %230 : vector<8x32xf32> to vector<8x32xbf16>
    %232 = vector.extract_strided_slice %228 {offsets = [0, 0], sizes = [32, 32], strides = [1, 1]} : vector<160x32xbf16> to vector<32x32xbf16>
    %cst_160 = arith.constant dense<0.000000e+00> : vector<8x32xf32>
    %233 = tpu.matmul %231, %232, %cst_160 {dimension_numbers = #tpu.dot_dimension_numbers<[1], [0], [0], [1], [0, 0, 1, 1], [], []>} : vector<8x32xbf16>, vector<32x32xbf16>, vector<8x32xf32> -> vector<8x32xf32>
    %234 = arith.addf %229, %233 : vector<8x32xf32>
    %c1_161 = arith.constant 1 : index
    %c0_162 = arith.constant 0 : index
    %235 = vector.load %arg38[%c1_161, %c0_162] : memref<12x32xf32, #tpu.memory_space<vmem>>, vector<8x32xf32>
    %236 = arith.truncf %235 : vector<8x32xf32> to vector<8x32xbf16>
    %237 = vector.extract_strided_slice %228 {offsets = [32, 0], sizes = [32, 32], strides = [1, 1]} : vector<160x32xbf16> to vector<32x32xbf16>
    %cst_163 = arith.constant dense<0.000000e+00> : vector<8x32xf32>
    %238 = tpu.matmul %236, %237, %cst_163 {dimension_numbers = #tpu.dot_dimension_numbers<[1], [0], [0], [1], [0, 0, 1, 1], [], []>} : vector<8x32xbf16>, vector<32x32xbf16>, vector<8x32xf32> -> vector<8x32xf32>
    %239 = arith.addf %234, %238 : vector<8x32xf32>
    %c2_164 = arith.constant 2 : index
    %c0_165 = arith.constant 0 : index
    %240 = vector.load %arg38[%c2_164, %c0_165] : memref<12x32xf32, #tpu.memory_space<vmem>>, vector<8x32xf32>
    %241 = arith.truncf %240 : vector<8x32xf32> to vector<8x32xbf16>
    %242 = vector.extract_strided_slice %228 {offsets = [64, 0], sizes = [32, 32], strides = [1, 1]} : vector<160x32xbf16> to vector<32x32xbf16>
    %cst_166 = arith.constant dense<0.000000e+00> : vector<8x32xf32>
    %243 = tpu.matmul %241, %242, %cst_166 {dimension_numbers = #tpu.dot_dimension_numbers<[1], [0], [0], [1], [0, 0, 1, 1], [], []>} : vector<8x32xbf16>, vector<32x32xbf16>, vector<8x32xf32> -> vector<8x32xf32>
    %244 = arith.addf %239, %243 : vector<8x32xf32>
    %c3_167 = arith.constant 3 : index
    %c0_168 = arith.constant 0 : index
    %245 = vector.load %arg38[%c3_167, %c0_168] : memref<12x32xf32, #tpu.memory_space<vmem>>, vector<8x32xf32>
    %246 = arith.truncf %245 : vector<8x32xf32> to vector<8x32xbf16>
    %247 = vector.extract_strided_slice %228 {offsets = [96, 0], sizes = [32, 32], strides = [1, 1]} : vector<160x32xbf16> to vector<32x32xbf16>
    %cst_169 = arith.constant dense<0.000000e+00> : vector<8x32xf32>
    %248 = tpu.matmul %246, %247, %cst_169 {dimension_numbers = #tpu.dot_dimension_numbers<[1], [0], [0], [1], [0, 0, 1, 1], [], []>} : vector<8x32xbf16>, vector<32x32xbf16>, vector<8x32xf32> -> vector<8x32xf32>
    %249 = arith.addf %244, %248 : vector<8x32xf32>
    %c4_170 = arith.constant 4 : index
    %c0_171 = arith.constant 0 : index
    %250 = vector.load %arg38[%c4_170, %c0_171] : memref<12x32xf32, #tpu.memory_space<vmem>>, vector<8x32xf32>
    %251 = arith.truncf %250 : vector<8x32xf32> to vector<8x32xbf16>
    %252 = vector.extract_strided_slice %228 {offsets = [128, 0], sizes = [32, 32], strides = [1, 1]} : vector<160x32xbf16> to vector<32x32xbf16>
    %cst_172 = arith.constant dense<0.000000e+00> : vector<8x32xf32>
    %253 = tpu.matmul %251, %252, %cst_172 {dimension_numbers = #tpu.dot_dimension_numbers<[1], [0], [0], [1], [0, 0, 1, 1], [], []>} : vector<8x32xbf16>, vector<32x32xbf16>, vector<8x32xf32> -> vector<8x32xf32>
    %254 = arith.addf %249, %253 : vector<8x32xf32>
    %c0_173 = arith.constant 0 : index
    %c0_174 = arith.constant 0 : index
    %255 = vector.load %arg13[%c0_173, %c0_174] : memref<1x32xf32, #tpu.memory_space<vmem>>, vector<1x32xf32>
    %256 = vector.broadcast %255 : vector<1x32xf32> to vector<8x32xf32>
    %257 = arith.addf %254, %256 : vector<8x32xf32>
    %cst_175 = arith.constant 0.000000e+00 : f32
    %258 = vector.broadcast %cst_175 : f32 to vector<8x32xf32>
    %259 = arith.maximumf %257, %258 : vector<8x32xf32>
    %c2_176 = arith.constant 2 : index
    %c0_177 = arith.constant 0 : index
    %260 = vector.load %arg39[%c2_176, %c0_177] : memref<12x32xf32, #tpu.memory_space<vmem>>, vector<8x32xf32>
    tpu.vector_store %arg39[%c2_176, %c0_177], %259 {strides = array<i32>} : memref<12x32xf32, #tpu.memory_space<vmem>>, vector<8x32xf32>,
    %c2_178 = arith.constant 2 : index
    %c0_179 = arith.constant 0 : index
    %261 = vector.load %arg38[%c2_178, %c0_179] : memref<12x32xf32, #tpu.memory_space<vmem>>, vector<8x32xf32>
    %c0_180 = arith.constant 0 : index
    %c0_181 = arith.constant 0 : index
    %262 = vector.load %arg14[%c0_180, %c0_181] : memref<160x32xbf16, #tpu.memory_space<vmem>>, vector<160x32xbf16>
    %cst_182 = arith.constant 0.000000e+00 : f32
    %263 = vector.broadcast %cst_182 : f32 to vector<8x32xf32>
    %c0_183 = arith.constant 0 : index
    %c0_184 = arith.constant 0 : index
    %264 = vector.load %arg39[%c0_183, %c0_184] : memref<12x32xf32, #tpu.memory_space<vmem>>, vector<8x32xf32>
    %265 = arith.truncf %264 : vector<8x32xf32> to vector<8x32xbf16>
    %266 = vector.extract_strided_slice %262 {offsets = [0, 0], sizes = [32, 32], strides = [1, 1]} : vector<160x32xbf16> to vector<32x32xbf16>
    %cst_185 = arith.constant dense<0.000000e+00> : vector<8x32xf32>
    %267 = tpu.matmul %265, %266, %cst_185 {dimension_numbers = #tpu.dot_dimension_numbers<[1], [0], [0], [1], [0, 0, 1, 1], [], []>} : vector<8x32xbf16>, vector<32x32xbf16>, vector<8x32xf32> -> vector<8x32xf32>
    %268 = arith.addf %263, %267 : vector<8x32xf32>
    %c1_186 = arith.constant 1 : index
    %c0_187 = arith.constant 0 : index
    %269 = vector.load %arg39[%c1_186, %c0_187] : memref<12x32xf32, #tpu.memory_space<vmem>>, vector<8x32xf32>
    %270 = arith.truncf %269 : vector<8x32xf32> to vector<8x32xbf16>
    %271 = vector.extract_strided_slice %262 {offsets = [32, 0], sizes = [32, 32], strides = [1, 1]} : vector<160x32xbf16> to vector<32x32xbf16>
    %cst_188 = arith.constant dense<0.000000e+00> : vector<8x32xf32>
    %272 = tpu.matmul %270, %271, %cst_188 {dimension_numbers = #tpu.dot_dimension_numbers<[1], [0], [0], [1], [0, 0, 1, 1], [], []>} : vector<8x32xbf16>, vector<32x32xbf16>, vector<8x32xf32> -> vector<8x32xf32>
    %273 = arith.addf %268, %272 : vector<8x32xf32>
    %c2_189 = arith.constant 2 : index
    %c0_190 = arith.constant 0 : index
    %274 = vector.load %arg39[%c2_189, %c0_190] : memref<12x32xf32, #tpu.memory_space<vmem>>, vector<8x32xf32>
    %275 = arith.truncf %274 : vector<8x32xf32> to vector<8x32xbf16>
    %276 = vector.extract_strided_slice %262 {offsets = [64, 0], sizes = [32, 32], strides = [1, 1]} : vector<160x32xbf16> to vector<32x32xbf16>
    %cst_191 = arith.constant dense<0.000000e+00> : vector<8x32xf32>
    %277 = tpu.matmul %275, %276, %cst_191 {dimension_numbers = #tpu.dot_dimension_numbers<[1], [0], [0], [1], [0, 0, 1, 1], [], []>} : vector<8x32xbf16>, vector<32x32xbf16>, vector<8x32xf32> -> vector<8x32xf32>
    %278 = arith.addf %273, %277 : vector<8x32xf32>
    %c3_192 = arith.constant 3 : index
    %c0_193 = arith.constant 0 : index
    %279 = vector.load %arg39[%c3_192, %c0_193] : memref<12x32xf32, #tpu.memory_space<vmem>>, vector<8x32xf32>
    %280 = arith.truncf %279 : vector<8x32xf32> to vector<8x32xbf16>
    %281 = vector.extract_strided_slice %262 {offsets = [96, 0], sizes = [32, 32], strides = [1, 1]} : vector<160x32xbf16> to vector<32x32xbf16>
    %cst_194 = arith.constant dense<0.000000e+00> : vector<8x32xf32>
    %282 = tpu.matmul %280, %281, %cst_194 {dimension_numbers = #tpu.dot_dimension_numbers<[1], [0], [0], [1], [0, 0, 1, 1], [], []>} : vector<8x32xbf16>, vector<32x32xbf16>, vector<8x32xf32> -> vector<8x32xf32>
    %283 = arith.addf %278, %282 : vector<8x32xf32>
    %c4_195 = arith.constant 4 : index
    %c0_196 = arith.constant 0 : index
    %284 = vector.load %arg39[%c4_195, %c0_196] : memref<12x32xf32, #tpu.memory_space<vmem>>, vector<8x32xf32>
    %285 = arith.truncf %284 : vector<8x32xf32> to vector<8x32xbf16>
    %286 = vector.extract_strided_slice %262 {offsets = [128, 0], sizes = [32, 32], strides = [1, 1]} : vector<160x32xbf16> to vector<32x32xbf16>
    %cst_197 = arith.constant dense<0.000000e+00> : vector<8x32xf32>
    %287 = tpu.matmul %285, %286, %cst_197 {dimension_numbers = #tpu.dot_dimension_numbers<[1], [0], [0], [1], [0, 0, 1, 1], [], []>} : vector<8x32xbf16>, vector<32x32xbf16>, vector<8x32xf32> -> vector<8x32xf32>
    %288 = arith.addf %283, %287 : vector<8x32xf32>
    %c0_198 = arith.constant 0 : index
    %c0_199 = arith.constant 0 : index
    %289 = vector.load %arg15[%c0_198, %c0_199] : memref<1x32xf32, #tpu.memory_space<vmem>>, vector<1x32xf32>
    %290 = vector.broadcast %289 : vector<1x32xf32> to vector<8x32xf32>
    %291 = arith.addf %288, %290 : vector<8x32xf32>
    %292 = arith.addf %291, %261 : vector<8x32xf32>
    %cst_200 = arith.constant 0.000000e+00 : f32
    %293 = vector.broadcast %cst_200 : f32 to vector<8x32xf32>
    %294 = arith.maximumf %292, %293 : vector<8x32xf32>
    %c2_201 = arith.constant 2 : index
    %c0_202 = arith.constant 0 : index
    %295 = vector.load %arg38[%c2_201, %c0_202] : memref<12x32xf32, #tpu.memory_space<vmem>>, vector<8x32xf32>
    tpu.vector_store %arg38[%c2_201, %c0_202], %294 {strides = array<i32>} : memref<12x32xf32, #tpu.memory_space<vmem>>, vector<8x32xf32>,
    %c0_203 = arith.constant 0 : index
    %c0_204 = arith.constant 0 : index
    %296 = vector.load %arg12[%c0_203, %c0_204] : memref<160x32xbf16, #tpu.memory_space<vmem>>, vector<160x32xbf16>
    %cst_205 = arith.constant 0.000000e+00 : f32
    %297 = vector.broadcast %cst_205 : f32 to vector<8x32xf32>
    %c0_206 = arith.constant 0 : index
    %c0_207 = arith.constant 0 : index
    %298 = vector.load %arg38[%c0_206, %c0_207] : memref<12x32xf32, #tpu.memory_space<vmem>>, vector<8x32xf32>
    %299 = arith.truncf %298 : vector<8x32xf32> to vector<8x32xbf16>
    %300 = vector.extract_strided_slice %296 {offsets = [0, 0], sizes = [32, 32], strides = [1, 1]} : vector<160x32xbf16> to vector<32x32xbf16>
    %cst_208 = arith.constant dense<0.000000e+00> : vector<8x32xf32>
    %301 = tpu.matmul %299, %300, %cst_208 {dimension_numbers = #tpu.dot_dimension_numbers<[1], [0], [0], [1], [0, 0, 1, 1], [], []>} : vector<8x32xbf16>, vector<32x32xbf16>, vector<8x32xf32> -> vector<8x32xf32>
    %302 = arith.addf %297, %301 : vector<8x32xf32>
    %c1_209 = arith.constant 1 : index
    %c0_210 = arith.constant 0 : index
    %303 = vector.load %arg38[%c1_209, %c0_210] : memref<12x32xf32, #tpu.memory_space<vmem>>, vector<8x32xf32>
    %304 = arith.truncf %303 : vector<8x32xf32> to vector<8x32xbf16>
    %305 = vector.extract_strided_slice %296 {offsets = [32, 0], sizes = [32, 32], strides = [1, 1]} : vector<160x32xbf16> to vector<32x32xbf16>
    %cst_211 = arith.constant dense<0.000000e+00> : vector<8x32xf32>
    %306 = tpu.matmul %304, %305, %cst_211 {dimension_numbers = #tpu.dot_dimension_numbers<[1], [0], [0], [1], [0, 0, 1, 1], [], []>} : vector<8x32xbf16>, vector<32x32xbf16>, vector<8x32xf32> -> vector<8x32xf32>
    %307 = arith.addf %302, %306 : vector<8x32xf32>
    %c2_212 = arith.constant 2 : index
    %c0_213 = arith.constant 0 : index
    %308 = vector.load %arg38[%c2_212, %c0_213] : memref<12x32xf32, #tpu.memory_space<vmem>>, vector<8x32xf32>
    %309 = arith.truncf %308 : vector<8x32xf32> to vector<8x32xbf16>
    %310 = vector.extract_strided_slice %296 {offsets = [64, 0], sizes = [32, 32], strides = [1, 1]} : vector<160x32xbf16> to vector<32x32xbf16>
    %cst_214 = arith.constant dense<0.000000e+00> : vector<8x32xf32>
    %311 = tpu.matmul %309, %310, %cst_214 {dimension_numbers = #tpu.dot_dimension_numbers<[1], [0], [0], [1], [0, 0, 1, 1], [], []>} : vector<8x32xbf16>, vector<32x32xbf16>, vector<8x32xf32> -> vector<8x32xf32>
    %312 = arith.addf %307, %311 : vector<8x32xf32>
    %c3_215 = arith.constant 3 : index
    %c0_216 = arith.constant 0 : index
    %313 = vector.load %arg38[%c3_215, %c0_216] : memref<12x32xf32, #tpu.memory_space<vmem>>, vector<8x32xf32>
    %314 = arith.truncf %313 : vector<8x32xf32> to vector<8x32xbf16>
    %315 = vector.extract_strided_slice %296 {offsets = [96, 0], sizes = [32, 32], strides = [1, 1]} : vector<160x32xbf16> to vector<32x32xbf16>
    %cst_217 = arith.constant dense<0.000000e+00> : vector<8x32xf32>
    %316 = tpu.matmul %314, %315, %cst_217 {dimension_numbers = #tpu.dot_dimension_numbers<[1], [0], [0], [1], [0, 0, 1, 1], [], []>} : vector<8x32xbf16>, vector<32x32xbf16>, vector<8x32xf32> -> vector<8x32xf32>
    %317 = arith.addf %312, %316 : vector<8x32xf32>
    %c4_218 = arith.constant 4 : index
    %c0_219 = arith.constant 0 : index
    %318 = vector.load %arg38[%c4_218, %c0_219] : memref<12x32xf32, #tpu.memory_space<vmem>>, vector<8x32xf32>
    %319 = arith.truncf %318 : vector<8x32xf32> to vector<8x32xbf16>
    %320 = vector.extract_strided_slice %296 {offsets = [128, 0], sizes = [32, 32], strides = [1, 1]} : vector<160x32xbf16> to vector<32x32xbf16>
    %cst_220 = arith.constant dense<0.000000e+00> : vector<8x32xf32>
    %321 = tpu.matmul %319, %320, %cst_220 {dimension_numbers = #tpu.dot_dimension_numbers<[1], [0], [0], [1], [0, 0, 1, 1], [], []>} : vector<8x32xbf16>, vector<32x32xbf16>, vector<8x32xf32> -> vector<8x32xf32>
    %322 = arith.addf %317, %321 : vector<8x32xf32>
    %c0_221 = arith.constant 0 : index
    %c0_222 = arith.constant 0 : index
    %323 = vector.load %arg13[%c0_221, %c0_222] : memref<1x32xf32, #tpu.memory_space<vmem>>, vector<1x32xf32>
    %324 = vector.broadcast %323 : vector<1x32xf32> to vector<8x32xf32>
    %325 = arith.addf %322, %324 : vector<8x32xf32>
    %cst_223 = arith.constant 0.000000e+00 : f32
    %326 = vector.broadcast %cst_223 : f32 to vector<8x32xf32>
    %327 = arith.maximumf %325, %326 : vector<8x32xf32>
    %c2_224 = arith.constant 2 : index
    %c0_225 = arith.constant 0 : index
    %328 = vector.load %arg39[%c2_224, %c0_225] : memref<12x32xf32, #tpu.memory_space<vmem>>, vector<8x32xf32>
    tpu.vector_store %arg39[%c2_224, %c0_225], %327 {strides = array<i32>} : memref<12x32xf32, #tpu.memory_space<vmem>>, vector<8x32xf32>,
    %c2_226 = arith.constant 2 : index
    %c0_227 = arith.constant 0 : index
    %329 = vector.load %arg38[%c2_226, %c0_227] : memref<12x32xf32, #tpu.memory_space<vmem>>, vector<8x32xf32>
    %c0_228 = arith.constant 0 : index
    %c0_229 = arith.constant 0 : index
    %330 = vector.load %arg14[%c0_228, %c0_229] : memref<160x32xbf16, #tpu.memory_space<vmem>>, vector<160x32xbf16>
    %cst_230 = arith.constant 0.000000e+00 : f32
    %331 = vector.broadcast %cst_230 : f32 to vector<8x32xf32>
    %c0_231 = arith.constant 0 : index
    %c0_232 = arith.constant 0 : index
    %332 = vector.load %arg39[%c0_231, %c0_232] : memref<12x32xf32, #tpu.memory_space<vmem>>, vector<8x32xf32>
    %333 = arith.truncf %332 : vector<8x32xf32> to vector<8x32xbf16>
    %334 = vector.extract_strided_slice %330 {offsets = [0, 0], sizes = [32, 32], strides = [1, 1]} : vector<160x32xbf16> to vector<32x32xbf16>
    %cst_233 = arith.constant dense<0.000000e+00> : vector<8x32xf32>
    %335 = tpu.matmul %333, %334, %cst_233 {dimension_numbers = #tpu.dot_dimension_numbers<[1], [0], [0], [1], [0, 0, 1, 1], [], []>} : vector<8x32xbf16>, vector<32x32xbf16>, vector<8x32xf32> -> vector<8x32xf32>
    %336 = arith.addf %331, %335 : vector<8x32xf32>
    %c1_234 = arith.constant 1 : index
    %c0_235 = arith.constant 0 : index
    %337 = vector.load %arg39[%c1_234, %c0_235] : memref<12x32xf32, #tpu.memory_space<vmem>>, vector<8x32xf32>
    %338 = arith.truncf %337 : vector<8x32xf32> to vector<8x32xbf16>
    %339 = vector.extract_strided_slice %330 {offsets = [32, 0], sizes = [32, 32], strides = [1, 1]} : vector<160x32xbf16> to vector<32x32xbf16>
    %cst_236 = arith.constant dense<0.000000e+00> : vector<8x32xf32>
    %340 = tpu.matmul %338, %339, %cst_236 {dimension_numbers = #tpu.dot_dimension_numbers<[1], [0], [0], [1], [0, 0, 1, 1], [], []>} : vector<8x32xbf16>, vector<32x32xbf16>, vector<8x32xf32> -> vector<8x32xf32>
    %341 = arith.addf %336, %340 : vector<8x32xf32>
    %c2_237 = arith.constant 2 : index
    %c0_238 = arith.constant 0 : index
    %342 = vector.load %arg39[%c2_237, %c0_238] : memref<12x32xf32, #tpu.memory_space<vmem>>, vector<8x32xf32>
    %343 = arith.truncf %342 : vector<8x32xf32> to vector<8x32xbf16>
    %344 = vector.extract_strided_slice %330 {offsets = [64, 0], sizes = [32, 32], strides = [1, 1]} : vector<160x32xbf16> to vector<32x32xbf16>
    %cst_239 = arith.constant dense<0.000000e+00> : vector<8x32xf32>
    %345 = tpu.matmul %343, %344, %cst_239 {dimension_numbers = #tpu.dot_dimension_numbers<[1], [0], [0], [1], [0, 0, 1, 1], [], []>} : vector<8x32xbf16>, vector<32x32xbf16>, vector<8x32xf32> -> vector<8x32xf32>
    %346 = arith.addf %341, %345 : vector<8x32xf32>
    %c3_240 = arith.constant 3 : index
    %c0_241 = arith.constant 0 : index
    %347 = vector.load %arg39[%c3_240, %c0_241] : memref<12x32xf32, #tpu.memory_space<vmem>>, vector<8x32xf32>
    %348 = arith.truncf %347 : vector<8x32xf32> to vector<8x32xbf16>
    %349 = vector.extract_strided_slice %330 {offsets = [96, 0], sizes = [32, 32], strides = [1, 1]} : vector<160x32xbf16> to vector<32x32xbf16>
    %cst_242 = arith.constant dense<0.000000e+00> : vector<8x32xf32>
    %350 = tpu.matmul %348, %349, %cst_242 {dimension_numbers = #tpu.dot_dimension_numbers<[1], [0], [0], [1], [0, 0, 1, 1], [], []>} : vector<8x32xbf16>, vector<32x32xbf16>, vector<8x32xf32> -> vector<8x32xf32>
    %351 = arith.addf %346, %350 : vector<8x32xf32>
    %c4_243 = arith.constant 4 : index
    %c0_244 = arith.constant 0 : index
    %352 = vector.load %arg39[%c4_243, %c0_244] : memref<12x32xf32, #tpu.memory_space<vmem>>, vector<8x32xf32>
    %353 = arith.truncf %352 : vector<8x32xf32> to vector<8x32xbf16>
    %354 = vector.extract_strided_slice %330 {offsets = [128, 0], sizes = [32, 32], strides = [1, 1]} : vector<160x32xbf16> to vector<32x32xbf16>
    %cst_245 = arith.constant dense<0.000000e+00> : vector<8x32xf32>
    %355 = tpu.matmul %353, %354, %cst_245 {dimension_numbers = #tpu.dot_dimension_numbers<[1], [0], [0], [1], [0, 0, 1, 1], [], []>} : vector<8x32xbf16>, vector<32x32xbf16>, vector<8x32xf32> -> vector<8x32xf32>
    %356 = arith.addf %351, %355 : vector<8x32xf32>
    %c0_246 = arith.constant 0 : index
    %c0_247 = arith.constant 0 : index
    %357 = vector.load %arg15[%c0_246, %c0_247] : memref<1x32xf32, #tpu.memory_space<vmem>>, vector<1x32xf32>
    %358 = vector.broadcast %357 : vector<1x32xf32> to vector<8x32xf32>
    %359 = arith.addf %356, %358 : vector<8x32xf32>
    %360 = arith.addf %359, %329 : vector<8x32xf32>
    %cst_248 = arith.constant 0.000000e+00 : f32
    %361 = vector.broadcast %cst_248 : f32 to vector<8x32xf32>
    %362 = arith.maximumf %360, %361 : vector<8x32xf32>
    %c2_249 = arith.constant 2 : index
    %c0_250 = arith.constant 0 : index
    %363 = vector.load %arg38[%c2_249, %c0_250] : memref<12x32xf32, #tpu.memory_space<vmem>>, vector<8x32xf32>
    tpu.vector_store %arg38[%c2_249, %c0_250], %362 {strides = array<i32>} : memref<12x32xf32, #tpu.memory_space<vmem>>, vector<8x32xf32>,
    %c0_251 = arith.constant 0 : index
    %c0_252 = arith.constant 0 : index
    %364 = vector.load %arg16[%c0_251, %c0_252] : memref<160x64xbf16, #tpu.memory_space<vmem>>, vector<160x64xbf16>
    %cst_253 = arith.constant 0.000000e+00 : f32
    %365 = vector.broadcast %cst_253 : f32 to vector<8x64xf32>
    %c0_254 = arith.constant 0 : index
    %c0_255 = arith.constant 0 : index
    %366 = vector.load %arg38[%c0_254, %c0_255] : memref<12x32xf32, #tpu.memory_space<vmem>>, vector<8x32xf32>
    %367 = arith.truncf %366 : vector<8x32xf32> to vector<8x32xbf16>
    %368 = vector.extract_strided_slice %364 {offsets = [0, 0], sizes = [32, 64], strides = [1, 1]} : vector<160x64xbf16> to vector<32x64xbf16>
    %cst_256 = arith.constant dense<0.000000e+00> : vector<8x64xf32>
    %369 = tpu.matmul %367, %368, %cst_256 {dimension_numbers = #tpu.dot_dimension_numbers<[1], [0], [0], [1], [0, 0, 1, 1], [], []>} : vector<8x32xbf16>, vector<32x64xbf16>, vector<8x64xf32> -> vector<8x64xf32>
    %370 = arith.addf %365, %369 : vector<8x64xf32>
    %c1_257 = arith.constant 1 : index
    %c0_258 = arith.constant 0 : index
    %371 = vector.load %arg38[%c1_257, %c0_258] : memref<12x32xf32, #tpu.memory_space<vmem>>, vector<8x32xf32>
    %372 = arith.truncf %371 : vector<8x32xf32> to vector<8x32xbf16>
    %373 = vector.extract_strided_slice %364 {offsets = [32, 0], sizes = [32, 64], strides = [1, 1]} : vector<160x64xbf16> to vector<32x64xbf16>
    %cst_259 = arith.constant dense<0.000000e+00> : vector<8x64xf32>
    %374 = tpu.matmul %372, %373, %cst_259 {dimension_numbers = #tpu.dot_dimension_numbers<[1], [0], [0], [1], [0, 0, 1, 1], [], []>} : vector<8x32xbf16>, vector<32x64xbf16>, vector<8x64xf32> -> vector<8x64xf32>
    %375 = arith.addf %370, %374 : vector<8x64xf32>
    %c2_260 = arith.constant 2 : index
    %c0_261 = arith.constant 0 : index
    %376 = vector.load %arg38[%c2_260, %c0_261] : memref<12x32xf32, #tpu.memory_space<vmem>>, vector<8x32xf32>
    %377 = arith.truncf %376 : vector<8x32xf32> to vector<8x32xbf16>
    %378 = vector.extract_strided_slice %364 {offsets = [64, 0], sizes = [32, 64], strides = [1, 1]} : vector<160x64xbf16> to vector<32x64xbf16>
    %cst_262 = arith.constant dense<0.000000e+00> : vector<8x64xf32>
    %379 = tpu.matmul %377, %378, %cst_262 {dimension_numbers = #tpu.dot_dimension_numbers<[1], [0], [0], [1], [0, 0, 1, 1], [], []>} : vector<8x32xbf16>, vector<32x64xbf16>, vector<8x64xf32> -> vector<8x64xf32>
    %380 = arith.addf %375, %379 : vector<8x64xf32>
    %c3_263 = arith.constant 3 : index
    %c0_264 = arith.constant 0 : index
    %381 = vector.load %arg38[%c3_263, %c0_264] : memref<12x32xf32, #tpu.memory_space<vmem>>, vector<8x32xf32>
    %382 = arith.truncf %381 : vector<8x32xf32> to vector<8x32xbf16>
    %383 = vector.extract_strided_slice %364 {offsets = [96, 0], sizes = [32, 64], strides = [1, 1]} : vector<160x64xbf16> to vector<32x64xbf16>
    %cst_265 = arith.constant dense<0.000000e+00> : vector<8x64xf32>
    %384 = tpu.matmul %382, %383, %cst_265 {dimension_numbers = #tpu.dot_dimension_numbers<[1], [0], [0], [1], [0, 0, 1, 1], [], []>} : vector<8x32xbf16>, vector<32x64xbf16>, vector<8x64xf32> -> vector<8x64xf32>
    %385 = arith.addf %380, %384 : vector<8x64xf32>
    %c4_266 = arith.constant 4 : index
    %c0_267 = arith.constant 0 : index
    %386 = vector.load %arg38[%c4_266, %c0_267] : memref<12x32xf32, #tpu.memory_space<vmem>>, vector<8x32xf32>
    %387 = arith.truncf %386 : vector<8x32xf32> to vector<8x32xbf16>
    %388 = vector.extract_strided_slice %364 {offsets = [128, 0], sizes = [32, 64], strides = [1, 1]} : vector<160x64xbf16> to vector<32x64xbf16>
    %cst_268 = arith.constant dense<0.000000e+00> : vector<8x64xf32>
    %389 = tpu.matmul %387, %388, %cst_268 {dimension_numbers = #tpu.dot_dimension_numbers<[1], [0], [0], [1], [0, 0, 1, 1], [], []>} : vector<8x32xbf16>, vector<32x64xbf16>, vector<8x64xf32> -> vector<8x64xf32>
    %390 = arith.addf %385, %389 : vector<8x64xf32>
    %c0_269 = arith.constant 0 : index
    %c0_270 = arith.constant 0 : index
    %391 = vector.load %arg17[%c0_269, %c0_270] : memref<1x64xf32, #tpu.memory_space<vmem>>, vector<1x64xf32>
    %392 = vector.broadcast %391 : vector<1x64xf32> to vector<8x64xf32>
    %393 = arith.addf %390, %392 : vector<8x64xf32>
    %cst_271 = arith.constant 0.000000e+00 : f32
    %394 = vector.broadcast %cst_271 : f32 to vector<8x64xf32>
    %395 = arith.maximumf %393, %394 : vector<8x64xf32>
    %396 = vector.extract_strided_slice %395 {offsets = [0, 0], sizes = [1, 64], strides = [1, 1]} : vector<8x64xf32> to vector<1x64xf32>
    %397 = vector.extract_strided_slice %395 {offsets = [1, 0], sizes = [1, 64], strides = [1, 1]} : vector<8x64xf32> to vector<1x64xf32>
    %398 = arith.maximumf %396, %397 : vector<1x64xf32>
    %c2_272 = arith.constant 2 : index
    %c0_273 = arith.constant 0 : index
    %399 = vector.load %arg40[%c2_272, %c0_273] : memref<8x64xf32, #tpu.memory_space<vmem>>, vector<1x64xf32>
    tpu.vector_store %arg40[%c2_272, %c0_273], %398 {strides = array<i32>} : memref<8x64xf32, #tpu.memory_space<vmem>>, vector<1x64xf32>,
    %400 = vector.extract_strided_slice %395 {offsets = [2, 0], sizes = [1, 64], strides = [1, 1]} : vector<8x64xf32> to vector<1x64xf32>
    %401 = vector.extract_strided_slice %395 {offsets = [3, 0], sizes = [1, 64], strides = [1, 1]} : vector<8x64xf32> to vector<1x64xf32>
    %402 = arith.maximumf %400, %401 : vector<1x64xf32>
    %c3_274 = arith.constant 3 : index
    %c0_275 = arith.constant 0 : index
    %403 = vector.load %arg40[%c3_274, %c0_275] : memref<8x64xf32, #tpu.memory_space<vmem>>, vector<1x64xf32>
    tpu.vector_store %arg40[%c3_274, %c0_275], %402 {strides = array<i32>} : memref<8x64xf32, #tpu.memory_space<vmem>>, vector<1x64xf32>,
    %404 = vector.extract_strided_slice %395 {offsets = [4, 0], sizes = [1, 64], strides = [1, 1]} : vector<8x64xf32> to vector<1x64xf32>
    %405 = vector.extract_strided_slice %395 {offsets = [5, 0], sizes = [1, 64], strides = [1, 1]} : vector<8x64xf32> to vector<1x64xf32>
    %406 = arith.maximumf %404, %405 : vector<1x64xf32>
    %c4_276 = arith.constant 4 : index
    %c0_277 = arith.constant 0 : index
    %407 = vector.load %arg40[%c4_276, %c0_277] : memref<8x64xf32, #tpu.memory_space<vmem>>, vector<1x64xf32>
    tpu.vector_store %arg40[%c4_276, %c0_277], %406 {strides = array<i32>} : memref<8x64xf32, #tpu.memory_space<vmem>>, vector<1x64xf32>,
    %408 = vector.extract_strided_slice %395 {offsets = [6, 0], sizes = [1, 64], strides = [1, 1]} : vector<8x64xf32> to vector<1x64xf32>
    %409 = vector.extract_strided_slice %395 {offsets = [7, 0], sizes = [1, 64], strides = [1, 1]} : vector<8x64xf32> to vector<1x64xf32>
    %410 = arith.maximumf %408, %409 : vector<1x64xf32>
    %c5_278 = arith.constant 5 : index
    %c0_279 = arith.constant 0 : index
    %411 = vector.load %arg40[%c5_278, %c0_279] : memref<8x64xf32, #tpu.memory_space<vmem>>, vector<1x64xf32>
    tpu.vector_store %arg40[%c5_278, %c0_279], %410 {strides = array<i32>} : memref<8x64xf32, #tpu.memory_space<vmem>>, vector<1x64xf32>,
    %c0_280 = arith.constant 0 : index
    %c0_281 = arith.constant 0 : index
    %412 = vector.load %arg18[%c0_280, %c0_281] : memref<320x64xbf16, #tpu.memory_space<vmem>>, vector<320x64xbf16>
    %cst_282 = arith.constant 0.000000e+00 : f32
    %413 = vector.broadcast %cst_282 : f32 to vector<4x64xf32>
    %c0_283 = arith.constant 0 : index
    %c0_284 = arith.constant 0 : index
    %414 = vector.load %arg40[%c0_283, %c0_284] : memref<8x64xf32, #tpu.memory_space<vmem>>, vector<4x64xf32>
    %415 = arith.truncf %414 : vector<4x64xf32> to vector<4x64xbf16>
    %416 = vector.extract_strided_slice %412 {offsets = [0, 0], sizes = [64, 64], strides = [1, 1]} : vector<320x64xbf16> to vector<64x64xbf16>
    %cst_285 = arith.constant dense<0.000000e+00> : vector<4x64xf32>
    %417 = tpu.matmul %415, %416, %cst_285 {dimension_numbers = #tpu.dot_dimension_numbers<[1], [0], [0], [1], [0, 0, 1, 1], [], []>} : vector<4x64xbf16>, vector<64x64xbf16>, vector<4x64xf32> -> vector<4x64xf32>
    %418 = arith.addf %413, %417 : vector<4x64xf32>
    %c1_286 = arith.constant 1 : index
    %c0_287 = arith.constant 0 : index
    %419 = vector.load %arg40[%c1_286, %c0_287] : memref<8x64xf32, #tpu.memory_space<vmem>>, vector<4x64xf32>
    %420 = arith.truncf %419 : vector<4x64xf32> to vector<4x64xbf16>
    %421 = vector.extract_strided_slice %412 {offsets = [64, 0], sizes = [64, 64], strides = [1, 1]} : vector<320x64xbf16> to vector<64x64xbf16>
    %cst_288 = arith.constant dense<0.000000e+00> : vector<4x64xf32>
    %422 = tpu.matmul %420, %421, %cst_288 {dimension_numbers = #tpu.dot_dimension_numbers<[1], [0], [0], [1], [0, 0, 1, 1], [], []>} : vector<4x64xbf16>, vector<64x64xbf16>, vector<4x64xf32> -> vector<4x64xf32>
    %423 = arith.addf %418, %422 : vector<4x64xf32>
    %c2_289 = arith.constant 2 : index
    %c0_290 = arith.constant 0 : index
    %424 = vector.load %arg40[%c2_289, %c0_290] : memref<8x64xf32, #tpu.memory_space<vmem>>, vector<4x64xf32>
    %425 = arith.truncf %424 : vector<4x64xf32> to vector<4x64xbf16>
    %426 = vector.extract_strided_slice %412 {offsets = [128, 0], sizes = [64, 64], strides = [1, 1]} : vector<320x64xbf16> to vector<64x64xbf16>
    %cst_291 = arith.constant dense<0.000000e+00> : vector<4x64xf32>
    %427 = tpu.matmul %425, %426, %cst_291 {dimension_numbers = #tpu.dot_dimension_numbers<[1], [0], [0], [1], [0, 0, 1, 1], [], []>} : vector<4x64xbf16>, vector<64x64xbf16>, vector<4x64xf32> -> vector<4x64xf32>
    %428 = arith.addf %423, %427 : vector<4x64xf32>
    %c3_292 = arith.constant 3 : index
    %c0_293 = arith.constant 0 : index
    %429 = vector.load %arg40[%c3_292, %c0_293] : memref<8x64xf32, #tpu.memory_space<vmem>>, vector<4x64xf32>
    %430 = arith.truncf %429 : vector<4x64xf32> to vector<4x64xbf16>
    %431 = vector.extract_strided_slice %412 {offsets = [192, 0], sizes = [64, 64], strides = [1, 1]} : vector<320x64xbf16> to vector<64x64xbf16>
    %cst_294 = arith.constant dense<0.000000e+00> : vector<4x64xf32>
    %432 = tpu.matmul %430, %431, %cst_294 {dimension_numbers = #tpu.dot_dimension_numbers<[1], [0], [0], [1], [0, 0, 1, 1], [], []>} : vector<4x64xbf16>, vector<64x64xbf16>, vector<4x64xf32> -> vector<4x64xf32>
    %433 = arith.addf %428, %432 : vector<4x64xf32>
    %c4_295 = arith.constant 4 : index
    %c0_296 = arith.constant 0 : index
    %434 = vector.load %arg40[%c4_295, %c0_296] : memref<8x64xf32, #tpu.memory_space<vmem>>, vector<4x64xf32>
    %435 = arith.truncf %434 : vector<4x64xf32> to vector<4x64xbf16>
    %436 = vector.extract_strided_slice %412 {offsets = [256, 0], sizes = [64, 64], strides = [1, 1]} : vector<320x64xbf16> to vector<64x64xbf16>
    %cst_297 = arith.constant dense<0.000000e+00> : vector<4x64xf32>
    %437 = tpu.matmul %435, %436, %cst_297 {dimension_numbers = #tpu.dot_dimension_numbers<[1], [0], [0], [1], [0, 0, 1, 1], [], []>} : vector<4x64xbf16>, vector<64x64xbf16>, vector<4x64xf32> -> vector<4x64xf32>
    %438 = arith.addf %433, %437 : vector<4x64xf32>
    %c0_298 = arith.constant 0 : index
    %c0_299 = arith.constant 0 : index
    %439 = vector.load %arg19[%c0_298, %c0_299] : memref<1x64xf32, #tpu.memory_space<vmem>>, vector<1x64xf32>
    %440 = vector.broadcast %439 : vector<1x64xf32> to vector<4x64xf32>
    %441 = arith.addf %438, %440 : vector<4x64xf32>
    %cst_300 = arith.constant 0.000000e+00 : f32
    %442 = vector.broadcast %cst_300 : f32 to vector<4x64xf32>
    %443 = arith.maximumf %441, %442 : vector<4x64xf32>
    %c2_301 = arith.constant 2 : index
    %c0_302 = arith.constant 0 : index
    %444 = vector.load %arg41[%c2_301, %c0_302] : memref<8x64xf32, #tpu.memory_space<vmem>>, vector<4x64xf32>
    tpu.vector_store %arg41[%c2_301, %c0_302], %443 {strides = array<i32>} : memref<8x64xf32, #tpu.memory_space<vmem>>, vector<4x64xf32>,
    %c2_303 = arith.constant 2 : index
    %c0_304 = arith.constant 0 : index
    %445 = vector.load %arg40[%c2_303, %c0_304] : memref<8x64xf32, #tpu.memory_space<vmem>>, vector<4x64xf32>
    %c0_305 = arith.constant 0 : index
    %c0_306 = arith.constant 0 : index
    %446 = vector.load %arg20[%c0_305, %c0_306] : memref<320x64xbf16, #tpu.memory_space<vmem>>, vector<320x64xbf16>
    %cst_307 = arith.constant 0.000000e+00 : f32
    %447 = vector.broadcast %cst_307 : f32 to vector<4x64xf32>
    %c0_308 = arith.constant 0 : index
    %c0_309 = arith.constant 0 : index
    %448 = vector.load %arg41[%c0_308, %c0_309] : memref<8x64xf32, #tpu.memory_space<vmem>>, vector<4x64xf32>
    %449 = arith.truncf %448 : vector<4x64xf32> to vector<4x64xbf16>
    %450 = vector.extract_strided_slice %446 {offsets = [0, 0], sizes = [64, 64], strides = [1, 1]} : vector<320x64xbf16> to vector<64x64xbf16>
    %cst_310 = arith.constant dense<0.000000e+00> : vector<4x64xf32>
    %451 = tpu.matmul %449, %450, %cst_310 {dimension_numbers = #tpu.dot_dimension_numbers<[1], [0], [0], [1], [0, 0, 1, 1], [], []>} : vector<4x64xbf16>, vector<64x64xbf16>, vector<4x64xf32> -> vector<4x64xf32>
    %452 = arith.addf %447, %451 : vector<4x64xf32>
    %c1_311 = arith.constant 1 : index
    %c0_312 = arith.constant 0 : index
    %453 = vector.load %arg41[%c1_311, %c0_312] : memref<8x64xf32, #tpu.memory_space<vmem>>, vector<4x64xf32>
    %454 = arith.truncf %453 : vector<4x64xf32> to vector<4x64xbf16>
    %455 = vector.extract_strided_slice %446 {offsets = [64, 0], sizes = [64, 64], strides = [1, 1]} : vector<320x64xbf16> to vector<64x64xbf16>
    %cst_313 = arith.constant dense<0.000000e+00> : vector<4x64xf32>
    %456 = tpu.matmul %454, %455, %cst_313 {dimension_numbers = #tpu.dot_dimension_numbers<[1], [0], [0], [1], [0, 0, 1, 1], [], []>} : vector<4x64xbf16>, vector<64x64xbf16>, vector<4x64xf32> -> vector<4x64xf32>
    %457 = arith.addf %452, %456 : vector<4x64xf32>
    %c2_314 = arith.constant 2 : index
    %c0_315 = arith.constant 0 : index
    %458 = vector.load %arg41[%c2_314, %c0_315] : memref<8x64xf32, #tpu.memory_space<vmem>>, vector<4x64xf32>
    %459 = arith.truncf %458 : vector<4x64xf32> to vector<4x64xbf16>
    %460 = vector.extract_strided_slice %446 {offsets = [128, 0], sizes = [64, 64], strides = [1, 1]} : vector<320x64xbf16> to vector<64x64xbf16>
    %cst_316 = arith.constant dense<0.000000e+00> : vector<4x64xf32>
    %461 = tpu.matmul %459, %460, %cst_316 {dimension_numbers = #tpu.dot_dimension_numbers<[1], [0], [0], [1], [0, 0, 1, 1], [], []>} : vector<4x64xbf16>, vector<64x64xbf16>, vector<4x64xf32> -> vector<4x64xf32>
    %462 = arith.addf %457, %461 : vector<4x64xf32>
    %c3_317 = arith.constant 3 : index
    %c0_318 = arith.constant 0 : index
    %463 = vector.load %arg41[%c3_317, %c0_318] : memref<8x64xf32, #tpu.memory_space<vmem>>, vector<4x64xf32>
    %464 = arith.truncf %463 : vector<4x64xf32> to vector<4x64xbf16>
    %465 = vector.extract_strided_slice %446 {offsets = [192, 0], sizes = [64, 64], strides = [1, 1]} : vector<320x64xbf16> to vector<64x64xbf16>
    %cst_319 = arith.constant dense<0.000000e+00> : vector<4x64xf32>
    %466 = tpu.matmul %464, %465, %cst_319 {dimension_numbers = #tpu.dot_dimension_numbers<[1], [0], [0], [1], [0, 0, 1, 1], [], []>} : vector<4x64xbf16>, vector<64x64xbf16>, vector<4x64xf32> -> vector<4x64xf32>
    %467 = arith.addf %462, %466 : vector<4x64xf32>
    %c4_320 = arith.constant 4 : index
    %c0_321 = arith.constant 0 : index
    %468 = vector.load %arg41[%c4_320, %c0_321] : memref<8x64xf32, #tpu.memory_space<vmem>>, vector<4x64xf32>
    %469 = arith.truncf %468 : vector<4x64xf32> to vector<4x64xbf16>
    %470 = vector.extract_strided_slice %446 {offsets = [256, 0], sizes = [64, 64], strides = [1, 1]} : vector<320x64xbf16> to vector<64x64xbf16>
    %cst_322 = arith.constant dense<0.000000e+00> : vector<4x64xf32>
    %471 = tpu.matmul %469, %470, %cst_322 {dimension_numbers = #tpu.dot_dimension_numbers<[1], [0], [0], [1], [0, 0, 1, 1], [], []>} : vector<4x64xbf16>, vector<64x64xbf16>, vector<4x64xf32> -> vector<4x64xf32>
    %472 = arith.addf %467, %471 : vector<4x64xf32>
    %c0_323 = arith.constant 0 : index
    %c0_324 = arith.constant 0 : index
    %473 = vector.load %arg21[%c0_323, %c0_324] : memref<1x64xf32, #tpu.memory_space<vmem>>, vector<1x64xf32>
    %474 = vector.broadcast %473 : vector<1x64xf32> to vector<4x64xf32>
    %475 = arith.addf %472, %474 : vector<4x64xf32>
    %476 = arith.addf %475, %445 : vector<4x64xf32>
    %cst_325 = arith.constant 0.000000e+00 : f32
    %477 = vector.broadcast %cst_325 : f32 to vector<4x64xf32>
    %478 = arith.maximumf %476, %477 : vector<4x64xf32>
    %c2_326 = arith.constant 2 : index
    %c0_327 = arith.constant 0 : index
    %479 = vector.load %arg40[%c2_326, %c0_327] : memref<8x64xf32, #tpu.memory_space<vmem>>, vector<4x64xf32>
    tpu.vector_store %arg40[%c2_326, %c0_327], %478 {strides = array<i32>} : memref<8x64xf32, #tpu.memory_space<vmem>>, vector<4x64xf32>,
    %c0_328 = arith.constant 0 : index
    %c0_329 = arith.constant 0 : index
    %480 = vector.load %arg18[%c0_328, %c0_329] : memref<320x64xbf16, #tpu.memory_space<vmem>>, vector<320x64xbf16>
    %cst_330 = arith.constant 0.000000e+00 : f32
    %481 = vector.broadcast %cst_330 : f32 to vector<4x64xf32>
    %c0_331 = arith.constant 0 : index
    %c0_332 = arith.constant 0 : index
    %482 = vector.load %arg40[%c0_331, %c0_332] : memref<8x64xf32, #tpu.memory_space<vmem>>, vector<4x64xf32>
    %483 = arith.truncf %482 : vector<4x64xf32> to vector<4x64xbf16>
    %484 = vector.extract_strided_slice %480 {offsets = [0, 0], sizes = [64, 64], strides = [1, 1]} : vector<320x64xbf16> to vector<64x64xbf16>
    %cst_333 = arith.constant dense<0.000000e+00> : vector<4x64xf32>
    %485 = tpu.matmul %483, %484, %cst_333 {dimension_numbers = #tpu.dot_dimension_numbers<[1], [0], [0], [1], [0, 0, 1, 1], [], []>} : vector<4x64xbf16>, vector<64x64xbf16>, vector<4x64xf32> -> vector<4x64xf32>
    %486 = arith.addf %481, %485 : vector<4x64xf32>
    %c1_334 = arith.constant 1 : index
    %c0_335 = arith.constant 0 : index
    %487 = vector.load %arg40[%c1_334, %c0_335] : memref<8x64xf32, #tpu.memory_space<vmem>>, vector<4x64xf32>
    %488 = arith.truncf %487 : vector<4x64xf32> to vector<4x64xbf16>
    %489 = vector.extract_strided_slice %480 {offsets = [64, 0], sizes = [64, 64], strides = [1, 1]} : vector<320x64xbf16> to vector<64x64xbf16>
    %cst_336 = arith.constant dense<0.000000e+00> : vector<4x64xf32>
    %490 = tpu.matmul %488, %489, %cst_336 {dimension_numbers = #tpu.dot_dimension_numbers<[1], [0], [0], [1], [0, 0, 1, 1], [], []>} : vector<4x64xbf16>, vector<64x64xbf16>, vector<4x64xf32> -> vector<4x64xf32>
    %491 = arith.addf %486, %490 : vector<4x64xf32>
    %c2_337 = arith.constant 2 : index
    %c0_338 = arith.constant 0 : index
    %492 = vector.load %arg40[%c2_337, %c0_338] : memref<8x64xf32, #tpu.memory_space<vmem>>, vector<4x64xf32>
    %493 = arith.truncf %492 : vector<4x64xf32> to vector<4x64xbf16>
    %494 = vector.extract_strided_slice %480 {offsets = [128, 0], sizes = [64, 64], strides = [1, 1]} : vector<320x64xbf16> to vector<64x64xbf16>
    %cst_339 = arith.constant dense<0.000000e+00> : vector<4x64xf32>
    %495 = tpu.matmul %493, %494, %cst_339 {dimension_numbers = #tpu.dot_dimension_numbers<[1], [0], [0], [1], [0, 0, 1, 1], [], []>} : vector<4x64xbf16>, vector<64x64xbf16>, vector<4x64xf32> -> vector<4x64xf32>
    %496 = arith.addf %491, %495 : vector<4x64xf32>
    %c3_340 = arith.constant 3 : index
    %c0_341 = arith.constant 0 : index
    %497 = vector.load %arg40[%c3_340, %c0_341] : memref<8x64xf32, #tpu.memory_space<vmem>>, vector<4x64xf32>
    %498 = arith.truncf %497 : vector<4x64xf32> to vector<4x64xbf16>
    %499 = vector.extract_strided_slice %480 {offsets = [192, 0], sizes = [64, 64], strides = [1, 1]} : vector<320x64xbf16> to vector<64x64xbf16>
    %cst_342 = arith.constant dense<0.000000e+00> : vector<4x64xf32>
    %500 = tpu.matmul %498, %499, %cst_342 {dimension_numbers = #tpu.dot_dimension_numbers<[1], [0], [0], [1], [0, 0, 1, 1], [], []>} : vector<4x64xbf16>, vector<64x64xbf16>, vector<4x64xf32> -> vector<4x64xf32>
    %501 = arith.addf %496, %500 : vector<4x64xf32>
    %c4_343 = arith.constant 4 : index
    %c0_344 = arith.constant 0 : index
    %502 = vector.load %arg40[%c4_343, %c0_344] : memref<8x64xf32, #tpu.memory_space<vmem>>, vector<4x64xf32>
    %503 = arith.truncf %502 : vector<4x64xf32> to vector<4x64xbf16>
    %504 = vector.extract_strided_slice %480 {offsets = [256, 0], sizes = [64, 64], strides = [1, 1]} : vector<320x64xbf16> to vector<64x64xbf16>
    %cst_345 = arith.constant dense<0.000000e+00> : vector<4x64xf32>
    %505 = tpu.matmul %503, %504, %cst_345 {dimension_numbers = #tpu.dot_dimension_numbers<[1], [0], [0], [1], [0, 0, 1, 1], [], []>} : vector<4x64xbf16>, vector<64x64xbf16>, vector<4x64xf32> -> vector<4x64xf32>
    %506 = arith.addf %501, %505 : vector<4x64xf32>
    %c0_346 = arith.constant 0 : index
    %c0_347 = arith.constant 0 : index
    %507 = vector.load %arg19[%c0_346, %c0_347] : memref<1x64xf32, #tpu.memory_space<vmem>>, vector<1x64xf32>
    %508 = vector.broadcast %507 : vector<1x64xf32> to vector<4x64xf32>
    %509 = arith.addf %506, %508 : vector<4x64xf32>
    %cst_348 = arith.constant 0.000000e+00 : f32
    %510 = vector.broadcast %cst_348 : f32 to vector<4x64xf32>
    %511 = arith.maximumf %509, %510 : vector<4x64xf32>
    %c2_349 = arith.constant 2 : index
    %c0_350 = arith.constant 0 : index
    %512 = vector.load %arg41[%c2_349, %c0_350] : memref<8x64xf32, #tpu.memory_space<vmem>>, vector<4x64xf32>
    tpu.vector_store %arg41[%c2_349, %c0_350], %511 {strides = array<i32>} : memref<8x64xf32, #tpu.memory_space<vmem>>, vector<4x64xf32>,
    %c2_351 = arith.constant 2 : index
    %c0_352 = arith.constant 0 : index
    %513 = vector.load %arg40[%c2_351, %c0_352] : memref<8x64xf32, #tpu.memory_space<vmem>>, vector<4x64xf32>
    %c0_353 = arith.constant 0 : index
    %c0_354 = arith.constant 0 : index
    %514 = vector.load %arg20[%c0_353, %c0_354] : memref<320x64xbf16, #tpu.memory_space<vmem>>, vector<320x64xbf16>
    %cst_355 = arith.constant 0.000000e+00 : f32
    %515 = vector.broadcast %cst_355 : f32 to vector<4x64xf32>
    %c0_356 = arith.constant 0 : index
    %c0_357 = arith.constant 0 : index
    %516 = vector.load %arg41[%c0_356, %c0_357] : memref<8x64xf32, #tpu.memory_space<vmem>>, vector<4x64xf32>
    %517 = arith.truncf %516 : vector<4x64xf32> to vector<4x64xbf16>
    %518 = vector.extract_strided_slice %514 {offsets = [0, 0], sizes = [64, 64], strides = [1, 1]} : vector<320x64xbf16> to vector<64x64xbf16>
    %cst_358 = arith.constant dense<0.000000e+00> : vector<4x64xf32>
    %519 = tpu.matmul %517, %518, %cst_358 {dimension_numbers = #tpu.dot_dimension_numbers<[1], [0], [0], [1], [0, 0, 1, 1], [], []>} : vector<4x64xbf16>, vector<64x64xbf16>, vector<4x64xf32> -> vector<4x64xf32>
    %520 = arith.addf %515, %519 : vector<4x64xf32>
    %c1_359 = arith.constant 1 : index
    %c0_360 = arith.constant 0 : index
    %521 = vector.load %arg41[%c1_359, %c0_360] : memref<8x64xf32, #tpu.memory_space<vmem>>, vector<4x64xf32>
    %522 = arith.truncf %521 : vector<4x64xf32> to vector<4x64xbf16>
    %523 = vector.extract_strided_slice %514 {offsets = [64, 0], sizes = [64, 64], strides = [1, 1]} : vector<320x64xbf16> to vector<64x64xbf16>
    %cst_361 = arith.constant dense<0.000000e+00> : vector<4x64xf32>
    %524 = tpu.matmul %522, %523, %cst_361 {dimension_numbers = #tpu.dot_dimension_numbers<[1], [0], [0], [1], [0, 0, 1, 1], [], []>} : vector<4x64xbf16>, vector<64x64xbf16>, vector<4x64xf32> -> vector<4x64xf32>
    %525 = arith.addf %520, %524 : vector<4x64xf32>
    %c2_362 = arith.constant 2 : index
    %c0_363 = arith.constant 0 : index
    %526 = vector.load %arg41[%c2_362, %c0_363] : memref<8x64xf32, #tpu.memory_space<vmem>>, vector<4x64xf32>
    %527 = arith.truncf %526 : vector<4x64xf32> to vector<4x64xbf16>
    %528 = vector.extract_strided_slice %514 {offsets = [128, 0], sizes = [64, 64], strides = [1, 1]} : vector<320x64xbf16> to vector<64x64xbf16>
    %cst_364 = arith.constant dense<0.000000e+00> : vector<4x64xf32>
    %529 = tpu.matmul %527, %528, %cst_364 {dimension_numbers = #tpu.dot_dimension_numbers<[1], [0], [0], [1], [0, 0, 1, 1], [], []>} : vector<4x64xbf16>, vector<64x64xbf16>, vector<4x64xf32> -> vector<4x64xf32>
    %530 = arith.addf %525, %529 : vector<4x64xf32>
    %c3_365 = arith.constant 3 : index
    %c0_366 = arith.constant 0 : index
    %531 = vector.load %arg41[%c3_365, %c0_366] : memref<8x64xf32, #tpu.memory_space<vmem>>, vector<4x64xf32>
    %532 = arith.truncf %531 : vector<4x64xf32> to vector<4x64xbf16>
    %533 = vector.extract_strided_slice %514 {offsets = [192, 0], sizes = [64, 64], strides = [1, 1]} : vector<320x64xbf16> to vector<64x64xbf16>
    %cst_367 = arith.constant dense<0.000000e+00> : vector<4x64xf32>
    %534 = tpu.matmul %532, %533, %cst_367 {dimension_numbers = #tpu.dot_dimension_numbers<[1], [0], [0], [1], [0, 0, 1, 1], [], []>} : vector<4x64xbf16>, vector<64x64xbf16>, vector<4x64xf32> -> vector<4x64xf32>
    %535 = arith.addf %530, %534 : vector<4x64xf32>
    %c4_368 = arith.constant 4 : index
    %c0_369 = arith.constant 0 : index
    %536 = vector.load %arg41[%c4_368, %c0_369] : memref<8x64xf32, #tpu.memory_space<vmem>>, vector<4x64xf32>
    %537 = arith.truncf %536 : vector<4x64xf32> to vector<4x64xbf16>
    %538 = vector.extract_strided_slice %514 {offsets = [256, 0], sizes = [64, 64], strides = [1, 1]} : vector<320x64xbf16> to vector<64x64xbf16>
    %cst_370 = arith.constant dense<0.000000e+00> : vector<4x64xf32>
    %539 = tpu.matmul %537, %538, %cst_370 {dimension_numbers = #tpu.dot_dimension_numbers<[1], [0], [0], [1], [0, 0, 1, 1], [], []>} : vector<4x64xbf16>, vector<64x64xbf16>, vector<4x64xf32> -> vector<4x64xf32>
    %540 = arith.addf %535, %539 : vector<4x64xf32>
    %c0_371 = arith.constant 0 : index
    %c0_372 = arith.constant 0 : index
    %541 = vector.load %arg21[%c0_371, %c0_372] : memref<1x64xf32, #tpu.memory_space<vmem>>, vector<1x64xf32>
    %542 = vector.broadcast %541 : vector<1x64xf32> to vector<4x64xf32>
    %543 = arith.addf %540, %542 : vector<4x64xf32>
    %544 = arith.addf %543, %513 : vector<4x64xf32>
    %cst_373 = arith.constant 0.000000e+00 : f32
    %545 = vector.broadcast %cst_373 : f32 to vector<4x64xf32>
    %546 = arith.maximumf %544, %545 : vector<4x64xf32>
    %c2_374 = arith.constant 2 : index
    %c0_375 = arith.constant 0 : index
    %547 = vector.load %arg40[%c2_374, %c0_375] : memref<8x64xf32, #tpu.memory_space<vmem>>, vector<4x64xf32>
    tpu.vector_store %arg40[%c2_374, %c0_375], %546 {strides = array<i32>} : memref<8x64xf32, #tpu.memory_space<vmem>>, vector<4x64xf32>,
    %c0_376 = arith.constant 0 : index
    %c0_377 = arith.constant 0 : index
    %c0_378 = arith.constant 0 : index
    %548 = vector.load %arg3[%c0_376, %c0_377, %c0_378] : memref<1x1x2xf32, #tpu.memory_space<vmem>>, vector<1x1x2xf32>
    %549 = vector.shape_cast %548 : vector<1x1x2xf32> to vector<1x2xf32>
    %550 = arith.truncf %549 : vector<1x2xf32> to vector<1x2xbf16>
    %c0_379 = arith.constant 0 : index
    %c0_380 = arith.constant 0 : index
    %551 = vector.load %arg22[%c0_379, %c0_380] : memref<2x32xbf16, #tpu.memory_space<vmem>>, vector<2x32xbf16>
    %cst_381 = arith.constant dense<0.000000e+00> : vector<1x32xf32>
    %552 = tpu.matmul %550, %551, %cst_381 {dimension_numbers = #tpu.dot_dimension_numbers<[1], [0], [0], [1], [0, 0, 1, 1], [], []>} : vector<1x2xbf16>, vector<2x32xbf16>, vector<1x32xf32> -> vector<1x32xf32>
    %c0_382 = arith.constant 0 : index
    %c0_383 = arith.constant 0 : index
    %553 = vector.load %arg23[%c0_382, %c0_383] : memref<1x32xf32, #tpu.memory_space<vmem>>, vector<1x32xf32>
    %554 = arith.addf %552, %553 : vector<1x32xf32>
    %cst_384 = arith.constant 0.000000e+00 : f32
    %555 = vector.broadcast %cst_384 : f32 to vector<1x32xf32>
    %556 = arith.maximumf %554, %555 : vector<1x32xf32>
    %557 = arith.truncf %556 : vector<1x32xf32> to vector<1x32xbf16>
    %c0_385 = arith.constant 0 : index
    %c0_386 = arith.constant 0 : index
    %558 = vector.load %arg24[%c0_385, %c0_386] : memref<32x64xbf16, #tpu.memory_space<vmem>>, vector<32x64xbf16>
    %cst_387 = arith.constant dense<0.000000e+00> : vector<1x64xf32>
    %559 = tpu.matmul %557, %558, %cst_387 {dimension_numbers = #tpu.dot_dimension_numbers<[1], [0], [0], [1], [0, 0, 1, 1], [], []>} : vector<1x32xbf16>, vector<32x64xbf16>, vector<1x64xf32> -> vector<1x64xf32>
    %c0_388 = arith.constant 0 : index
    %c0_389 = arith.constant 0 : index
    %560 = vector.load %arg25[%c0_388, %c0_389] : memref<1x64xf32, #tpu.memory_space<vmem>>, vector<1x64xf32>
    %561 = arith.addf %559, %560 : vector<1x64xf32>
    %cst_390 = arith.constant 0.000000e+00 : f32
    %562 = vector.broadcast %cst_390 : f32 to vector<1x64xf32>
    %563 = arith.maximumf %561, %562 : vector<1x64xf32>
    %564 = arith.truncf %563 : vector<1x64xf32> to vector<1x64xbf16>
    %c0_391 = arith.constant 0 : index
    %c0_392 = arith.constant 0 : index
    %565 = vector.load %arg26[%c0_391, %c0_392] : memref<64x64xbf16, #tpu.memory_space<vmem>>, vector<64x64xbf16>
    %cst_393 = arith.constant dense<0.000000e+00> : vector<1x64xf32>
    %566 = tpu.matmul %564, %565, %cst_393 {dimension_numbers = #tpu.dot_dimension_numbers<[1], [0], [0], [1], [0, 0, 1, 1], [], []>} : vector<1x64xbf16>, vector<64x64xbf16>, vector<1x64xf32> -> vector<1x64xf32>
    %c0_394 = arith.constant 0 : index
    %c0_395 = arith.constant 0 : index
    %567 = vector.load %arg27[%c0_394, %c0_395] : memref<1x64xf32, #tpu.memory_space<vmem>>, vector<1x64xf32>
    %568 = arith.addf %566, %567 : vector<1x64xf32>
    %c0_396 = arith.constant 0 : index
    %c0_397 = arith.constant 0 : index
    %569 = vector.load %arg28[%c0_396, %c0_397] : memref<256x32xbf16, #tpu.memory_space<vmem>>, vector<256x32xbf16>
    %570 = arith.truncf %568 : vector<1x64xf32> to vector<1x64xbf16>
    %c0_398 = arith.constant 0 : index
    %c0_399 = arith.constant 0 : index
    %571 = vector.load %arg29[%c0_398, %c0_399] : memref<64x32xbf16, #tpu.memory_space<vmem>>, vector<64x32xbf16>
    %cst_400 = arith.constant dense<0.000000e+00> : vector<1x32xf32>
    %572 = tpu.matmul %570, %571, %cst_400 {dimension_numbers = #tpu.dot_dimension_numbers<[1], [0], [0], [1], [0, 0, 1, 1], [], []>} : vector<1x64xbf16>, vector<64x32xbf16>, vector<1x32xf32> -> vector<1x32xf32>
    %c2_401 = arith.constant 2 : index
    %c0_402 = arith.constant 0 : index
    %573 = vector.load %arg40[%c2_401, %c0_402] : memref<8x64xf32, #tpu.memory_space<vmem>>, vector<1x64xf32>
    %574 = arith.truncf %573 : vector<1x64xf32> to vector<1x64xbf16>
    %575 = vector.extract_strided_slice %569 {offsets = [0, 0], sizes = [64, 32], strides = [1, 1]} : vector<256x32xbf16> to vector<64x32xbf16>
    %cst_403 = arith.constant dense<0.000000e+00> : vector<1x32xf32>
    %576 = tpu.matmul %574, %575, %cst_403 {dimension_numbers = #tpu.dot_dimension_numbers<[1], [0], [0], [1], [0, 0, 1, 1], [], []>} : vector<1x64xbf16>, vector<64x32xbf16>, vector<1x32xf32> -> vector<1x32xf32>
    %577 = arith.addf %572, %576 : vector<1x32xf32>
    %c3_404 = arith.constant 3 : index
    %c0_405 = arith.constant 0 : index
    %578 = vector.load %arg40[%c3_404, %c0_405] : memref<8x64xf32, #tpu.memory_space<vmem>>, vector<1x64xf32>
    %579 = arith.truncf %578 : vector<1x64xf32> to vector<1x64xbf16>
    %580 = vector.extract_strided_slice %569 {offsets = [64, 0], sizes = [64, 32], strides = [1, 1]} : vector<256x32xbf16> to vector<64x32xbf16>
    %cst_406 = arith.constant dense<0.000000e+00> : vector<1x32xf32>
    %581 = tpu.matmul %579, %580, %cst_406 {dimension_numbers = #tpu.dot_dimension_numbers<[1], [0], [0], [1], [0, 0, 1, 1], [], []>} : vector<1x64xbf16>, vector<64x32xbf16>, vector<1x32xf32> -> vector<1x32xf32>
    %582 = arith.addf %577, %581 : vector<1x32xf32>
    %c4_407 = arith.constant 4 : index
    %c0_408 = arith.constant 0 : index
    %583 = vector.load %arg40[%c4_407, %c0_408] : memref<8x64xf32, #tpu.memory_space<vmem>>, vector<1x64xf32>
    %584 = arith.truncf %583 : vector<1x64xf32> to vector<1x64xbf16>
    %585 = vector.extract_strided_slice %569 {offsets = [128, 0], sizes = [64, 32], strides = [1, 1]} : vector<256x32xbf16> to vector<64x32xbf16>
    %cst_409 = arith.constant dense<0.000000e+00> : vector<1x32xf32>
    %586 = tpu.matmul %584, %585, %cst_409 {dimension_numbers = #tpu.dot_dimension_numbers<[1], [0], [0], [1], [0, 0, 1, 1], [], []>} : vector<1x64xbf16>, vector<64x32xbf16>, vector<1x32xf32> -> vector<1x32xf32>
    %587 = arith.addf %582, %586 : vector<1x32xf32>
    %c5_410 = arith.constant 5 : index
    %c0_411 = arith.constant 0 : index
    %588 = vector.load %arg40[%c5_410, %c0_411] : memref<8x64xf32, #tpu.memory_space<vmem>>, vector<1x64xf32>
    %589 = arith.truncf %588 : vector<1x64xf32> to vector<1x64xbf16>
    %590 = vector.extract_strided_slice %569 {offsets = [192, 0], sizes = [64, 32], strides = [1, 1]} : vector<256x32xbf16> to vector<64x32xbf16>
    %cst_412 = arith.constant dense<0.000000e+00> : vector<1x32xf32>
    %591 = tpu.matmul %589, %590, %cst_412 {dimension_numbers = #tpu.dot_dimension_numbers<[1], [0], [0], [1], [0, 0, 1, 1], [], []>} : vector<1x64xbf16>, vector<64x32xbf16>, vector<1x32xf32> -> vector<1x32xf32>
    %592 = arith.addf %587, %591 : vector<1x32xf32>
    %c0_413 = arith.constant 0 : index
    %c0_414 = arith.constant 0 : index
    %593 = vector.load %arg30[%c0_413, %c0_414] : memref<1x32xf32, #tpu.memory_space<vmem>>, vector<1x32xf32>
    %594 = arith.addf %592, %593 : vector<1x32xf32>
    %cst_415 = arith.constant 0.000000e+00 : f32
    %595 = vector.broadcast %cst_415 : f32 to vector<1x32xf32>
    %596 = arith.maximumf %594, %595 : vector<1x32xf32>
    %597 = arith.truncf %596 : vector<1x32xf32> to vector<1x32xbf16>
    %c0_416 = arith.constant 0 : index
    %c0_417 = arith.constant 0 : index
    %598 = vector.load %arg31[%c0_416, %c0_417] : memref<32x32xbf16, #tpu.memory_space<vmem>>, vector<32x32xbf16>
    %cst_418 = arith.constant dense<0.000000e+00> : vector<1x32xf32>
    %599 = tpu.matmul %597, %598, %cst_418 {dimension_numbers = #tpu.dot_dimension_numbers<[1], [0], [0], [1], [0, 0, 1, 1], [], []>} : vector<1x32xbf16>, vector<32x32xbf16>, vector<1x32xf32> -> vector<1x32xf32>
    %c0_419 = arith.constant 0 : index
    %c0_420 = arith.constant 0 : index
    %600 = vector.load %arg32[%c0_419, %c0_420] : memref<1x32xf32, #tpu.memory_space<vmem>>, vector<1x32xf32>
    %601 = arith.addf %599, %600 : vector<1x32xf32>
    %cst_421 = arith.constant 0.000000e+00 : f32
    %602 = vector.broadcast %cst_421 : f32 to vector<1x32xf32>
    %603 = arith.maximumf %601, %602 : vector<1x32xf32>
    %604 = arith.truncf %603 : vector<1x32xf32> to vector<1x32xbf16>
    %c0_422 = arith.constant 0 : index
    %c0_423 = arith.constant 0 : index
    %605 = vector.load %arg33[%c0_422, %c0_423] : memref<32x2xbf16, #tpu.memory_space<vmem>>, vector<32x2xbf16>
    %cst_424 = arith.constant dense<0.000000e+00> : vector<1x2xf32>
    %606 = tpu.matmul %604, %605, %cst_424 {dimension_numbers = #tpu.dot_dimension_numbers<[1], [0], [0], [1], [0, 0, 1, 1], [], []>} : vector<1x32xbf16>, vector<32x2xbf16>, vector<1x2xf32> -> vector<1x2xf32>
    %c0_425 = arith.constant 0 : index
    %c0_426 = arith.constant 0 : index
    %607 = vector.load %arg34[%c0_425, %c0_426] : memref<1x2xf32, #tpu.memory_space<vmem>>, vector<1x2xf32>
    %608 = arith.addf %606, %607 : vector<1x2xf32>
    %c0_427 = arith.constant 0 : index
    %c0_428 = arith.constant 0 : index
    %c0_429 = arith.constant 0 : index
    %609 = vector.load %arg35[%c0_427, %c0_428, %c0_429] : memref<1x1x2xf32, #tpu.memory_space<vmem>>, vector<1x1x2xf32>
    %610 = vector.shape_cast %609 : vector<1x1x2xf32> to vector<1x2xf32>
    %611 = vector.shape_cast %608 : vector<1x2xf32> to vector<1x1x2xf32>
    tpu.vector_store %arg35[%c0_427, %c0_428, %c0_429], %611 {strides = array<i32>} : memref<1x1x2xf32, #tpu.memory_space<vmem>>, vector<1x1x2xf32>,
    return
  }
  func.func @transform_0(%arg0: i32) -> (i32, i32, i32) {
    %c0_i32 = arith.constant 0 : i32
    %c0_i32_0 = arith.constant 0 : i32
    %c0_i32_1 = arith.constant 0 : i32
    return %arg0, %c0_i32, %c0_i32_0 : i32, i32, i32
  }
  func.func @transform_1(%arg0: i32) -> (i32, i32, i32) {
    %c0_i32 = arith.constant 0 : i32
    %c0_i32_0 = arith.constant 0 : i32
    %c0_i32_1 = arith.constant 0 : i32
    return %arg0, %c0_i32, %c0_i32_0 : i32, i32, i32
  }
  func.func @transform_2(%arg0: i32) -> (i32, i32, i32) {
    %c0_i32 = arith.constant 0 : i32
    %c0_i32_0 = arith.constant 0 : i32
    %c0_i32_1 = arith.constant 0 : i32
    return %arg0, %c0_i32, %c0_i32_0 : i32, i32, i32
  }
  func.func @transform_3(%arg0: i32) -> (i32, i32) {
    %c0_i32 = arith.constant 0 : i32
    %c0_i32_0 = arith.constant 0 : i32
    %c0_i32_1 = arith.constant 0 : i32
    return %c0_i32, %c0_i32_0 : i32, i32
  }
  func.func @transform_4(%arg0: i32) -> (i32, i32) {
    %c0_i32 = arith.constant 0 : i32
    %c0_i32_0 = arith.constant 0 : i32
    %c0_i32_1 = arith.constant 0 : i32
    return %c0_i32, %c0_i32_0 : i32, i32
  }
  func.func @transform_5(%arg0: i32) -> (i32, i32) {
    %c0_i32 = arith.constant 0 : i32
    %c0_i32_0 = arith.constant 0 : i32
    %c0_i32_1 = arith.constant 0 : i32
    return %c0_i32, %c0_i32_0 : i32, i32
  }
  func.func @transform_6(%arg0: i32) -> (i32, i32) {
    %c0_i32 = arith.constant 0 : i32
    %c0_i32_0 = arith.constant 0 : i32
    %c0_i32_1 = arith.constant 0 : i32
    return %c0_i32, %c0_i32_0 : i32, i32
  }
  func.func @transform_7(%arg0: i32) -> (i32, i32) {
    %c0_i32 = arith.constant 0 : i32
    %c0_i32_0 = arith.constant 0 : i32
    %c0_i32_1 = arith.constant 0 : i32
    return %c0_i32, %c0_i32_0 : i32, i32
  }
  func.func @transform_8(%arg0: i32) -> (i32, i32) {
    %c0_i32 = arith.constant 0 : i32
    %c0_i32_0 = arith.constant 0 : i32
    %c0_i32_1 = arith.constant 0 : i32
    return %c0_i32, %c0_i32_0 : i32, i32
  }
  func.func @transform_9(%arg0: i32) -> (i32, i32) {
    %c0_i32 = arith.constant 0 : i32
    %c0_i32_0 = arith.constant 0 : i32
    %c0_i32_1 = arith.constant 0 : i32
    return %c0_i32, %c0_i32_0 : i32, i32
  }
  func.func @transform_10(%arg0: i32) -> (i32, i32) {
    %c0_i32 = arith.constant 0 : i32
    %c0_i32_0 = arith.constant 0 : i32
    %c0_i32_1 = arith.constant 0 : i32
    return %c0_i32, %c0_i32_0 : i32, i32
  }
  func.func @transform_11(%arg0: i32) -> (i32, i32) {
    %c0_i32 = arith.constant 0 : i32
    %c0_i32_0 = arith.constant 0 : i32
    %c0_i32_1 = arith.constant 0 : i32
    return %c0_i32, %c0_i32_0 : i32, i32
  }
  func.func @transform_12(%arg0: i32) -> (i32, i32) {
    %c0_i32 = arith.constant 0 : i32
    %c0_i32_0 = arith.constant 0 : i32
    %c0_i32_1 = arith.constant 0 : i32
    return %c0_i32, %c0_i32_0 : i32, i32
  }
  func.func @transform_13(%arg0: i32) -> (i32, i32) {
    %c0_i32 = arith.constant 0 : i32
    %c0_i32_0 = arith.constant 0 : i32
    %c0_i32_1 = arith.constant 0 : i32
    return %c0_i32, %c0_i32_0 : i32, i32
  }
  func.func @transform_14(%arg0: i32) -> (i32, i32) {
    %c0_i32 = arith.constant 0 : i32
    %c0_i32_0 = arith.constant 0 : i32
    %c0_i32_1 = arith.constant 0 : i32
    return %c0_i32, %c0_i32_0 : i32, i32
  }
  func.func @transform_15(%arg0: i32) -> (i32, i32) {
    %c0_i32 = arith.constant 0 : i32
    %c0_i32_0 = arith.constant 0 : i32
    %c0_i32_1 = arith.constant 0 : i32
    return %c0_i32, %c0_i32_0 : i32, i32
  }
  func.func @transform_16(%arg0: i32) -> (i32, i32) {
    %c0_i32 = arith.constant 0 : i32
    %c0_i32_0 = arith.constant 0 : i32
    %c0_i32_1 = arith.constant 0 : i32
    return %c0_i32, %c0_i32_0 : i32, i32
  }
  func.func @transform_17(%arg0: i32) -> (i32, i32) {
    %c0_i32 = arith.constant 0 : i32
    %c0_i32_0 = arith.constant 0 : i32
    %c0_i32_1 = arith.constant 0 : i32
    return %c0_i32, %c0_i32_0 : i32, i32
  }
  func.func @transform_18(%arg0: i32) -> (i32, i32) {
    %c0_i32 = arith.constant 0 : i32
    %c0_i32_0 = arith.constant 0 : i32
    %c0_i32_1 = arith.constant 0 : i32
    return %c0_i32, %c0_i32_0 : i32, i32
  }
  func.func @transform_19(%arg0: i32) -> (i32, i32) {
    %c0_i32 = arith.constant 0 : i32
    %c0_i32_0 = arith.constant 0 : i32
    %c0_i32_1 = arith.constant 0 : i32
    return %c0_i32, %c0_i32_0 : i32, i32
  }
  func.func @transform_20(%arg0: i32) -> (i32, i32) {
    %c0_i32 = arith.constant 0 : i32
    %c0_i32_0 = arith.constant 0 : i32
    %c0_i32_1 = arith.constant 0 : i32
    return %c0_i32, %c0_i32_0 : i32, i32
  }
  func.func @transform_21(%arg0: i32) -> (i32, i32) {
    %c0_i32 = arith.constant 0 : i32
    %c0_i32_0 = arith.constant 0 : i32
    %c0_i32_1 = arith.constant 0 : i32
    return %c0_i32, %c0_i32_0 : i32, i32
  }
  func.func @transform_22(%arg0: i32) -> (i32, i32) {
    %c0_i32 = arith.constant 0 : i32
    %c0_i32_0 = arith.constant 0 : i32
    %c0_i32_1 = arith.constant 0 : i32
    return %c0_i32, %c0_i32_0 : i32, i32
  }
  func.func @transform_23(%arg0: i32) -> (i32, i32) {
    %c0_i32 = arith.constant 0 : i32
    %c0_i32_0 = arith.constant 0 : i32
    %c0_i32_1 = arith.constant 0 : i32
    return %c0_i32, %c0_i32_0 : i32, i32
  }
  func.func @transform_24(%arg0: i32) -> (i32, i32) {
    %c0_i32 = arith.constant 0 : i32
    %c0_i32_0 = arith.constant 0 : i32
    %c0_i32_1 = arith.constant 0 : i32
    return %c0_i32, %c0_i32_0 : i32, i32
  }
  func.func @transform_25(%arg0: i32) -> (i32, i32) {
    %c0_i32 = arith.constant 0 : i32
    %c0_i32_0 = arith.constant 0 : i32
    %c0_i32_1 = arith.constant 0 : i32
    return %c0_i32, %c0_i32_0 : i32, i32
  }
  func.func @transform_26(%arg0: i32) -> (i32, i32) {
    %c0_i32 = arith.constant 0 : i32
    %c0_i32_0 = arith.constant 0 : i32
    %c0_i32_1 = arith.constant 0 : i32
    return %c0_i32, %c0_i32_0 : i32, i32
  }
  func.func @transform_27(%arg0: i32) -> (i32, i32) {
    %c0_i32 = arith.constant 0 : i32
    %c0_i32_0 = arith.constant 0 : i32
    %c0_i32_1 = arith.constant 0 : i32
    return %c0_i32, %c0_i32_0 : i32, i32
  }
  func.func @transform_28(%arg0: i32) -> (i32, i32) {
    %c0_i32 = arith.constant 0 : i32
    %c0_i32_0 = arith.constant 0 : i32
    %c0_i32_1 = arith.constant 0 : i32
    return %c0_i32, %c0_i32_0 : i32, i32
  }
  func.func @transform_29(%arg0: i32) -> (i32, i32) {
    %c0_i32 = arith.constant 0 : i32
    %c0_i32_0 = arith.constant 0 : i32
    %c0_i32_1 = arith.constant 0 : i32
    return %c0_i32, %c0_i32_0 : i32, i32
  }
  func.func @transform_30(%arg0: i32) -> (i32, i32) {
    %c0_i32 = arith.constant 0 : i32
    %c0_i32_0 = arith.constant 0 : i32
    %c0_i32_1 = arith.constant 0 : i32
    return %c0_i32, %c0_i32_0 : i32, i32
  }
  func.func @transform_31(%arg0: i32) -> (i32, i32) {
    %c0_i32 = arith.constant 0 : i32
    %c0_i32_0 = arith.constant 0 : i32
    %c0_i32_1 = arith.constant 0 : i32
    return %c0_i32, %c0_i32_0 : i32, i32
  }
  func.func @transform_32(%arg0: i32) -> (i32, i32) {
    %c0_i32 = arith.constant 0 : i32
    %c0_i32_0 = arith.constant 0 : i32
    %c0_i32_1 = arith.constant 0 : i32
    return %c0_i32, %c0_i32_0 : i32, i32
  }
  func.func @transform_33(%arg0: i32) -> (i32, i32) {
    %c0_i32 = arith.constant 0 : i32
    %c0_i32_0 = arith.constant 0 : i32
    %c0_i32_1 = arith.constant 0 : i32
    return %c0_i32, %c0_i32_0 : i32, i32
  }
  func.func @transform_34(%arg0: i32) -> (i32, i32, i32) {
    %c0_i32 = arith.constant 0 : i32
    %c0_i32_0 = arith.constant 0 : i32
    %c0_i32_1 = arith.constant 0 : i32
    return %arg0, %c0_i32, %c0_i32_0 : i32, i32, i32
  }
}

</mosaic_0001>

<bundles_post_ra>
// kernel: resnet_forward.3
= control target key start
LH: loop header
LB: loop body
LE: loop exit
PB: predicated region body
PF: predicated region fallthrough
CT: control target
= control target key end

     0   :  { %s1330_s15 = smov 0   ;;  %s1615_s0 = inlined_call_operand.vmem [shape: bf16[2,227,44], index: 0, kind: input, shape index: {}]   ;;  %s1616_s1 = inlined_call_operand.vmem [shape: bf16[2,227,44], index: 1, kind: input, shape index: {}]   ;;  %s1617_s2 = inlined_call_operand.vmem [shape: bf16[44,16], index: 2, kind: input, shape index: {}]   ;;  %s1618_s3 = inlined_call_operand.vmem [shape: f32[1,16], index: 3, kind: input, shape index: {}]   ;;  %s1619_s4 = inlined_call_operand.vmem [shape: f32[2,227,16], index: 4, kind: output, shape index: {}]  }
   0x1 LB: > { %s1008_s16 = sadd.s32 4294967295, %s1301_s15   ;;  %p1012_p0 = scmp.ge.s32.totalorder %s1301_s15, 1  ;;  %s1301_s15 = sphi %s1330_s15, %s14_s15  }
   0x2   : > { %p172_p1 = scmp.lt.s32.totalorder %s1301_s15, 3 }
   0x4   : > { %p173_p2 = pnand %p1012_p0, %p172_p1 }
   0x5   : > { %v1262_v0 = vld [vmem:[%s1617_s2] sm:$0xff] (!%p173_p2)   ;;  %v1303_v1 = vmov (!%p173_p2), 0.0   ;;  %v1263_v2 = vld [vmem:[%s1617_s2 + $0x8] sm:$0xff] (!%p173_p2)   ;;  %v1264_v3 = vld [vmem:[%s1617_s2 + $0x10] sm:$0x3f] (!%p173_p2)   ;;  %p203_p3 = scmp.lt.s32.totalorder (!%p173_p2), %s1008_s16, 1 }
   0x6   : > { %176 = sbr.rel (%p173_p2) target bundleno = 350 (0x15e), region = 36  ;;  %1118 = vmatprep.subr.bf16.mxu0 (!%p173_p2), %v1303_v1  ;;  %1184 = vmatprep.subr.bf16.mxu1 (!%p173_p2), %v1303_v1  ;;  %vm397_vm0 = vcmask (!%p173_p2), 1045504   ;;  %vm1304_vm1 = vmmov (!%p173_p2), 0   ;;  %vm351_vm2 = vcmask (!%p173_p2), 359424   ;;  %v1489_v35 = vld [vmem:[%s1618_s3] ss:$0 sm:$0xff] (!%p173_p2) }
   0x7   : > { %1119 = vmatpush3.bf16.msra.mxu0 (!%p173_p2), %v1262_v0  ;;  %1185 = vmatpush3.bf16.msra.mxu1 (!%p173_p2), %v1262_v0  ;;  %v399_v4 = vsel (!%p173_p2), %vm397_vm0, %v1264_v3, 0  ;;  %vm910_vm3 = vcmask (!%p173_p2), 130048   ;;  %vm939_vm4 = vcmask (!%p173_p2), 124928  }
   0x8   : > { %1120 = vmatprep.subr.bf16.mxu0 (!%p173_p2), %v1303_v1  ;;  %1186 = vmatprep.subr.bf16.mxu1 (!%p173_p2), %v1303_v1 }
   0x9   : > { %1124 = vmatprep.mubr.msk.bf16.mxu0 (!%p173_p2), %vm1304_vm1, %v1303_v1  ;;  %1190 = vmatprep.mubr.msk.bf16.mxu1 (!%p173_p2), %vm1304_vm1, %v1303_v1 }
   0xb   : > { %1121 = vmatpush3.bf16.msra.mxu0 (!%p173_p2), %v1263_v2  ;;  %1187 = vmatpush3.bf16.msra.mxu1 (!%p173_p2), %v1263_v2 }
   0xc   : > { %1122 = vmatprep.subr.bf16.mxu0 (!%p173_p2), %v1303_v1  ;;  %1188 = vmatprep.subr.bf16.mxu1 (!%p173_p2), %v1303_v1 }
   0xd   : > { %s1621_s16 = smov (!%p203_p3, %s1008_s16), 1 }
   0xe   : > { %s1250_s23 = smul.u32 116, %s1621_s16 }
   0xf   : > { %1123 = vmatpush3.bf16.msra.mxu0 %v399_v4  ;;  %1189 = vmatpush3.bf16.msra.mxu1 %v399_v4  ;;  %s1251_s6 = smul.u32 232, %s1621_s16 }
  0x10   : > { %s1363_s26 = scalar_lea.vmem %s1615_s0, %s1250_s23  ;;  %s1368_s29 = scalar_lea.vmem %s1616_s1, %s1250_s23 }
  0x11   : > { %v1265_v5 = vld [vmem:[%s1363_s26] sm:$0xff]   ;;  %v1267_v7 = vld [vmem:[%s1363_s26 + $0x8] sm:$0xff]   ;;  %v1269_v9 = vld [vmem:[%s1363_s26 + $0x10] sm:$0xff]   ;;  %s1499_s9 = scalar_lea.vmem %s1619_s4, %s1251_s6 }
  0x12   : > { %v1266_v6 = vld [vmem:[%s1368_s29] sm:$0xff]   ;;  %1125 = vmatmul.mubr.msk.bf16.vlgmr.msra.gmra.mrb[0].mxu0 %vm351_vm2, %v1265_v5  ;;  %v1268_v8 = vld [vmem:[%s1368_s29 + $0x8] sm:$0xff]   ;;  %v1270_v10 = vld [vmem:[%s1368_s29 + $0x10] sm:$0xff]  }
  0x13   : > { %1191 = vmatmul.mubr.msk.bf16.vlgmr.msra.gmra.mrb[0].mxu1 %vm351_vm2, %v1266_v6  ;;  %1128 = vmatprep.mubr.msk.bf16.mxu0 %vm1304_vm1, %v1303_v1  ;;  %v1271_v11 = vld [vmem:[%s1363_s26 + $0x18] sm:$0xff]   ;;  %v1273_v13 = vld [vmem:[%s1363_s26 + $0x20] sm:$0xff]   ;;  %v1275_v15 = vld [vmem:[%s1363_s26 + $0x28] sm:$0xff]  }
  0x14   : > { %1194 = vmatprep.mubr.msk.bf16.mxu1 %vm1304_vm1, %v1303_v1  ;;  %v1272_v12 = vld [vmem:[%s1368_s29 + $0x18] sm:$0xff]   ;;  %v1274_v14 = vld [vmem:[%s1368_s29 + $0x20] sm:$0xff]   ;;  %v1276_v16 = vld [vmem:[%s1368_s29 + $0x28] sm:$0xff]  }
  0x15   : > { %v1277_v17 = vld [vmem:[%s1363_s26 + $0x30] sm:$0xff]   ;;  %v1279_v19 = vld [vmem:[%s1363_s26 + $0x38] sm:$0xff]   ;;  %v1281_v21 = vld [vmem:[%s1363_s26 + $0x40] sm:$0xff]  }
  0x16   : > { %v1278_v18 = vld [vmem:[%s1368_s29 + $0x30] sm:$0xff]   ;;  %v1280_v20 = vld [vmem:[%s1368_s29 + $0x38] sm:$0xff]   ;;  %v1282_v22 = vld [vmem:[%s1368_s29 + $0x40] sm:$0xff]  }
  0x17   : > { %v1283_v23 = vld [vmem:[%s1363_s26 + $0x48] sm:$0xff]   ;;  %v1285_v25 = vld [vmem:[%s1363_s26 + $0x50] sm:$0xff]   ;;  %v1287_v27 = vld [vmem:[%s1363_s26 + $0x58] sm:$0xff]  }
  0x18   : > { %v1284_v24 = vld [vmem:[%s1368_s29 + $0x48] sm:$0xff]   ;;  %v1286_v26 = vld [vmem:[%s1368_s29 + $0x50] sm:$0xff]   ;;  %v1288_v28 = vld [vmem:[%s1368_s29 + $0x58] sm:$0xff]  }
  0x19   : > { %v1289_v29 = vld [vmem:[%s1363_s26 + $0x60] sm:$0xff]   ;;  %v1291_v31 = vld [vmem:[%s1363_s26 + $0x68] sm:$0xff]   ;;  %v1293_v33 = vld [vmem:[%s1363_s26 + $0x70] ss:$0 sps:$4 sm:$0x33]  }
  0x1a   : > { %1129 = vmatmul.mubr.msk.bf16.gmra.mrb[4].mxu0 %vm351_vm2, %v1267_v7  ;;  %v1290_v30 = vld [vmem:[%s1368_s29 + $0x60] sm:$0xff]   ;;  %v1292_v32 = vld [vmem:[%s1368_s29 + $0x68] sm:$0xff]   ;;  %v1294_v34 = vld [vmem:[%s1368_s29 + $0x70] ss:$0 sps:$4 sm:$0x33]  }
  0x1b   : > { %1195 = vmatmul.mubr.msk.bf16.gmra.mrb[4].mxu1 %vm351_vm2, %v1268_v8  ;;  %1132 = vmatprep.mubr.msk.bf16.mxu0 %vm1304_vm1, %v1303_v1 }
  0x1c   : > { %1198 = vmatprep.mubr.msk.bf16.mxu1 %vm1304_vm1, %v1303_v1 }
  0x22   : > { %1133 = vmatmul.mubr.msk.bf16.gmra.mrb[8].mxu0 %vm351_vm2, %v1269_v9 }
  0x23   : > { %1199 = vmatmul.mubr.msk.bf16.gmra.mrb[8].mxu1 %vm351_vm2, %v1270_v10  ;;  %1136 = vmatprep.mubr.msk.bf16.mxu0 %vm1304_vm1, %v1303_v1 }
  0x24   : > { %1202 = vmatprep.mubr.msk.bf16.mxu1 %vm1304_vm1, %v1303_v1 }
  0x2a   : > { %1137 = vmatmul.mubr.msk.bf16.gmra.mrb[12].mxu0 %vm351_vm2, %v1271_v11 }
  0x2b   : > { %1203 = vmatmul.mubr.msk.bf16.gmra.mrb[12].mxu1 %vm351_vm2, %v1272_v12  ;;  %1140 = vmatprep.mubr.msk.bf16.mxu0 %vm1304_vm1, %v1303_v1 }
  0x2c   : > { %1206 = vmatprep.mubr.msk.bf16.mxu1 %vm1304_vm1, %v1303_v1 }
  0x32   : > { %1141 = vmatmul.mubr.msk.bf16.gmra.mrb[16].mxu0 %vm351_vm2, %v1273_v13 }
  0x33   : > { %1207 = vmatmul.mubr.msk.bf16.gmra.mrb[16].mxu1 %vm351_vm2, %v1274_v14  ;;  %1144 = vmatprep.mubr.msk.bf16.mxu0 %vm1304_vm1, %v1303_v1 }
  0x34   : > { %1210 = vmatprep.mubr.msk.bf16.mxu1 %vm1304_vm1, %v1303_v1 }
  0x3a   : > { %1145 = vmatmul.mubr.msk.bf16.gmra.mrb[20].mxu0 %vm351_vm2, %v1275_v15 }
  0x3b   : > { %1211 = vmatmul.mubr.msk.bf16.gmra.mrb[20].mxu1 %vm351_vm2, %v1276_v16  ;;  %1148 = vmatprep.mubr.msk.bf16.mxu0 %vm1304_vm1, %v1303_v1 }
  0x3c   : > { %1214 = vmatprep.mubr.msk.bf16.mxu1 %vm1304_vm1, %v1303_v1 }
  0x42   : > { %1149 = vmatmul.mubr.msk.bf16.gmra.mrb[24].mxu0 %vm351_vm2, %v1277_v17 }
  0x43   : > { %1215 = vmatmul.mubr.msk.bf16.gmra.mrb[24].mxu1 %vm351_vm2, %v1278_v18  ;;  %1152 = vmatprep.mubr.msk.bf16.mxu0 %vm1304_vm1, %v1303_v1 }
  0x44   : > { %1218 = vmatprep.mubr.msk.bf16.mxu1 %vm1304_vm1, %v1303_v1 }
  0x4a   : > { %1153 = vmatmul.mubr.msk.bf16.gmra.mrb[28].mxu0 %vm351_vm2, %v1279_v19 }
  0x4b   : > { %1219 = vmatmul.mubr.msk.bf16.gmra.mrb[28].mxu1 %vm351_vm2, %v1280_v20  ;;  %1156 = vmatprep.mubr.msk.bf16.mxu0 %vm1304_vm1, %v1303_v1 }
  0x4c   : > { %1222 = vmatprep.mubr.msk.bf16.mxu1 %vm1304_vm1, %v1303_v1 }
  0x52   : > { %1157 = vmatmul.mubr.msk.bf16.gmra.mrb[32].mxu0 %vm351_vm2, %v1281_v21 }
  0x53   : > { %1223 = vmatmul.mubr.msk.bf16.gmra.mrb[32].mxu1 %vm351_vm2, %v1282_v22  ;;  %1160 = vmatprep.mubr.msk.bf16.mxu0 %vm1304_vm1, %v1303_v1 }
  0x54   : > { %1226 = vmatprep.mubr.msk.bf16.mxu1 %vm1304_vm1, %v1303_v1 }
  0x5a   : > { %1161 = vmatmul.mubr.msk.bf16.gmra.mrb[36].mxu0 %vm351_vm2, %v1283_v23 }
  0x5b   : > { %1227 = vmatmul.mubr.msk.bf16.gmra.mrb[36].mxu1 %vm351_vm2, %v1284_v24  ;;  %1164 = vmatprep.mubr.msk.bf16.mxu0 %vm1304_vm1, %v1303_v1 }
  0x5c   : > { %1230 = vmatprep.mubr.msk.bf16.mxu1 %vm1304_vm1, %v1303_v1 }
  0x62   : > { %1165 = vmatmul.mubr.msk.bf16.gmra.mrb[40].mxu0 %vm351_vm2, %v1285_v25 }
  0x63   : > { %1231 = vmatmul.mubr.msk.bf16.gmra.mrb[40].mxu1 %vm351_vm2, %v1286_v26  ;;  %1168 = vmatprep.mubr.msk.bf16.mxu0 %vm1304_vm1, %v1303_v1 }
  0x64   : > { %1234 = vmatprep.mubr.msk.bf16.mxu1 %vm1304_vm1, %v1303_v1 }
  0x6a   : > { %1169 = vmatmul.mubr.msk.bf16.gmra.mrb[44].mxu0 %vm351_vm2, %v1287_v27 }
  0x6b   : > { %1235 = vmatmul.mubr.msk.bf16.gmra.mrb[44].mxu1 %vm351_vm2, %v1288_v28  ;;  %1172 = vmatprep.mubr.msk.bf16.mxu0 %vm1304_vm1, %v1303_v1 }
  0x6c   : > { %1238 = vmatprep.mubr.msk.bf16.mxu1 %vm1304_vm1, %v1303_v1 }
  0x72   : > { %1173 = vmatmul.mubr.msk.bf16.gmra.mrb[48].mxu0 %vm351_vm2, %v1289_v29 }
  0x73   : > { %1239 = vmatmul.mubr.msk.bf16.gmra.mrb[48].mxu1 %vm351_vm2, %v1290_v30  ;;  %1176 = vmatprep.mubr.msk.bf16.mxu0 %vm1304_vm1, %v1303_v1 }
  0x74   : > { %1242 = vmatprep.mubr.msk.bf16.mxu1 %vm1304_vm1, %v1303_v1 }
  0x7a   : > { %1177 = vmatmul.mubr.msk.bf16.gmra.mrb[52].mxu0 %vm351_vm2, %v1291_v31 }
  0x7b   : > { %1243 = vmatmul.mubr.msk.bf16.gmra.mrb[52].mxu1 %vm351_vm2, %v1292_v32  ;;  %1180 = vmatprep.mubr.msk.bf16.mxu0 %vm1304_vm1, %v1303_v1 }
  0x7c   : > { %1246 = vmatprep.mubr.msk.bf16.mxu1 %vm1304_vm1, %v1303_v1 }
  0x82   : > { %1181 = vmatmul.mubr.msk.bf16.gmra.mrb[56].mxu0 %vm351_vm2, %v1293_v33 }
  0x83   : > { %1247 = vmatmul.mubr.msk.bf16.gmra.mrb[56].mxu1 %vm351_vm2, %v1294_v34 }
  0xe5   : > { %v435_v36 = vpop.f32.mrb[0].mxu0 }
  0xe6   : > { %v734_v37 = vpop.f32.mrb[0].mxu1  ;;  %v436_v38 = vadd.f32 %v1489_v35, %v435_v36  ;;  %v1126_v40 = vpop.f32.mrb[1].mxu0 }
  0xe7   : > { %v735_v39 = vadd.f32 %v1489_v35, %v734_v37  ;;  %v1192_v41 = vpop.f32.mrb[1].mxu1  ;;  %v438_v42 = vpop.f32.mrb[2].mxu0 }
  0xe8   : > { %v737_v43 = vpop.f32.mrb[2].mxu1  ;;  %v439_v45 = vadd.f32 %v1489_v35, %v438_v42  ;;  %v1127_v47 = vpop.f32.mrb[3].mxu0 }
  0xe9   : > { %v852_v44 = vmax.f32 %v436_v38, %v735_v39  ;;  %v738_v46 = vadd.f32 %v1489_v35, %v737_v43  ;;  %v1193_v48 = vpop.f32.mrb[3].mxu1 }
  0xeb   : > { %v881_v49 = vmax.f32 %v852_v44, 0.0  ;;  %v853_v50 = vmax.f32 %v439_v45, %v738_v46 }
  0xed   : > { %911 = vst.msk [vmem:[%s1499_s9] sm:$0xff] %vm910_vm3, %v881_v49  ;;  %v882_v51 = vmax.f32 %v853_v50, 0.0  ;;  %v443_v52 = vpop.f32.mrb[4].mxu0 }
  0xee   : > { %v742_v53 = vpop.f32.mrb[4].mxu1  ;;  %v444_v54 = vadd.f32 %v1489_v35, %v443_v52  ;;  %v1130_v56 = vpop.f32.mrb[5].mxu0 }
  0xef   : > { %912 = vst.msk [vmem:[%s1499_s9 + $0x8] sm:$0xff] %vm910_vm3, %v882_v51  ;;  %v743_v55 = vadd.f32 %v1489_v35, %v742_v53  ;;  %v1196_v57 = vpop.f32.mrb[5].mxu1  ;;  %v446_v58 = vpop.f32.mrb[6].mxu0 }
  0xf0   : > { %v745_v59 = vpop.f32.mrb[6].mxu1  ;;  %v447_v61 = vadd.f32 %v1489_v35, %v446_v58  ;;  %v1131_v63 = vpop.f32.mrb[7].mxu0 }
  0xf1   : > { %v854_v60 = vmax.f32 %v444_v54, %v743_v55  ;;  %v746_v62 = vadd.f32 %v1489_v35, %v745_v59  ;;  %v1197_v0 = vpop.f32.mrb[7].mxu1 }
  0xf3   : > { %v883_v1 = vmax.f32 %v854_v60, 0.0  ;;  %v855_v2 = vmax.f32 %v447_v61, %v746_v62 }
  0xf5   : > { %913 = vst.msk [vmem:[%s1499_s9 + $0x10] sm:$0xff] %vm910_vm3, %v883_v1  ;;  %v884_v3 = vmax.f32 %v855_v2, 0.0  ;;  %v451_v4 = vpop.f32.mrb[8].mxu0 }
  0xf6   : > { %v750_v5 = vpop.f32.mrb[8].mxu1  ;;  %v452_v6 = vadd.f32 %v1489_v35, %v451_v4  ;;  %v1134_v8 = vpop.f32.mrb[9].mxu0 }
  0xf7   : > { %914 = vst.msk [vmem:[%s1499_s9 + $0x18] sm:$0xff] %vm910_vm3, %v884_v3  ;;  %v751_v7 = vadd.f32 %v1489_v35, %v750_v5  ;;  %v1200_v9 = vpop.f32.mrb[9].mxu1  ;;  %v454_v10 = vpop.f32.mrb[10].mxu0 }
  0xf8   : > { %v753_v11 = vpop.f32.mrb[10].mxu1  ;;  %v455_v13 = vadd.f32 %v1489_v35, %v454_v10  ;;  %v1135_v15 = vpop.f32.mrb[11].mxu0 }
  0xf9   : > { %v856_v12 = vmax.f32 %v452_v6, %v751_v7  ;;  %v754_v14 = vadd.f32 %v1489_v35, %v753_v11  ;;  %v1201_v16 = vpop.f32.mrb[11].mxu1 }
  0xfb   : > { %v885_v17 = vmax.f32 %v856_v12, 0.0  ;;  %v857_v18 = vmax.f32 %v455_v13, %v754_v14 }
  0xfd   : > { %915 = vst.msk [vmem:[%s1499_s9 + $0x20] sm:$0xff] %vm910_vm3, %v885_v17  ;;  %v886_v19 = vmax.f32 %v857_v18, 0.0  ;;  %v459_v20 = vpop.f32.mrb[12].mxu0 }
  0xfe   : > { %v758_v21 = vpop.f32.mrb[12].mxu1  ;;  %v460_v22 = vadd.f32 %v1489_v35, %v459_v20  ;;  %v1138_v24 = vpop.f32.mrb[13].mxu0 }
  0xff   : > { %916 = vst.msk [vmem:[%s1499_s9 + $0x28] sm:$0xff] %vm910_vm3, %v886_v19  ;;  %v759_v23 = vadd.f32 %v1489_v35, %v758_v21  ;;  %v1204_v25 = vpop.f32.mrb[13].mxu1  ;;  %v462_v26 = vpop.f32.mrb[14].mxu0 }
 0x100   : > { %v761_v27 = vpop.f32.mrb[14].mxu1  ;;  %v463_v29 = vadd.f32 %v1489_v35, %v462_v26  ;;  %v1139_v31 = vpop.f32.mrb[15].mxu0 }
 0x101   : > { %v858_v28 = vmax.f32 %v460_v22, %v759_v23  ;;  %v762_v30 = vadd.f32 %v1489_v35, %v761_v27  ;;  %v1205_v32 = vpop.f32.mrb[15].mxu1 }
 0x103   : > { %v887_v33 = vmax.f32 %v858_v28, 0.0  ;;  %v859_v34 = vmax.f32 %v463_v29, %v762_v30 }
 0x105   : > { %917 = vst.msk [vmem:[%s1499_s9 + $0x30] sm:$0xff] %vm910_vm3, %v887_v33  ;;  %v888_v36 = vmax.f32 %v859_v34, 0.0  ;;  %v467_v37 = vpop.f32.mrb[16].mxu0 }
 0x106   : > { %v766_v38 = vpop.f32.mrb[16].mxu1  ;;  %v468_v39 = vadd.f32 %v1489_v35, %v467_v37  ;;  %v1142_v41 = vpop.f32.mrb[17].mxu0 }
 0x107   : > { %918 = vst.msk [vmem:[%s1499_s9 + $0x38] sm:$0xff] %vm910_vm3, %v888_v36  ;;  %v767_v40 = vadd.f32 %v1489_v35, %v766_v38  ;;  %v1208_v42 = vpop.f32.mrb[17].mxu1  ;;  %v470_v43 = vpop.f32.mrb[18].mxu0 }
 0x108   : > { %v769_v44 = vpop.f32.mrb[18].mxu1  ;;  %v471_v46 = vadd.f32 %v1489_v35, %v470_v43  ;;  %v1143_v48 = vpop.f32.mrb[19].mxu0 }
 0x109   : > { %v860_v45 = vmax.f32 %v468_v39, %v767_v40  ;;  %v770_v47 = vadd.f32 %v1489_v35, %v769_v44  ;;  %v1209_v49 = vpop.f32.mrb[19].mxu1 }
 0x10b   : > { %v889_v50 = vmax.f32 %v860_v45, 0.0  ;;  %v861_v51 = vmax.f32 %v471_v46, %v770_v47 }
 0x10d   : > { %919 = vst.msk [vmem:[%s1499_s9 + $0x40] sm:$0xff] %vm910_vm3, %v889_v50  ;;  %v890_v52 = vmax.f32 %v861_v51, 0.0  ;;  %v475_v53 = vpop.f32.mrb[20].mxu0 }
 0x10e   : > { %v774_v54 = vpop.f32.mrb[20].mxu1  ;;  %v476_v55 = vadd.f32 %v1489_v35, %v475_v53  ;;  %v1146_v57 = vpop.f32.mrb[21].mxu0 }
 0x10f   : > { %920 = vst.msk [vmem:[%s1499_s9 + $0x48] sm:$0xff] %vm910_vm3, %v890_v52  ;;  %v775_v56 = vadd.f32 %v1489_v35, %v774_v54  ;;  %v1212_v58 = vpop.f32.mrb[21].mxu1  ;;  %v478_v59 = vpop.f32.mrb[22].mxu0 }
 0x110   : > { %v777_v60 = vpop.f32.mrb[22].mxu1  ;;  %v479_v62 = vadd.f32 %v1489_v35, %v478_v59  ;;  %v1147_v0 = vpop.f32.mrb[23].mxu0 }
 0x111   : > { %v862_v61 = vmax.f32 %v476_v55, %v775_v56  ;;  %v778_v63 = vadd.f32 %v1489_v35, %v777_v60  ;;  %v1213_v1 = vpop.f32.mrb[23].mxu1 }
 0x113   : > { %v891_v2 = vmax.f32 %v862_v61, 0.0  ;;  %v863_v3 = vmax.f32 %v479_v62, %v778_v63 }
 0x115   : > { %921 = vst.msk [vmem:[%s1499_s9 + $0x50] sm:$0xff] %vm910_vm3, %v891_v2  ;;  %v892_v4 = vmax.f32 %v863_v3, 0.0  ;;  %v483_v5 = vpop.f32.mrb[24].mxu0 }
 0x116   : > { %v782_v6 = vpop.f32.mrb[24].mxu1  ;;  %v484_v7 = vadd.f32 %v1489_v35, %v483_v5  ;;  %v1150_v9 = vpop.f32.mrb[25].mxu0 }
 0x117   : > { %922 = vst.msk [vmem:[%s1499_s9 + $0x58] sm:$0xff] %vm910_vm3, %v892_v4  ;;  %v783_v8 = vadd.f32 %v1489_v35, %v782_v6  ;;  %v1216_v10 = vpop.f32.mrb[25].mxu1  ;;  %v486_v11 = vpop.f32.mrb[26].mxu0 }
 0x118   : > { %v785_v12 = vpop.f32.mrb[26].mxu1  ;;  %v487_v14 = vadd.f32 %v1489_v35, %v486_v11  ;;  %v1151_v16 = vpop.f32.mrb[27].mxu0 }
 0x119   : > { %v864_v13 = vmax.f32 %v484_v7, %v783_v8  ;;  %v786_v15 = vadd.f32 %v1489_v35, %v785_v12  ;;  %v1217_v17 = vpop.f32.mrb[27].mxu1 }
 0x11b   : > { %v893_v18 = vmax.f32 %v864_v13, 0.0  ;;  %v865_v19 = vmax.f32 %v487_v14, %v786_v15 }
 0x11d   : > { %923 = vst.msk [vmem:[%s1499_s9 + $0x60] sm:$0xff] %vm910_vm3, %v893_v18  ;;  %v894_v20 = vmax.f32 %v865_v19, 0.0  ;;  %v491_v21 = vpop.f32.mrb[28].mxu0 }
 0x11e   : > { %v790_v22 = vpop.f32.mrb[28].mxu1  ;;  %v492_v23 = vadd.f32 %v1489_v35, %v491_v21  ;;  %v1154_v25 = vpop.f32.mrb[29].mxu0 }
 0x11f   : > { %924 = vst.msk [vmem:[%s1499_s9 + $0x68] sm:$0xff] %vm910_vm3, %v894_v20  ;;  %v791_v24 = vadd.f32 %v1489_v35, %v790_v22  ;;  %v1220_v26 = vpop.f32.mrb[29].mxu1  ;;  %v494_v27 = vpop.f32.mrb[30].mxu0 }
 0x120   : > { %v793_v28 = vpop.f32.mrb[30].mxu1  ;;  %v495_v30 = vadd.f32 %v1489_v35, %v494_v27  ;;  %v1155_v32 = vpop.f32.mrb[31].mxu0 }
 0x121   : > { %v866_v29 = vmax.f32 %v492_v23, %v791_v24  ;;  %v794_v31 = vadd.f32 %v1489_v35, %v793_v28  ;;  %v1221_v33 = vpop.f32.mrb[31].mxu1 }
 0x123   : > { %v895_v34 = vmax.f32 %v866_v29, 0.0  ;;  %v867_v36 = vmax.f32 %v495_v30, %v794_v31 }
 0x125   : > { %925 = vst.msk [vmem:[%s1499_s9 + $0x70] sm:$0xff] %vm910_vm3, %v895_v34  ;;  %v896_v37 = vmax.f32 %v867_v36, 0.0  ;;  %v499_v38 = vpop.f32.mrb[32].mxu0 }
 0x126   : > { %v798_v39 = vpop.f32.mrb[32].mxu1  ;;  %v500_v40 = vadd.f32 %v1489_v35, %v499_v38  ;;  %v1158_v42 = vpop.f32.mrb[33].mxu0 }
 0x127   : > { %926 = vst.msk [vmem:[%s1499_s9 + $0x78] sm:$0xff] %vm910_vm3, %v896_v37  ;;  %v799_v41 = vadd.f32 %v1489_v35, %v798_v39  ;;  %v1224_v43 = vpop.f32.mrb[33].mxu1  ;;  %v502_v44 = vpop.f32.mrb[34].mxu0 }
 0x128   : > { %v801_v45 = vpop.f32.mrb[34].mxu1  ;;  %v503_v47 = vadd.f32 %v1489_v35, %v502_v44  ;;  %v1159_v49 = vpop.f32.mrb[35].mxu0 }
 0x129   : > { %v868_v46 = vmax.f32 %v500_v40, %v799_v41  ;;  %v802_v48 = vadd.f32 %v1489_v35, %v801_v45  ;;  %v1225_v50 = vpop.f32.mrb[35].mxu1 }
 0x12b   : > { %v897_v51 = vmax.f32 %v868_v46, 0.0  ;;  %v869_v52 = vmax.f32 %v503_v47, %v802_v48 }
 0x12d   : > { %927 = vst.msk [vmem:[%s1499_s9 + $0x80] sm:$0xff] %vm910_vm3, %v897_v51  ;;  %v898_v53 = vmax.f32 %v869_v52, 0.0  ;;  %v507_v54 = vpop.f32.mrb[36].mxu0 }
 0x12e   : > { %v806_v55 = vpop.f32.mrb[36].mxu1  ;;  %v508_v56 = vadd.f32 %v1489_v35, %v507_v54  ;;  %v1162_v58 = vpop.f32.mrb[37].mxu0 }
 0x12f   : > { %928 = vst.msk [vmem:[%s1499_s9 + $0x88] sm:$0xff] %vm910_vm3, %v898_v53  ;;  %v807_v57 = vadd.f32 %v1489_v35, %v806_v55  ;;  %v1228_v59 = vpop.f32.mrb[37].mxu1  ;;  %v510_v60 = vpop.f32.mrb[38].mxu0 }
 0x130   : > { %v809_v61 = vpop.f32.mrb[38].mxu1  ;;  %v511_v63 = vadd.f32 %v1489_v35, %v510_v60  ;;  %v1163_v1 = vpop.f32.mrb[39].mxu0 }
 0x131   : > { %v870_v62 = vmax.f32 %v508_v56, %v807_v57  ;;  %v810_v0 = vadd.f32 %v1489_v35, %v809_v61  ;;  %v1229_v2 = vpop.f32.mrb[39].mxu1 }
 0x133   : > { %v899_v3 = vmax.f32 %v870_v62, 0.0  ;;  %v871_v4 = vmax.f32 %v511_v63, %v810_v0 }
 0x135   : > { %929 = vst.msk [vmem:[%s1499_s9 + $0x90] sm:$0xff] %vm910_vm3, %v899_v3  ;;  %v900_v5 = vmax.f32 %v871_v4, 0.0  ;;  %v515_v6 = vpop.f32.mrb[40].mxu0 }
 0x136   : > { %v814_v7 = vpop.f32.mrb[40].mxu1  ;;  %v516_v8 = vadd.f32 %v1489_v35, %v515_v6  ;;  %v1166_v10 = vpop.f32.mrb[41].mxu0 }
 0x137   : > { %930 = vst.msk [vmem:[%s1499_s9 + $0x98] sm:$0xff] %vm910_vm3, %v900_v5  ;;  %v815_v9 = vadd.f32 %v1489_v35, %v814_v7  ;;  %v1232_v11 = vpop.f32.mrb[41].mxu1  ;;  %v518_v12 = vpop.f32.mrb[42].mxu0 }
 0x138   : > { %v817_v13 = vpop.f32.mrb[42].mxu1  ;;  %v519_v15 = vadd.f32 %v1489_v35, %v518_v12  ;;  %v1167_v17 = vpop.f32.mrb[43].mxu0 }
 0x139   : > { %v872_v14 = vmax.f32 %v516_v8, %v815_v9  ;;  %v818_v16 = vadd.f32 %v1489_v35, %v817_v13  ;;  %v1233_v18 = vpop.f32.mrb[43].mxu1 }
 0x13b   : > { %v901_v19 = vmax.f32 %v872_v14, 0.0  ;;  %v873_v20 = vmax.f32 %v519_v15, %v818_v16 }
 0x13d   : > { %931 = vst.msk [vmem:[%s1499_s9 + $0xa0] sm:$0xff] %vm910_vm3, %v901_v19  ;;  %v902_v21 = vmax.f32 %v873_v20, 0.0  ;;  %v523_v22 = vpop.f32.mrb[44].mxu0 }
 0x13e   : > { %v822_v23 = vpop.f32.mrb[44].mxu1  ;;  %v524_v24 = vadd.f32 %v1489_v35, %v523_v22  ;;  %v1170_v26 = vpop.f32.mrb[45].mxu0 }
 0x13f   : > { %932 = vst.msk [vmem:[%s1499_s9 + $0xa8] sm:$0xff] %vm910_vm3, %v902_v21  ;;  %v823_v25 = vadd.f32 %v1489_v35, %v822_v23  ;;  %v1236_v27 = vpop.f32.mrb[45].mxu1  ;;  %v526_v28 = vpop.f32.mrb[46].mxu0 }
 0x140   : > { %v825_v29 = vpop.f32.mrb[46].mxu1  ;;  %v527_v31 = vadd.f32 %v1489_v35, %v526_v28  ;;  %v1171_v33 = vpop.f32.mrb[47].mxu0 }
 0x141   : > { %v874_v30 = vmax.f32 %v524_v24, %v823_v25  ;;  %v826_v32 = vadd.f32 %v1489_v35, %v825_v29  ;;  %v1237_v34 = vpop.f32.mrb[47].mxu1 }
 0x143   : > { %v903_v36 = vmax.f32 %v874_v30, 0.0  ;;  %v875_v37 = vmax.f32 %v527_v31, %v826_v32 }
 0x145   : > { %933 = vst.msk [vmem:[%s1499_s9 + $0xb0] sm:$0xff] %vm910_vm3, %v903_v36  ;;  %v904_v38 = vmax.f32 %v875_v37, 0.0  ;;  %v531_v39 = vpop.f32.mrb[48].mxu0 }
 0x146   : > { %v830_v40 = vpop.f32.mrb[48].mxu1  ;;  %v532_v41 = vadd.f32 %v1489_v35, %v531_v39  ;;  %v1174_v43 = vpop.f32.mrb[49].mxu0 }
 0x147   : > { %934 = vst.msk [vmem:[%s1499_s9 + $0xb8] sm:$0xff] %vm910_vm3, %v904_v38  ;;  %v831_v42 = vadd.f32 %v1489_v35, %v830_v40  ;;  %v1240_v44 = vpop.f32.mrb[49].mxu1  ;;  %v534_v45 = vpop.f32.mrb[50].mxu0 }
 0x148   : > { %v833_v46 = vpop.f32.mrb[50].mxu1  ;;  %v535_v48 = vadd.f32 %v1489_v35, %v534_v45  ;;  %v1175_v50 = vpop.f32.mrb[51].mxu0 }
 0x149   : > { %v876_v47 = vmax.f32 %v532_v41, %v831_v42  ;;  %v834_v49 = vadd.f32 %v1489_v35, %v833_v46  ;;  %v1241_v51 = vpop.f32.mrb[51].mxu1 }
 0x14b   : > { %v905_v52 = vmax.f32 %v876_v47, 0.0  ;;  %v877_v53 = vmax.f32 %v535_v48, %v834_v49 }
 0x14d   : > { %935 = vst.msk [vmem:[%s1499_s9 + $0xc0] sm:$0xff] %vm910_vm3, %v905_v52  ;;  %v906_v54 = vmax.f32 %v877_v53, 0.0  ;;  %v539_v55 = vpop.f32.mrb[52].mxu0 }
 0x14e   : > { %v838_v56 = vpop.f32.mrb[52].mxu1  ;;  %v540_v57 = vadd.f32 %v1489_v35, %v539_v55  ;;  %v1178_v59 = vpop.f32.mrb[53].mxu0 }
 0x14f   : > { %936 = vst.msk [vmem:[%s1499_s9 + $0xc8] sm:$0xff] %vm910_vm3, %v906_v54  ;;  %v839_v58 = vadd.f32 %v1489_v35, %v838_v56  ;;  %v1244_v60 = vpop.f32.mrb[53].mxu1  ;;  %v542_v61 = vpop.f32.mrb[54].mxu0 }
 0x150   : > { %v841_v62 = vpop.f32.mrb[54].mxu1  ;;  %v543_v0 = vadd.f32 %v1489_v35, %v542_v61  ;;  %v1179_v2 = vpop.f32.mrb[55].mxu0 }
 0x151   : > { %v878_v63 = vmax.f32 %v540_v57, %v839_v58  ;;  %v842_v1 = vadd.f32 %v1489_v35, %v841_v62  ;;  %v1245_v3 = vpop.f32.mrb[55].mxu1 }
 0x153   : > { %v907_v4 = vmax.f32 %v878_v63, 0.0  ;;  %v879_v5 = vmax.f32 %v543_v0, %v842_v1 }
 0x155   : > { %937 = vst.msk [vmem:[%s1499_s9 + $0xd0] sm:$0xff] %vm910_vm3, %v907_v4  ;;  %v908_v6 = vmax.f32 %v879_v5, 0.0  ;;  %v547_v7 = vpop.f32.mrb[56].mxu0 }
 0x156   : > { %v846_v8 = vpop.f32.mrb[56].mxu1  ;;  %v548_v9 = vadd.f32 %v1489_v35, %v547_v7  ;;  %v1182_v11 = vpop.f32.mrb[57].mxu0 }
 0x157   : > { %938 = vst.msk [vmem:[%s1499_s9 + $0xd8] sm:$0xff] %vm910_vm3, %v908_v6  ;;  %v847_v10 = vadd.f32 %v1489_v35, %v846_v8  ;;  %v1248_v12 = vpop.f32.mrb[57].mxu1  ;;  %v550_v13 = vpop.f32.mrb[58].mxu0 }
 0x158   : > { %v849_v14 = vpop.f32.mrb[58].mxu1  ;;  %v1183_v16 = vpop.f32.mrb[59].mxu0 }
 0x159   : > { %v880_v15 = vmax.f32 %v548_v9, %v847_v10  ;;  %v1249_v17 = vpop.f32.mrb[59].mxu1 }
 0x15b   : > { %v909_v18 = vmax.f32 %v880_v15, 0.0 }
 0x15d   : > { %940 = vst.msk [vmem:[%s1499_s9 + $0xe0] sm:$0x7] %vm939_vm4, %v909_v18 }
 0x15e PF: > { %s14_s15 = sadd.s32 1, %s1301_s15  }
 0x15f   : > { %p11_p4 = scmp.ge.s32.totalorder %s14_s15, 4  }
 0x161   :  { %13 = sbr.rel (!%p11_p4) target bundleno = 1 (0x1), region = 69 }

// kernel: resnet_forward.4
= control target key start
LH: loop header
LB: loop body
LE: loop exit
PB: predicated region body
PF: predicated region fallthrough
CT: control target
= control target key end

     0   :  { %s748_s15 = smov 0   ;;  %s833_s0 = inlined_call_operand.vmem [shape: bf16[2,58,112], index: 0, kind: input, shape index: {}]   ;;  %s834_s1 = inlined_call_operand.vmem [shape: bf16[2,58,112], index: 1, kind: input, shape index: {}]   ;;  %s835_s2 = inlined_call_operand.vmem [shape: bf16[112,16], index: 2, kind: input, shape index: {}]   ;;  %s836_s3 = inlined_call_operand.vmem [shape: f32[1,16], index: 3, kind: input, shape index: {}]   ;;  %s837_s4 = inlined_call_operand.vmem [shape: f32[2,58,16], index: 4, kind: output, shape index: {}]  }
   0x1 LB: > { %s586_s16 = sadd.s32 4294967295, %s721_s15   ;;  %p590_p0 = scmp.ge.s32.totalorder %s721_s15, 1  ;;  %s721_s15 = sphi %s748_s15, %s14_s15  }
   0x2   : > { %p172_p1 = scmp.lt.s32.totalorder %s721_s15, 3 }
   0x4   : > { %p173_p2 = pnand %p590_p0, %p172_p1 }
   0x5   : > { %v700_v0 = vld [vmem:[%s835_s2] sm:$0xff] (!%p173_p2)   ;;  %p203_p3 = scmp.lt.s32.totalorder (!%p173_p2), %s586_s16, 1  ;;  %v701_v1 = vld [vmem:[%s835_s2 + $0x8] sm:$0xff] (!%p173_p2)   ;;  %v702_v2 = vld [vmem:[%s835_s2 + $0x10] sm:$0xff] (!%p173_p2)   ;;  %vm310_vm0 = vcmask (!%p173_p2), 916480   ;;  %vm509_vm1 = vcmask (!%p173_p2), 130048  }
   0x6   : > { %176 = sbr.rel (%p173_p2) target bundleno = 264 (0x108), region = 36  ;;  %648 = vmatprep.subr.bf16.mxu0 (!%p173_p2), %v700_v0  ;;  %670 = vmatprep.subr.bf16.mxu1 (!%p173_p2), %v700_v0  ;;  %v703_v3 = vld [vmem:[%s835_s2 + $0x18] sm:$0xff] (!%p173_p2)   ;;  %v704_v6 = vld [vmem:[%s835_s2 + $0x20] sm:$0xff] (!%p173_p2)   ;;  %v705_v7 = vld [vmem:[%s835_s2 + $0x28] sm:$0xff] (!%p173_p2)   ;;  %vm517_vm2 = vcmask (!%p173_p2), 123904  }
   0x7   : > { %649 = vmatpush3.bf16.msra.mxu0 (!%p173_p2), %v700_v0  ;;  %671 = vmatpush3.bf16.msra.mxu1 (!%p173_p2), %v700_v0  ;;  %v706_v8 = vld [vmem:[%s835_s2 + $0x30] sm:$0xff] (!%p173_p2)   ;;  %v597_v15 = vld [vmem:[%s836_s3] ss:$0 sm:$0xff] (!%p173_p2) }
   0x8   : > { %650 = vmatprep.subr.bf16.mxu0 (!%p173_p2), %v701_v1  ;;  %672 = vmatprep.subr.bf16.mxu1 (!%p173_p2), %v701_v1 }
   0xb   : > { %651 = vmatpush3.bf16.msra.mxu0 (!%p173_p2), %v701_v1  ;;  %673 = vmatpush3.bf16.msra.mxu1 (!%p173_p2), %v701_v1 }
   0xc   : > { %652 = vmatprep.subr.bf16.mxu0 (!%p173_p2), %v702_v2  ;;  %674 = vmatprep.subr.bf16.mxu1 (!%p173_p2), %v702_v2 }
   0xd   : > { %s839_s16 = smov (!%p203_p3, %s586_s16), 1 }
   0xe   : > { %s623_s23 = sshll.u32 %s839_s16, 5  ;;  %s625_s14 = sshll.u32 %s839_s16, 6 }
   0xf   : > { %s771_s26 = scalar_lea.vmem %s833_s0, %s623_s23  ;;  %s779_s5 = scalar_lea.vmem %s834_s1, %s623_s23  ;;  %653 = vmatpush3.bf16.msra.mxu0 %v702_v2  ;;  %675 = vmatpush3.bf16.msra.mxu1 %v702_v2 }
  0x10   : > { %v707_v4 = vld [vmem:[%s771_s26] sm:$0xff]   ;;  %654 = vmatprep.subr.bf16.mxu0 %v703_v3  ;;  %676 = vmatprep.subr.bf16.mxu1 %v703_v3  ;;  %v709_v9 = vld [vmem:[%s771_s26 + $0x8] sm:$0xff]   ;;  %v711_v11 = vld [vmem:[%s771_s26 + $0x10] sm:$0xff]   ;;  %s813_s19 = scalar_lea.vmem %s837_s4, %s625_s14 }
  0x11   : > { %v708_v5 = vld [vmem:[%s779_s5] sm:$0xff]   ;;  %662 = vmatprep.mubr.msk.bf16.mxu0 %vm310_vm0, %v707_v4  ;;  %v710_v10 = vld [vmem:[%s779_s5 + $0x8] sm:$0xff]   ;;  %v712_v12 = vld [vmem:[%s779_s5 + $0x10] sm:$0xff]  }
  0x12   : > { %684 = vmatprep.mubr.msk.bf16.mxu1 %vm310_vm0, %v708_v5  ;;  %v713_v13 = vld [vmem:[%s771_s26 + $0x18] sm:$0x1f]  }
  0x13   : > { %655 = vmatpush3.bf16.msra.mxu0 %v703_v3  ;;  %677 = vmatpush3.bf16.msra.mxu1 %v703_v3  ;;  %v714_v14 = vld [vmem:[%s779_s5 + $0x18] sm:$0x1f]  }
  0x14   : > { %656 = vmatprep.subr.bf16.mxu0 %v704_v6  ;;  %678 = vmatprep.subr.bf16.mxu1 %v704_v6 }
  0x17   : > { %657 = vmatpush3.bf16.msra.mxu0 %v704_v6  ;;  %679 = vmatpush3.bf16.msra.mxu1 %v704_v6 }
  0x18   : > { %658 = vmatprep.subr.bf16.mxu0 %v705_v7  ;;  %680 = vmatprep.subr.bf16.mxu1 %v705_v7 }
  0x1b   : > { %659 = vmatpush3.bf16.msra.mxu0 %v705_v7  ;;  %681 = vmatpush3.bf16.msra.mxu1 %v705_v7 }
  0x1c   : > { %660 = vmatprep.subr.bf16.mxu0 %v706_v8  ;;  %682 = vmatprep.subr.bf16.mxu1 %v706_v8 }
  0x1f   : > { %661 = vmatpush3.bf16.msra.mxu0 %v706_v8  ;;  %683 = vmatpush3.bf16.msra.mxu1 %v706_v8 }
  0x22   : > { %663 = vmatmul.mubr.msk.bf16.vlgmr.msra.gmra.mrb[0].mxu0 %vm310_vm0, %v709_v9  ;;  %685 = vmatmul.mubr.msk.bf16.vlgmr.msra.gmra.mrb[0].mxu1 %vm310_vm0, %v710_v10 }
  0x23   : > { %666 = vmatprep.mubr.msk.bf16.mxu0 %vm310_vm0, %v711_v11  ;;  %688 = vmatprep.mubr.msk.bf16.mxu1 %vm310_vm0, %v712_v12 }
  0x2a   : > { %667 = vmatmul.mubr.msk.bf16.gmra.mrb[4].mxu0 %vm310_vm0, %v713_v13  ;;  %689 = vmatmul.mubr.msk.bf16.gmra.mrb[4].mxu1 %vm310_vm0, %v714_v14 }
  0xf5   : > { %v664_v16 = vpop.f32.mrb[0].mxu0  ;;  %v686_v17 = vpop.f32.mrb[0].mxu1 }
  0xf6   : > { %v366_v18 = vadd.f32 %v664_v16, %v597_v15  ;;  %v471_v19 = vadd.f32 %v686_v17, %v597_v15  ;;  %v357_v20 = vpop.f32.mrb[1].mxu0  ;;  %v462_v21 = vpop.f32.mrb[1].mxu1 }
  0xf7   : > { %v358_v22 = vadd.f32 %v597_v15, %v357_v20  ;;  %v463_v23 = vadd.f32 %v597_v15, %v462_v21  ;;  %v665_v24 = vpop.f32.mrb[2].mxu0  ;;  %v687_v25 = vpop.f32.mrb[2].mxu1 }
  0xf8   : > { %v495_v26 = vmax.f32 %v366_v18, %v471_v19  ;;  %v369_v27 = vadd.f32 %v665_v24, %v597_v15  ;;  %v474_v28 = vadd.f32 %v687_v25, %v597_v15  ;;  %v360_v29 = vpop.f32.mrb[3].mxu0  ;;  %v465_v30 = vpop.f32.mrb[3].mxu1 }
  0xf9   : > { %v493_v31 = vmax.f32 %v358_v22, %v463_v23  ;;  %v361_v32 = vadd.f32 %v597_v15, %v360_v29  ;;  %v466_v33 = vadd.f32 %v597_v15, %v465_v30 }
  0xfa   : > { %v503_v34 = vmax.f32 %v495_v26, 0.0  ;;  %v496_v35 = vmax.f32 %v369_v27, %v474_v28 }
  0xfb   : > { %v501_v36 = vmax.f32 %v493_v31, 0.0  ;;  %v494_v37 = vmax.f32 %v361_v32, %v466_v33 }
  0xfc   : > { %512 = vst.msk [vmem:[%s813_s19 + $0x10] sm:$0xff] %vm509_vm1, %v503_v34  ;;  %v504_v38 = vmax.f32 %v496_v35, 0.0 }
  0xfd   : > { %510 = vst.msk [vmem:[%s813_s19] sm:$0xff] %vm509_vm1, %v501_v36  ;;  %v502_v39 = vmax.f32 %v494_v37, 0.0  ;;  %v668_v40 = vpop.f32.mrb[4].mxu0  ;;  %v690_v41 = vpop.f32.mrb[4].mxu1 }
  0xfe   : > { %513 = vst.msk [vmem:[%s813_s19 + $0x18] sm:$0xff] %vm509_vm1, %v504_v38  ;;  %v382_v42 = vadd.f32 %v668_v40, %v597_v15  ;;  %v487_v43 = vadd.f32 %v690_v41, %v597_v15  ;;  %v373_v44 = vpop.f32.mrb[5].mxu0  ;;  %v478_v45 = vpop.f32.mrb[5].mxu1 }
  0xff   : > { %511 = vst.msk [vmem:[%s813_s19 + $0x8] sm:$0xff] %vm509_vm1, %v502_v39  ;;  %v374_v46 = vadd.f32 %v597_v15, %v373_v44  ;;  %v479_v47 = vadd.f32 %v597_v15, %v478_v45  ;;  %v669_v48 = vpop.f32.mrb[6].mxu0  ;;  %v691_v49 = vpop.f32.mrb[6].mxu1 }
 0x100   : > { %v499_v50 = vmax.f32 %v382_v42, %v487_v43  ;;  %v385_v51 = vadd.f32 %v669_v48, %v597_v15  ;;  %v490_v52 = vadd.f32 %v691_v49, %v597_v15  ;;  %v376_v53 = vpop.f32.mrb[7].mxu0  ;;  %v481_v54 = vpop.f32.mrb[7].mxu1 }
 0x101   : > { %v497_v55 = vmax.f32 %v374_v46, %v479_v47  ;;  %v377_v56 = vadd.f32 %v597_v15, %v376_v53  ;;  %v482_v57 = vadd.f32 %v597_v15, %v481_v54 }
 0x102   : > { %v507_v58 = vmax.f32 %v499_v50, 0.0  ;;  %v500_v59 = vmax.f32 %v385_v51, %v490_v52 }
 0x103   : > { %v505_v60 = vmax.f32 %v497_v55, 0.0  ;;  %v498_v61 = vmax.f32 %v377_v56, %v482_v57 }
 0x104   : > { %516 = vst.msk [vmem:[%s813_s19 + $0x30] sm:$0xff] %vm509_vm1, %v507_v58  ;;  %v508_v62 = vmax.f32 %v500_v59, 0.0 }
 0x105   : > { %514 = vst.msk [vmem:[%s813_s19 + $0x20] sm:$0xff] %vm509_vm1, %v505_v60  ;;  %v506_v63 = vmax.f32 %v498_v61, 0.0 }
 0x106   : > { %518 = vst.msk [vmem:[%s813_s19 + $0x38] sm:$0x3] %vm517_vm2, %v508_v62 }
 0x107   : > { %515 = vst.msk [vmem:[%s813_s19 + $0x28] sm:$0xff] %vm509_vm1, %v506_v63 }
 0x108 PF: > { %s14_s15 = sadd.s32 1, %s721_s15  }
 0x109   : > { %p11_p4 = scmp.ge.s32.totalorder %s14_s15, 4  }
 0x10b   :  { %13 = sbr.rel (!%p11_p4) target bundleno = 1 (0x1), region = 69 }

// kernel: resnet_forward.5
= control target key start
LH: loop header
LB: loop body
LE: loop exit
PB: predicated region body
PF: predicated region fallthrough
CT: control target
= control target key end

     0   :  { %s8407_s6 = smov 1   ;;  %s8408_s10 = smov 2   ;;  %s9459_s0 = inlined_call_operand.smem [shape: u32[35], index: -1, kind: input, shape index: {}] }
   0x1   :  { %s8452_s5 = sld [smem:[%s9459_s0]]   ;;  %s8409_s14 = smov 3  }
   0x2   :  { %s8457_s9 = sld [smem:[%s9459_s0 + %s8407_s6]]   ;;  %s8410_s18 = smov 4  }
   0x3   :  { %s8462_s13 = sld [smem:[%s9459_s0 + %s8408_s10]]   ;;  %s8411_s22 = smov 5  }
   0x4   :  { %s8467_s17 = sld [smem:[%s9459_s0 + %s8409_s14]]   ;;  %s8412_s26 = smov 6  }
   0x5   :  { %s8472_s21 = sld [smem:[%s9459_s0 + %s8410_s18]]   ;;  %s8413_s30 = smov 7  }
   0x6   :  { %s8477_s25 = sld [smem:[%s9459_s0 + %s8411_s22]]   ;;  %s8414_s4 = smov 8  }
   0x7   :  { %9476 = sst [smem:[#allocation11_spill]] %s8452_s5  ;;  %s8415_s10 = smov 9  }
   0x8   :  { %9477 = sst [smem:[#allocation12_spill]] %s8457_s9  ;;  %s8416_s15 = smov 10  }
   0x9   :  { %9478 = sst [smem:[#allocation13_spill]] %s8462_s13  ;;  %s8417_s20 = smov 11  }
   0xa   :  { %s8482_s29 = sld [smem:[%s9459_s0 + %s8412_s26]]   ;;  %s8418_s26 = smov 12  }
   0xb   :  { %s8487_s3 = sld [smem:[%s9459_s0 + %s8413_s30]]   ;;  %s8419_s1 = smov 13  }
   0xc   :  { %s8492_s8 = sld [smem:[%s9459_s0 + %s8414_s4]]   ;;  %s8420_s7 = smov 14  }
   0xd   :  { %s8497_s14 = sld [smem:[%s9459_s0 + %s8415_s10]]   ;;  %s8422_s22 = smov 16  }
   0xe   :  { %s8502_s19 = sld [smem:[%s9459_s0 + %s8416_s15]]   ;;  %s8421_s15 = smov 15  }
   0xf   :  { %s8507_s24 = sld [smem:[%s9459_s0 + %s8417_s20]]   ;;  %s8423_s28 = smov 17  }
  0x10   :  { %s8512_s30 = sld [smem:[%s9459_s0 + %s8418_s26]]  }
  0x11   :  { %9479 = sst [smem:[#allocation14_spill]] %s8487_s3 }
  0x12   :  { %9480 = sst [smem:[#allocation15_spill]] %s8492_s8 }
  0x13   :  { %s8517_s6 = sld [smem:[%s9459_s0 + %s8419_s1]]  }
  0x14   :  { %s8522_s12 = sld [smem:[%s9459_s0 + %s8420_s7]]   ;;  %s8424_s7 = smov 18  }
  0x15   :  { %s8527_s20 = sld [smem:[%s9459_s0 + %s8421_s15]]   ;;  %s8425_s15 = smov 19  }
  0x16   :  { %s8532_s27 = sld [smem:[%s9459_s0 + %s8422_s22]]   ;;  %s8426_s22 = smov 20  }
  0x17   :  { %s8537_s4 = sld [smem:[%s9459_s0 + %s8423_s28]]   ;;  %s8427_s28 = smov 21  }
  0x18   :  { %s8542_s13 = sld [smem:[%s9459_s0 + %s8424_s7]]   ;;  %s8428_s7 = smov 22  }
  0x19   :  { %9481 = sst [smem:[#allocation16_spill]] %s8517_s6 }
  0x1a   :  { %9482 = sst [smem:[#allocation17_spill]] %s8522_s12 }
  0x1b   :  { %9483 = sst [smem:[#allocation18_spill]] %s8527_s20 }
  0x1c   :  { %9484 = sst [smem:[#allocation19_spill]] %s8532_s27 }
  0x1d   :  { %9485 = sst [smem:[#allocation20_spill]] %s8537_s4 }
  0x1e   :  { %9486 = sst [smem:[#allocation21_spill]] %s8542_s13 }
  0x1f   :  { %s8547_s20 = sld [smem:[%s9459_s0 + %s8425_s15]]   ;;  %s8429_s15 = smov 23  }
  0x20   :  { %s8552_s27 = sld [smem:[%s9459_s0 + %s8426_s22]]   ;;  %s8430_s22 = smov 24  }
  0x21   :  { %s8557_s4 = sld [smem:[%s9459_s0 + %s8427_s28]]   ;;  %s8431_s28 = smov 25  }
  0x22   :  { %s8562_s13 = sld [smem:[%s9459_s0 + %s8428_s7]]   ;;  %s8432_s7 = smov 26  }
  0x25   :  { %9487 = sst [smem:[#allocation22_spill]] %s8547_s20 }
  0x26   :  { %9488 = sst [smem:[#allocation23_spill]] %s8552_s27 }
  0x27   :  { %9489 = sst [smem:[#allocation24_spill]] %s8557_s4 }
  0x28   :  { %9490 = sst [smem:[#allocation25_spill]] %s8562_s13 }
  0x29   :  { %s8567_s20 = sld [smem:[%s9459_s0 + %s8429_s15]]   ;;  %s8433_s15 = smov 27  }
  0x2a   :  { %s8572_s27 = sld [smem:[%s9459_s0 + %s8430_s22]]   ;;  %s8434_s22 = smov 28  }
  0x2b   :  { %s8577_s4 = sld [smem:[%s9459_s0 + %s8431_s28]]   ;;  %s8435_s28 = smov 29  }
  0x2c   :  { %s8582_s13 = sld [smem:[%s9459_s0 + %s8432_s7]]   ;;  %s8436_s7 = smov 30  }
  0x2f   :  { %9491 = sst [smem:[#allocation26_spill]] %s8567_s20 }
  0x30   :  { %9492 = sst [smem:[#allocation27_spill]] %s8572_s27 }
  0x31   :  { %9493 = sst [smem:[#allocation28_spill]] %s8577_s4 }
  0x32   :  { %9494 = sst [smem:[#allocation29_spill]] %s8582_s13 }
  0x33   :  { %s8587_s20 = sld [smem:[%s9459_s0 + %s8433_s15]]   ;;  %s8437_s15 = smov 31  }
  0x34   :  { %s8592_s27 = sld [smem:[%s9459_s0 + %s8434_s22]]   ;;  %s8438_s22 = smov 32  }
  0x35   :  { %s8597_s4 = sld [smem:[%s9459_s0 + %s8435_s28]]   ;;  %s8439_s28 = smov 33  }
  0x36   :  { %s8602_s13 = sld [smem:[%s9459_s0 + %s8436_s7]]   ;;  %s8440_s7 = smov 34  }
  0x39   :  { %9495 = sst [smem:[#allocation30_spill]] %s8587_s20 }
  0x3a   :  { %9496 = sst [smem:[#allocation31_spill]] %s8592_s27 }
  0x3b   :  { %9497 = sst [smem:[#allocation32_spill]] %s8597_s4 }
  0x3c   :  { %9498 = sst [smem:[#allocation33_spill]] %s8602_s13 }
  0x3d   :  { %s8607_s20 = sld [smem:[%s9459_s0 + %s8437_s15]]  }
  0x3e   :  { %s8612_s27 = sld [smem:[%s9459_s0 + %s8438_s22]]  }
  0x3f   :  { %s8617_s4 = sld [smem:[%s9459_s0 + %s8439_s28]]  }
  0x40   :  { %s8622_s13 = sld [smem:[%s9459_s0 + %s8440_s7]]  }
  0x45   :  { %9499 = sst [smem:[#allocation34_spill]] %s8617_s4 }
  0x46   :  { %74 = vsyncpa [#allocation9], 0 }
  0x47   :  { %76 = vsyncpa [#allocation9 + $0x1], 0  ;;  %s8624_s15 = smov 0   ;;  %s8626_s16 = smov 0  }
  0x48   :  { %s8628_s18 = smov 0   ;;  %s8630_s22 = smov 0  }
  0x49 LB: > { %s9500_s6 = sld [smem:[#allocation16_spill]]  ;;  %s9501_s3 = sld [smem:[#allocation14_spill]]  ;;  %s8397_s16 = sphi %s8626_s16, %s9527_s16   ;;  %s8393_s15 = sphi %s8624_s15, %s9526_s15   ;;  %s8405_s22 = sphi %s8630_s22, %s9529_s22   ;;  %s8401_s18 = sphi %s8628_s18, %s9528_s18  }
  0x4a   : > { %s8645_s0 = sadd.s32 4294967295, %s8405_s22   ;;  %s6776_s23 = sadd.s32 4294967294, %s8405_s22  }
  0x4b   : > { %s8649_s26 = sadd.s32 1, %s8405_s22   ;;  %s818_s28 = sadd.s32 1, %s8401_s18 }
  0x4c   : > { %s815_s1 = ssub.s32 %s8405_s22, %s8649_s26  ;;  %p828_p0 = scmp.ne.s32.totalorder %s8401_s18, %s8397_s16 }
  0x4d   : > { %p816_p1 = scmp.eq.s32.totalorder %s815_s1, 0  ;;  %p829_p2 = scmp.eq.s32.totalorder %s8645_s0, 1 }
  0x4e   : > { %p834_p3 = scmp.ne.s32.totalorder %s8397_s16, %s8393_s15  ;;  %p835_p4 = scmp.eq.s32.totalorder %s6776_s23, 1 }
  0x4f   : > { %s8660_s2 = scalar_select %p816_p1, %s8401_s18, %s818_s28  }
  0x50   : > { %p8662_p5 = por %p829_p2, %p828_p0  ;;  %p8666_p6 = por %p835_p4, %p834_p3 }
  0x51   : > { %p6779_p7 = scmp.ge.s32.totalorder %s8405_s22, 1  ;;  %p968_p8 = scmp.lt.s32.totalorder %s8405_s22, 3 }
  0x53   : > { %p969_p9 = pnand %p6779_p7, %p968_p8 }
  0x54   : > { %v8151_v0 = vld [vmem:[%s8467_s17] sm:$0xff] (!%p969_p9)   ;;  %v8441_v1 = vmov (!%p969_p9), 0.0   ;;  %s9504_s5 = sld [smem:[#allocation11_spill]] (!%p969_p9)  ;;  %s9505_s9 = sld [smem:[#allocation12_spill]] (!%p969_p9)  ;;  %v8152_v2 = vld [vmem:[%s8467_s17 + $0x8] sm:$0xff] (!%p969_p9)   ;;  %vm8442_vm0 = vmmov (!%p969_p9), 0  }
  0x55   : > { %972 = sbr.rel (%p969_p9) target bundleno = 4949 (0x1355), region = 156  ;;  %7356 = vmatprep.subr.bf16.mxu0 (!%p969_p9), %v8441_v1  ;;  %7370 = vmatprep.subr.bf16.mxu1 (!%p969_p9), %v8441_v1  ;;  %p1061_p10 = scmp.lt.s32.totalorder (!%p969_p9), %s8645_s0, 1  ;;  %v8153_v3 = vld [vmem:[%s8467_s17 + $0x10] sm:$0xff] (!%p969_p9)   ;;  %v8154_v4 = vld [vmem:[%s8467_s17 + $0x18] sm:$0xff] (!%p969_p9)   ;;  %vm1146_vm1 = vcmask (!%p969_p9), 654336   ;;  %v8155_v5 = vld [vmem:[%s8467_s17 + $0x20] sm:$0xff] (!%p969_p9)  }
  0x56   : > { %7357 = vmatpush3.bf16.msra.mxu0 (!%p969_p9), %v8151_v0  ;;  %7371 = vmatpush3.bf16.msra.mxu1 (!%p969_p9), %v8151_v0  ;;  %vm1075_vm2 = vcmask (!%p969_p9), 130048   ;;  %vm1078_vm3 = vcmask (!%p969_p9), 125952   ;;  %v8158_v8 = vld [vmem:[%s8477_s25 + $0x8] sm:$0xff] (!%p969_p9)   ;;  %v8159_v9 = vld [vmem:[%s8477_s25] sm:$0xff] (!%p969_p9)   ;;  %v8160_v28 = vld [vmem:[%s8477_s25 + $0x10] sm:$0xff] (!%p969_p9)   ;;  %s9506_s8 = sld [smem:[#allocation15_spill]] (!%p969_p9) }
  0x57   : > { %7358 = vmatprep.subr.bf16.mxu0 (!%p969_p9), %v8441_v1  ;;  %7372 = vmatprep.subr.bf16.mxu1 (!%p969_p9), %v8441_v1  ;;  %1076 = vst.msk [vmem:[#allocation2] sm:$0xff] (!%p969_p9), %vm1075_vm2, %v8441_v1  ;;  %1077 = vst.msk [vmem:[#allocation2 + $0x8] sm:$0xff] (!%p969_p9), %vm1075_vm2, %v8441_v1  ;;  %v6784_v10 = vld [vmem:[%s8472_s21] ss:$0 sm:$0xff] (!%p969_p9)  ;;  %v8161_v29 = vld [vmem:[%s8477_s25 + $0x18] sm:$0xff] (!%p969_p9)   ;;  %vm1083_vm4 = vcmask (!%p969_p9), 261120  }
  0x58   : > { %7366 = vmatprep.mubr.msk.bf16.mxu0 (!%p969_p9), %vm8442_vm0, %v8441_v1  ;;  %7380 = vmatprep.mubr.msk.bf16.mxu1 (!%p969_p9), %vm8442_vm0, %v8441_v1  ;;  %1080 = vst.msk [vmem:[#allocation3] sm:$0xff] (!%p969_p9), %vm1075_vm2, %v8441_v1  ;;  %1081 = vst.msk [vmem:[#allocation3 + $0x8] sm:$0xff] (!%p969_p9), %vm1075_vm2, %v8441_v1  ;;  %v8162_v39 = vld [vmem:[%s8477_s25 + $0x20] sm:$0xff] (!%p969_p9)   ;;  %v8163_v45 = vld [vmem:[%s9501_s3 + $0x8] sm:$0xff] (!%p969_p9)   ;;  %vm1085_vm5 = vcmask (!%p969_p9), 257024   ;;  %vm2728_vm6 = vcmask (!%p969_p9), 253952  }
  0x59   : > { %1079 = vst.msk [vmem:[#allocation2 + $0x10] sm:$0xf] (!%p969_p9), %vm1078_vm3, %v8441_v1  ;;  %1082 = vst.msk [vmem:[#allocation3 + $0x10] sm:$0xf] (!%p969_p9), %vm1078_vm3, %v8441_v1  ;;  %v8164_v46 = vld [vmem:[%s9501_s3] sm:$0xff] (!%p969_p9)   ;;  %vm2730_vm7 = vcmask (!%p969_p9), 256002  }
  0x5a   : > { %7359 = vmatpush3.bf16.msra.mxu0 (!%p969_p9), %v8152_v2  ;;  %7373 = vmatpush3.bf16.msra.mxu1 (!%p969_p9), %v8152_v2  ;;  %1084 = vst.msk [vmem:[#allocation4] sm:$0xff] (!%p969_p9), %vm1083_vm4, %v8441_v1  ;;  %1087 = vst.msk [vmem:[#allocation5] sm:$0xff] (!%p969_p9), %vm1083_vm4, %v8441_v1  ;;  %vm2732_vm8 = vcmask (!%p969_p9), 258052   ;;  %vm2734_vm9 = vcmask (!%p969_p9), 260102   ;;  %s9507_s12 = sld [smem:[#allocation17_spill]] (!%p969_p9)  ;;  %vm1089_vm10 = vcmask (!%p969_p9), 523264  }
  0x5b   : > { %7360 = vmatprep.subr.bf16.mxu0 (!%p969_p9), %v8441_v1  ;;  %7374 = vmatprep.subr.bf16.mxu1 (!%p969_p9), %v8441_v1  ;;  %1086 = vst.msk [vmem:[#allocation4 + $0x8] sm:$0xf] (!%p969_p9), %vm1085_vm5, %v8441_v1  ;;  %1088 = vst.msk [vmem:[#allocation5 + $0x8] sm:$0xf] (!%p969_p9), %vm1085_vm5, %v8441_v1  ;;  %vm4341_vm11 = vcmask (!%p969_p9), 516096   ;;  %vm4343_vm12 = vcmask (!%p969_p9), 518146  }
  0x5c   : > { %s8684_s11 = scalar_select %p1061_p10, %s8645_s0, 1  ;;  %1090 = vst.msk [vmem:[#allocation6] sm:$0xff] %vm1089_vm10, %v8441_v1  ;;  %1091 = vst.msk [vmem:[#allocation7] sm:$0xff] %vm1089_vm10, %v8441_v1  ;;  %vm4345_vm13 = vcmask 520196   ;;  %vm4347_vm14 = vcmask 522246   ;;  %vm4746_vm15 = vcmask 519168  }
  0x5d   : > { %s9525_s4 = sld [smem:[#allocation34_spill]] }
  0x5e   : > { %s7076_s23 = sshll.u32 %s8684_s11, 3  ;;  %7361 = vmatpush3.bf16.msra.mxu0 %v8153_v3  ;;  %7375 = vmatpush3.bf16.msra.mxu1 %v8153_v3 }
  0x5f   : > { %s1065_s28 = scalar_lea.vmem %s9504_s5, %s7076_s23  ;;  %s1070_s1 = scalar_lea.vmem %s9505_s9, %s7076_s23  ;;  %7362 = vmatprep.subr.bf16.mxu0 %v8441_v1  ;;  %7376 = vmatprep.subr.bf16.mxu1 %v8441_v1 }
  0x60   : > { %v8156_v6 = vld [vmem:[%s1065_s28] sm:$0xff]   ;;  %s9508_s23 = sld [smem:[#allocation18_spill]]  ;;  %s9509_s28 = sld [smem:[#allocation20_spill]] }
  0x61   : > { %v8157_v7 = vld [vmem:[%s1070_s1] sm:$0xff]   ;;  %s9510_s1 = sld [smem:[#allocation19_spill]]  ;;  %s9515_s5 = sld [smem:[#allocation13_spill]] }
  0x62   : > { %7363 = vmatpush3.bf16.msra.mxu0 %v8154_v4  ;;  %7377 = vmatpush3.bf16.msra.mxu1 %v8154_v4 }
  0x63   : > { %7364 = vmatprep.subr.bf16.mxu0 %v8441_v1  ;;  %7378 = vmatprep.subr.bf16.mxu1 %v8441_v1 }
  0x66   : > { %7365 = vmatpush3.bf16.msra.mxu0 %v8155_v5  ;;  %7379 = vmatpush3.bf16.msra.mxu1 %v8155_v5 }
  0x67   : > { %7384 = vmatprep.subr.bf16.mxu0 %v8441_v1  ;;  %7390 = vmatprep.subr.bf16.mxu1 %v8441_v1 }
  0x69   : > { %7367 = vmatmul.mubr.msk.bf16.vlgmr.msra.gmra.mrb[0].mxu0 %vm1146_vm1, %v8156_v6  ;;  %7381 = vmatmul.mubr.msk.bf16.vlgmr.msra.gmra.mrb[0].mxu1 %vm1146_vm1, %v8157_v7  ;;  %v8753_v7 = vld [vmem:[%s8482_s29] ss:$0 sm:$0xff]  ;;  %vm5954_vm1 = vcmask 1040384  }
  0x6a   : > { %7386 = vmatprep.mubr.msk.bf16.mxu0 %vm8442_vm0, %v8441_v1  ;;  %7392 = vmatprep.mubr.msk.bf16.mxu1 %vm8442_vm0, %v8441_v1 }
  0x6b   : > { %7385 = vmatpush3.bf16.msra.mxu0 %v8158_v8  ;;  %7391 = vmatpush3.bf16.msra.mxu1 %v8159_v9 }
  0x6c   : > { %7396 = vmatprep.subr.bf16.mxu0 %v8441_v1  ;;  %7402 = vmatprep.subr.bf16.mxu1 %v8441_v1 }
 0x13c   : > { %v1184_v11 = vpop.f32.mrb[0].mxu0  ;;  %v1235_v12 = vpop.f32.mrb[0].mxu1 }
 0x13d   : > { %v1185_v13 = vadd.f32 %v6784_v10, %v1184_v11  ;;  %v1236_v14 = vadd.f32 %v6784_v10, %v1235_v12  ;;  %v7368_v15 = vpop.f32.mrb[1].mxu0  ;;  %v7382_v16 = vpop.f32.mrb[1].mxu1 }
 0x13e   : > { %v1187_v17 = vpop.f32.mrb[2].mxu0  ;;  %v1238_v18 = vpop.f32.mrb[2].mxu1 }
 0x13f   : > { %v1242_v19 = vmax.f32 %v1185_v13, %v1236_v14  ;;  %v1188_v20 = vadd.f32 %v6784_v10, %v1187_v17  ;;  %v1239_v21 = vadd.f32 %v6784_v10, %v1238_v18  ;;  %v7369_v22 = vpop.f32.mrb[3].mxu0  ;;  %v7383_v23 = vpop.f32.mrb[3].mxu1  ;;  %v8165_v18 = vld [vmem:[%s9501_s3 + $0x10] sm:$0xff]  }
 0x141   : > { %v1244_v24 = vmax.f32 %v1242_v19, 0.0  ;;  %v1243_v25 = vmax.f32 %v1188_v20, %v1239_v21  ;;  %v8166_v19 = vld [vmem:[%s9501_s3 + $0x18] sm:$0xff]  }
 0x143   : > { %1246 = vst.msk [vmem:[#allocation2 + $0x2] sm:$0xff] %vm1075_vm2, %v1244_v24  ;;  %v1245_v26 = vmax.f32 %v1243_v25, 0.0 }
 0x145   : > { %1247 = vst.msk [vmem:[#allocation2 + $0xa] sm:$0xff] %vm1075_vm2, %v1245_v26 }
 0x14a   : > { %v1261_v27 = vld [vmem:[#allocation2 + $0x1] sm:$0xff] }
 0x14b   : > { %v1258_v31 = vld [vmem:[#allocation2] sm:$0xff] }
 0x14c   : > { %v1262_v30 = vld [vmem:[#allocation2 + $0x9] sm:$0xff] }
 0x14d   : > { %v1259_v32 = vld [vmem:[#allocation2 + $0x8] sm:$0xff]  ;;  %v1263_v33 = vpack.c.bf16 %v1262_v30, %v1261_v27 }
 0x14e   : > { %v1260_v34 = vpack.c.bf16 %v1259_v32, %v1258_v31  ;;  %v8729_v35 = vld [vmem:[#allocation2 + $0xa] sm:$0xff]  ;;  %v8733_v38 = vld [vmem:[#allocation2 + $0x2] sm:$0xff] }
 0x14f   : > { %7387 = vmatmul.mubr.msk.bf16.vlgmr.msra.gmra.mrb[4].mxu0 %vm1075_vm2, %v1263_v33  ;;  %v1419_v36 = vld [vmem:[#allocation2 + $0x3] sm:$0xff]  ;;  %v1420_v37 = vld [vmem:[#allocation2 + $0xb] sm:$0xff]  ;;  %v1366_v40 = vpack.c.bf16 %v8729_v35, %v8733_v38 }
 0x150   : > { %7393 = vmatmul.mubr.msk.bf16.vlgmr.msra.gmra.mrb[4].mxu1 %vm1075_vm2, %v1260_v34  ;;  %7397 = vmatpush3.bf16.msra.mxu0 %v8160_v28  ;;  %v1421_v41 = vpack.c.bf16 %v1420_v37, %v1419_v36  ;;  %v1474_v42 = vld [vmem:[#allocation2 + $0x4] sm:$0xff]  ;;  %v1475_v43 = vld [vmem:[#allocation2 + $0xc] sm:$0xff] }
 0x151   : > { %7403 = vmatpush3.bf16.msra.mxu1 %v8161_v29  ;;  %7398 = vmatprep.mubr.msk.bf16.mxu0 %vm8442_vm0, %v8441_v1  ;;  %v1476_v44 = vpack.c.bf16 %v1475_v43, %v1474_v42  ;;  %v8167_v29 = vld [vmem:[%s9501_s3 + $0x20] sm:$0xff]   ;;  %v8168_v36 = vld [vmem:[%s8477_s25 + $0x8] sm:$0xff]  }
 0x152   : > { %7404 = vmatprep.mubr.msk.bf16.mxu1 %vm8442_vm0, %v8441_v1  ;;  %7408 = vmatprep.subr.bf16.mxu0 %v8441_v1  ;;  %v8169_v37 = vld [vmem:[%s8477_s25] sm:$0xff]  }
 0x153   : > { %7414 = vmatprep.subr.bf16.mxu1 %v8441_v1 }
 0x157   : > { %7399 = vmatmul.mubr.msk.bf16.vlgmr.msra.gmra.mrb[8].mxu0 %vm1075_vm2, %v1366_v40 }
 0x158   : > { %7405 = vmatmul.mubr.msk.bf16.vlgmr.msra.gmra.mrb[8].mxu1 %vm1075_vm2, %v1421_v41  ;;  %7409 = vmatpush3.bf16.msra.mxu0 %v8162_v39 }
 0x159   : > { %7410 = vmatprep.mubr.msk.bf16.mxu0 %vm8442_vm0, %v8441_v1  ;;  %7420 = vmatprep.subr.bf16.mxu0 %v8441_v1 }
 0x15a   : > { %7416 = vmatprep.mubr.msk.bf16.mxu1 %vm8442_vm0, %v8441_v1  ;;  %7415 = vmatpush3.bf16.msra.mxu1 %v8163_v45 }
 0x15b   : > { %7426 = vmatprep.subr.bf16.mxu1 %v8441_v1 }
 0x15f   : > { %7411 = vmatmul.mubr.msk.bf16.vlgmr.msra.gmra.mrb[12].mxu0 %vm1075_vm2, %v1476_v44 }
 0x160   : > { %7422 = vmatprep.mubr.msk.bf16.mxu0 %vm8442_vm0, %v8441_v1  ;;  %7421 = vmatpush3.bf16.msra.mxu0 %v8164_v46 }
 0x161   : > { %7432 = vmatprep.subr.bf16.mxu0 %v8441_v1 }
 0x222   : > { %v1307_v47 = vpop.f32.mrb[4].mxu0 }
 0x223   : > { %v1357_v48 = vpop.f32.mrb[4].mxu1  ;;  %v7388_v50 = vpop.f32.mrb[5].mxu0 }
 0x224   : > { %v1358_v49 = vadd.f32 %v1357_v48, %v1307_v47  ;;  %v7394_v51 = vpop.f32.mrb[5].mxu1  ;;  %v1310_v52 = vpop.f32.mrb[6].mxu0 }
 0x225   : > { %v1360_v53 = vpop.f32.mrb[6].mxu1  ;;  %v7389_v55 = vpop.f32.mrb[7].mxu0 }
 0x226   : > { %v1361_v54 = vadd.f32 %v1360_v53, %v1310_v52  ;;  %v7395_v56 = vpop.f32.mrb[7].mxu1 }
 0x22a   : > { %v1410_v57 = vpop.f32.mrb[8].mxu0 }
 0x22b   : > { %v1465_v58 = vpop.f32.mrb[8].mxu1  ;;  %v1417_v59 = vadd.f32 %v1410_v57, %v1358_v49  ;;  %v7400_v60 = vpop.f32.mrb[9].mxu0 }
 0x22c   : > { %v7406_v61 = vpop.f32.mrb[9].mxu1  ;;  %v1413_v62 = vpop.f32.mrb[10].mxu0 }
 0x22d   : > { %v1468_v63 = vpop.f32.mrb[10].mxu1  ;;  %v1472_v0 = vadd.f32 %v1465_v58, %v1417_v59  ;;  %v1418_v2 = vadd.f32 %v1413_v62, %v1361_v54  ;;  %v7401_v3 = vpop.f32.mrb[11].mxu0  ;;  %v8785_v62 = vld [vmem:[%s9506_s8] ss:$0 sm:$0xff] }
 0x22e   : > { %v7407_v4 = vpop.f32.mrb[11].mxu1 }
 0x22f   : > { %v1473_v5 = vadd.f32 %v1468_v63, %v1418_v2 }
 0x232   : > { %v1520_v6 = vpop.f32.mrb[12].mxu0 }
 0x233   : > { %v1527_v8 = vadd.f32 %v1520_v6, %v1472_v0  ;;  %v7412_v9 = vpop.f32.mrb[13].mxu0 }
 0x234   : > { %v1523_v10 = vpop.f32.mrb[14].mxu0 }
 0x235   : > { %v1536_v11 = vadd.f32 %v8753_v7, %v1527_v8  ;;  %v1528_v12 = vadd.f32 %v1523_v10, %v1473_v5  ;;  %v7413_v13 = vpop.f32.mrb[15].mxu0 }
 0x236   : > { %v8170_v13 = vld [vmem:[%s8477_s25 + $0x10] sm:$0xff]  }
 0x237   : > { %v1538_v14 = vmax.f32 %v1536_v11, 0.0  ;;  %v1537_v15 = vadd.f32 %v8753_v7, %v1528_v12 }
 0x239   : > { %1540 = vst.msk [vmem:[#allocation3 + $0x2] sm:$0xff] %vm1075_vm2, %v1538_v14  ;;  %v1539_v16 = vmax.f32 %v1537_v15, 0.0  ;;  %v8171_v14 = vld [vmem:[%s8477_s25 + $0x18] sm:$0xff]  }
 0x23b   : > { %1541 = vst.msk [vmem:[#allocation3 + $0xa] sm:$0xff] %vm1075_vm2, %v1539_v16 }
 0x240   : > { %v1557_v17 = vld [vmem:[#allocation3 + $0x1] sm:$0xff] }
 0x241   : > { %v1554_v21 = vld [vmem:[#allocation3] sm:$0xff] }
 0x242   : > { %v1558_v20 = vld [vmem:[#allocation3 + $0x9] sm:$0xff] }
 0x243   : > { %v1555_v22 = vld [vmem:[#allocation3 + $0x8] sm:$0xff]  ;;  %v1559_v23 = vpack.c.bf16 %v1558_v20, %v1557_v17 }
 0x244   : > { %v1556_v24 = vpack.c.bf16 %v1555_v22, %v1554_v21  ;;  %v1661_v25 = vld [vmem:[#allocation3 + $0xa] sm:$0xff]  ;;  %v1660_v28 = vld [vmem:[#allocation3 + $0x2] sm:$0xff] }
 0x245   : > { %7417 = vmatmul.mubr.msk.bf16.vlgmr.msra.gmra.mrb[12].mxu1 %vm1075_vm2, %v1559_v23  ;;  %v1715_v26 = vld [vmem:[#allocation3 + $0x3] sm:$0xff]  ;;  %v1716_v27 = vld [vmem:[#allocation3 + $0xb] sm:$0xff]  ;;  %v1662_v30 = vpack.c.bf16 %v1661_v25, %v1660_v28 }
 0x246   : > { %7423 = vmatmul.mubr.msk.bf16.vlgmr.msra.gmra.mrb[16].mxu0 %vm1075_vm2, %v1556_v24  ;;  %7427 = vmatpush3.bf16.msra.mxu1 %v8165_v18  ;;  %v1717_v31 = vpack.c.bf16 %v1716_v27, %v1715_v26  ;;  %v1770_v32 = vld [vmem:[#allocation3 + $0x4] sm:$0xff]  ;;  %v1771_v33 = vld [vmem:[#allocation3 + $0xc] sm:$0xff] }
 0x247   : > { %7433 = vmatpush3.bf16.msra.mxu0 %v8166_v19  ;;  %7428 = vmatprep.mubr.msk.bf16.mxu1 %vm8442_vm0, %v8441_v1  ;;  %v1772_v34 = vpack.c.bf16 %v1771_v33, %v1770_v32  ;;  %v8172_v22 = vld [vmem:[%s8477_s25 + $0x20] sm:$0xff]   ;;  %v8173_v28 = vld [vmem:[%s9501_s3 + $0x8] sm:$0xff]  }
 0x248   : > { %7434 = vmatprep.mubr.msk.bf16.mxu0 %vm8442_vm0, %v8441_v1  ;;  %7438 = vmatprep.subr.bf16.mxu1 %v8441_v1 }
 0x249   : > { %7444 = vmatprep.subr.bf16.mxu0 %v8441_v1 }
 0x24d   : > { %7429 = vmatmul.mubr.msk.bf16.vlgmr.msra.gmra.mrb[16].mxu1 %vm1075_vm2, %v1662_v30 }
 0x24e   : > { %7435 = vmatmul.mubr.msk.bf16.vlgmr.msra.gmra.mrb[20].mxu0 %vm1075_vm2, %v1717_v31  ;;  %7439 = vmatpush3.bf16.msra.mxu1 %v8167_v29  ;;  %v8174_v29 = vld [vmem:[%s9501_s3] sm:$0xff]  }
 0x24f   : > { %7440 = vmatprep.mubr.msk.bf16.mxu1 %vm8442_vm0, %v8441_v1  ;;  %7450 = vmatprep.subr.bf16.mxu1 %v8441_v1 }
 0x250   : > { %7446 = vmatprep.mubr.msk.bf16.mxu0 %vm8442_vm0, %v8441_v1  ;;  %7445 = vmatpush3.bf16.msra.mxu0 %v8168_v36 }
 0x251   : > { %7456 = vmatprep.subr.bf16.mxu0 %v8441_v1 }
 0x255   : > { %7441 = vmatmul.mubr.msk.bf16.vlgmr.msra.gmra.mrb[20].mxu1 %vm1075_vm2, %v1772_v34 }
 0x256   : > { %7452 = vmatprep.mubr.msk.bf16.mxu1 %vm8442_vm0, %v8441_v1  ;;  %7451 = vmatpush3.bf16.msra.mxu1 %v8169_v37 }
 0x257   : > { %7462 = vmatprep.subr.bf16.mxu1 %v8441_v1 }
 0x318   : > { %v1603_v39 = vpop.f32.mrb[12].mxu1 }
 0x319   : > { %v1653_v40 = vpop.f32.mrb[16].mxu0  ;;  %v7418_v42 = vpop.f32.mrb[13].mxu1 }
 0x31a   : > { %v1654_v41 = vadd.f32 %v1653_v40, %v1603_v39  ;;  %v7424_v43 = vpop.f32.mrb[17].mxu0  ;;  %v1606_v44 = vpop.f32.mrb[14].mxu1 }
 0x31b   : > { %v1656_v45 = vpop.f32.mrb[18].mxu0  ;;  %v7419_v47 = vpop.f32.mrb[15].mxu1 }
 0x31c   : > { %v1657_v46 = vadd.f32 %v1656_v45, %v1606_v44  ;;  %v7425_v48 = vpop.f32.mrb[19].mxu0 }
 0x320   : > { %v1706_v49 = vpop.f32.mrb[16].mxu1 }
 0x321   : > { %v1761_v50 = vpop.f32.mrb[20].mxu0  ;;  %v1713_v51 = vadd.f32 %v1706_v49, %v1654_v41  ;;  %v7430_v52 = vpop.f32.mrb[17].mxu1 }
 0x322   : > { %v7436_v53 = vpop.f32.mrb[21].mxu0  ;;  %v1709_v54 = vpop.f32.mrb[18].mxu1 }
 0x323   : > { %v1764_v55 = vpop.f32.mrb[22].mxu0  ;;  %v1768_v56 = vadd.f32 %v1761_v50, %v1713_v51  ;;  %v1714_v57 = vadd.f32 %v1709_v54, %v1657_v46  ;;  %v7431_v58 = vpop.f32.mrb[19].mxu1 }
 0x324   : > { %v7437_v59 = vpop.f32.mrb[23].mxu0 }
 0x325   : > { %v1769_v60 = vadd.f32 %v1764_v55, %v1714_v57 }
 0x328   : > { %v1816_v61 = vpop.f32.mrb[20].mxu1 }
 0x329   : > { %v1823_v63 = vadd.f32 %v1816_v61, %v1768_v56  ;;  %v7442_v0 = vpop.f32.mrb[21].mxu1 }
 0x32a   : > { %v1819_v2 = vpop.f32.mrb[22].mxu1 }
 0x32b   : > { %v1832_v3 = vadd.f32 %v8785_v62, %v1823_v63  ;;  %v1824_v4 = vadd.f32 %v1819_v2, %v1769_v60  ;;  %v7443_v5 = vpop.f32.mrb[23].mxu1 }
 0x32d   : > { %v1834_v6 = vadd.f32 %v1832_v3, %v8733_v38  ;;  %v1833_v8 = vadd.f32 %v8785_v62, %v1824_v4  ;;  %v8175_v3 = vld [vmem:[%s9501_s3 + $0x10] sm:$0xff]   ;;  %v8176_v4 = vld [vmem:[%s9501_s3 + $0x18] sm:$0xff]  }
 0x32f   : > { %v1836_v9 = vmax.f32 %v1834_v6, 0.0  ;;  %v1835_v10 = vadd.f32 %v1833_v8, %v8729_v35 }
 0x331   : > { %1838 = vst.msk [vmem:[#allocation2 + $0x2] sm:$0xff] %vm1075_vm2, %v1836_v9  ;;  %v1837_v11 = vmax.f32 %v1835_v10, 0.0 }
 0x333   : > { %1839 = vst.msk [vmem:[#allocation2 + $0xa] sm:$0xff] %vm1075_vm2, %v1837_v11 }
 0x338   : > { %v1853_v12 = vld [vmem:[#allocation2 + $0x1] sm:$0xff] }
 0x339   : > { %v1850_v16 = vld [vmem:[#allocation2] sm:$0xff] }
 0x33a   : > { %v1854_v15 = vld [vmem:[#allocation2 + $0x9] sm:$0xff] }
 0x33b   : > { %v1851_v17 = vld [vmem:[#allocation2 + $0x8] sm:$0xff]  ;;  %v1855_v18 = vpack.c.bf16 %v1854_v15, %v1853_v12 }
 0x33c   : > { %v1852_v19 = vpack.c.bf16 %v1851_v17, %v1850_v16  ;;  %v8801_v35 = vld [vmem:[#allocation2 + $0xa] sm:$0xff]  ;;  %v8805_v21 = vld [vmem:[#allocation2 + $0x2] sm:$0xff] }
 0x33d   : > { %7447 = vmatmul.mubr.msk.bf16.vlgmr.msra.gmra.mrb[24].mxu0 %vm1075_vm2, %v1855_v18  ;;  %v2011_v38 = vld [vmem:[#allocation2 + $0x3] sm:$0xff]  ;;  %v2012_v20 = vld [vmem:[#allocation2 + $0xb] sm:$0xff]  ;;  %v1958_v23 = vpack.c.bf16 %v8801_v35, %v8805_v21 }
 0x33e   : > { %7453 = vmatmul.mubr.msk.bf16.vlgmr.msra.gmra.mrb[24].mxu1 %vm1075_vm2, %v1852_v19  ;;  %7457 = vmatpush3.bf16.msra.mxu0 %v8170_v13  ;;  %v2013_v24 = vpack.c.bf16 %v2012_v20, %v2011_v38  ;;  %v2066_v25 = vld [vmem:[#allocation2 + $0x4] sm:$0xff]  ;;  %v2067_v26 = vld [vmem:[#allocation2 + $0xc] sm:$0xff] }
 0x33f   : > { %7463 = vmatpush3.bf16.msra.mxu1 %v8171_v14  ;;  %7458 = vmatprep.mubr.msk.bf16.mxu0 %vm8442_vm0, %v8441_v1  ;;  %v2068_v27 = vpack.c.bf16 %v2067_v26, %v2066_v25  ;;  %v8177_v14 = vld [vmem:[%s9501_s3 + $0x20] sm:$0xff]   ;;  %v8178_v38 = vld [vmem:[%s8497_s14 + $0x8] sm:$0xff]   ;;  %s9512_s3 = sld [smem:[#allocation21_spill]] }
 0x340   : > { %7464 = vmatprep.mubr.msk.bf16.mxu1 %vm8442_vm0, %v8441_v1  ;;  %7468 = vmatprep.subr.bf16.mxu0 %v8441_v1  ;;  %v8179_v20 = vld [vmem:[%s8497_s14] sm:$0xff]  }
 0x341   : > { %7474 = vmatprep.subr.bf16.mxu1 %v8441_v1 }
 0x345   : > { %7459 = vmatmul.mubr.msk.bf16.vlgmr.msra.gmra.mrb[28].mxu0 %vm1075_vm2, %v1958_v23 }
 0x346   : > { %7465 = vmatmul.mubr.msk.bf16.vlgmr.msra.gmra.mrb[28].mxu1 %vm1075_vm2, %v2013_v24  ;;  %7469 = vmatpush3.bf16.msra.mxu0 %v8172_v22 }
 0x347   : > { %7470 = vmatprep.mubr.msk.bf16.mxu0 %vm8442_vm0, %v8441_v1  ;;  %7480 = vmatprep.subr.bf16.mxu0 %v8441_v1 }
 0x348   : > { %7476 = vmatprep.mubr.msk.bf16.mxu1 %vm8442_vm0, %v8441_v1  ;;  %7475 = vmatpush3.bf16.msra.mxu1 %v8173_v28 }
 0x349   : > { %7486 = vmatprep.subr.bf16.mxu1 %v8441_v1 }
 0x34d   : > { %7471 = vmatmul.mubr.msk.bf16.vlgmr.msra.gmra.mrb[32].mxu0 %vm1075_vm2, %v2068_v27 }
 0x34e   : > { %7482 = vmatprep.mubr.msk.bf16.mxu0 %vm8442_vm0, %v8441_v1  ;;  %7481 = vmatpush3.bf16.msra.mxu0 %v8174_v29 }
 0x34f   : > { %7492 = vmatprep.subr.bf16.mxu0 %v8441_v1 }
 0x410   : > { %v1899_v30 = vpop.f32.mrb[24].mxu0 }
 0x411   : > { %v1949_v31 = vpop.f32.mrb[24].mxu1  ;;  %v7448_v33 = vpop.f32.mrb[25].mxu0 }
 0x412   : > { %v1950_v32 = vadd.f32 %v1949_v31, %v1899_v30  ;;  %v7454_v34 = vpop.f32.mrb[25].mxu1  ;;  %v1902_v36 = vpop.f32.mrb[26].mxu0 }
 0x413   : > { %v1952_v37 = vpop.f32.mrb[26].mxu1  ;;  %v7449_v40 = vpop.f32.mrb[27].mxu0 }
 0x414   : > { %v1953_v39 = vadd.f32 %v1952_v37, %v1902_v36  ;;  %v7455_v41 = vpop.f32.mrb[27].mxu1 }
 0x418   : > { %v2002_v42 = vpop.f32.mrb[28].mxu0 }
 0x419   : > { %v2057_v43 = vpop.f32.mrb[28].mxu1  ;;  %v2009_v44 = vadd.f32 %v2002_v42, %v1950_v32  ;;  %v7460_v45 = vpop.f32.mrb[29].mxu0 }
 0x41a   : > { %v7466_v46 = vpop.f32.mrb[29].mxu1  ;;  %v2005_v47 = vpop.f32.mrb[30].mxu0 }
 0x41b   : > { %v2060_v48 = vpop.f32.mrb[30].mxu1  ;;  %v2064_v49 = vadd.f32 %v2057_v43, %v2009_v44  ;;  %v2010_v50 = vadd.f32 %v2005_v47, %v1953_v39  ;;  %v7461_v51 = vpop.f32.mrb[31].mxu0 }
 0x41c   : > { %v7467_v52 = vpop.f32.mrb[31].mxu1 }
 0x41d   : > { %v2065_v53 = vadd.f32 %v2060_v48, %v2010_v50 }
 0x420   : > { %v2112_v54 = vpop.f32.mrb[32].mxu0 }
 0x421   : > { %v2119_v55 = vadd.f32 %v2112_v54, %v2064_v49  ;;  %v7472_v56 = vpop.f32.mrb[33].mxu0 }
 0x422   : > { %v2115_v57 = vpop.f32.mrb[34].mxu0 }
 0x423   : > { %v2128_v58 = vadd.f32 %v8753_v7, %v2119_v55  ;;  %v2120_v59 = vadd.f32 %v2115_v57, %v2065_v53  ;;  %v7473_v60 = vpop.f32.mrb[35].mxu0 }
 0x424   : > { %v8181_v60 = vld [vmem:[%s8497_s14 + $0x18] sm:$0xff]  }
 0x425   : > { %v2130_v61 = vmax.f32 %v2128_v58, 0.0  ;;  %v2129_v63 = vadd.f32 %v8753_v7, %v2120_v59  ;;  %v8180_v59 = vld [vmem:[%s8497_s14 + $0x10] sm:$0xff]  }
 0x427   : > { %2132 = vst.msk [vmem:[#allocation3 + $0x2] sm:$0xff] %vm1075_vm2, %v2130_v61  ;;  %v2131_v0 = vmax.f32 %v2129_v63, 0.0 }
 0x429   : > { %2133 = vst.msk [vmem:[#allocation3 + $0xa] sm:$0xff] %vm1075_vm2, %v2131_v0 }
 0x42e   : > { %v2149_v2 = vld [vmem:[#allocation3 + $0x1] sm:$0xff] }
 0x42f   : > { %v2146_v6 = vld [vmem:[#allocation3] sm:$0xff] }
 0x430   : > { %v2150_v5 = vld [vmem:[#allocation3 + $0x9] sm:$0xff] }
 0x431   : > { %v2147_v8 = vld [vmem:[#allocation3 + $0x8] sm:$0xff]  ;;  %v2151_v9 = vpack.c.bf16 %v2150_v5, %v2149_v2 }
 0x432   : > { %v2148_v10 = vpack.c.bf16 %v2147_v8, %v2146_v6  ;;  %v2253_v7 = vld [vmem:[#allocation3 + $0xa] sm:$0xff]  ;;  %v2252_v13 = vld [vmem:[#allocation3 + $0x2] sm:$0xff] }
 0x433   : > { %7477 = vmatmul.mubr.msk.bf16.vlgmr.msra.gmra.mrb[32].mxu1 %vm1075_vm2, %v2151_v9  ;;  %v2307_v11 = vld [vmem:[#allocation3 + $0x3] sm:$0xff]  ;;  %v2308_v12 = vld [vmem:[#allocation3 + $0xb] sm:$0xff]  ;;  %v2254_v15 = vpack.c.bf16 %v2253_v7, %v2252_v13 }
 0x434   : > { %7483 = vmatmul.mubr.msk.bf16.vlgmr.msra.gmra.mrb[36].mxu0 %vm1075_vm2, %v2148_v10  ;;  %7487 = vmatpush3.bf16.msra.mxu1 %v8175_v3  ;;  %v2309_v16 = vpack.c.bf16 %v2308_v12, %v2307_v11  ;;  %v2362_v17 = vld [vmem:[#allocation3 + $0x4] sm:$0xff]  ;;  %v2363_v18 = vld [vmem:[#allocation3 + $0xc] sm:$0xff]  ;;  %v8183_v11 = vld [vmem:[%s8507_s24 + $0x10] sm:$0xff]  }
 0x435   : > { %7493 = vmatpush3.bf16.msra.mxu0 %v8176_v4  ;;  %7488 = vmatprep.mubr.msk.bf16.mxu1 %vm8442_vm0, %v8441_v1  ;;  %v2364_v19 = vpack.c.bf16 %v2363_v18, %v2362_v17  ;;  %v8182_v5 = vld [vmem:[%s8497_s14 + $0x20] sm:$0xff]   ;;  %v8185_v13 = vld [vmem:[%s8507_s24 + $0x18] sm:$0xff]  }
 0x436   : > { %7494 = vmatprep.mubr.msk.bf16.mxu0 %vm8442_vm0, %v8441_v1  ;;  %7498 = vmatprep.subr.bf16.mxu1 %v8441_v1  ;;  %v8184_v12 = vld [vmem:[%s8507_s24] sm:$0xff]  }
 0x437   : > { %7504 = vmatprep.subr.bf16.mxu0 %v8441_v1 }
 0x43b   : > { %7489 = vmatmul.mubr.msk.bf16.vlgmr.msra.gmra.mrb[36].mxu1 %vm1075_vm2, %v2254_v15 }
 0x43c   : > { %7495 = vmatmul.mubr.msk.bf16.vlgmr.msra.gmra.mrb[40].mxu0 %vm1075_vm2, %v2309_v16  ;;  %7499 = vmatpush3.bf16.msra.mxu1 %v8177_v14  ;;  %v8186_v14 = vld [vmem:[%s8507_s24 + $0x8] sm:$0xff]  }
 0x43d   : > { %7500 = vmatprep.mubr.msk.bf16.mxu1 %vm8442_vm0, %v8441_v1  ;;  %7510 = vmatprep.subr.bf16.mxu1 %v8441_v1 }
 0x43e   : > { %7506 = vmatprep.mubr.msk.bf16.mxu0 %vm8442_vm0, %v8441_v1  ;;  %7505 = vmatpush3.bf16.msra.mxu0 %v8178_v38 }
 0x43f   : > { %7516 = vmatprep.subr.bf16.mxu0 %v8441_v1 }
 0x443   : > { %7501 = vmatmul.mubr.msk.bf16.vlgmr.msra.gmra.mrb[40].mxu1 %vm1075_vm2, %v2364_v19 }
 0x444   : > { %7512 = vmatprep.mubr.msk.bf16.mxu1 %vm8442_vm0, %v8441_v1  ;;  %7511 = vmatpush3.bf16.msra.mxu1 %v8179_v20 }
 0x445   : > { %7522 = vmatprep.subr.bf16.mxu1 %v8441_v1 }
 0x506   : > { %v2195_v22 = vpop.f32.mrb[32].mxu1 }
 0x507   : > { %v2245_v23 = vpop.f32.mrb[36].mxu0  ;;  %v7478_v25 = vpop.f32.mrb[33].mxu1 }
 0x508   : > { %v2246_v24 = vadd.f32 %v2245_v23, %v2195_v22  ;;  %v7484_v26 = vpop.f32.mrb[37].mxu0  ;;  %v2198_v27 = vpop.f32.mrb[34].mxu1 }
 0x509   : > { %v2248_v28 = vpop.f32.mrb[38].mxu0  ;;  %v7479_v30 = vpop.f32.mrb[35].mxu1 }
 0x50a   : > { %v2249_v29 = vadd.f32 %v2248_v28, %v2198_v27  ;;  %v7485_v31 = vpop.f32.mrb[39].mxu0 }
 0x50e   : > { %v2298_v32 = vpop.f32.mrb[36].mxu1 }
 0x50f   : > { %v2353_v33 = vpop.f32.mrb[40].mxu0  ;;  %v2305_v34 = vadd.f32 %v2298_v32, %v2246_v24  ;;  %v7490_v36 = vpop.f32.mrb[37].mxu1 }
 0x510   : > { %v7496_v37 = vpop.f32.mrb[41].mxu0  ;;  %v2301_v39 = vpop.f32.mrb[38].mxu1 }
 0x511   : > { %v2356_v40 = vpop.f32.mrb[42].mxu0  ;;  %v2360_v41 = vadd.f32 %v2353_v33, %v2305_v34  ;;  %v2306_v42 = vadd.f32 %v2301_v39, %v2249_v29  ;;  %v7491_v43 = vpop.f32.mrb[39].mxu1 }
 0x512   : > { %v7497_v44 = vpop.f32.mrb[43].mxu0 }
 0x513   : > { %v2361_v45 = vadd.f32 %v2356_v40, %v2306_v42  ;;  %v6848_v40 = vld [vmem:[%s8502_s19] ss:$0 sm:$0xff] }
 0x516   : > { %v2408_v46 = vpop.f32.mrb[40].mxu1 }
 0x517   : > { %v2415_v47 = vadd.f32 %v2408_v46, %v2360_v41  ;;  %v7502_v48 = vpop.f32.mrb[41].mxu1 }
 0x518   : > { %v2411_v49 = vpop.f32.mrb[42].mxu1 }
 0x519   : > { %v2424_v50 = vadd.f32 %v8785_v62, %v2415_v47  ;;  %v2416_v51 = vadd.f32 %v2411_v49, %v2361_v45  ;;  %v7503_v52 = vpop.f32.mrb[43].mxu1 }
 0x51b   : > { %v2426_v53 = vadd.f32 %v2424_v50, %v8805_v21  ;;  %v2425_v54 = vadd.f32 %v8785_v62, %v2416_v51 }
 0x51d   : > { %v2428_v55 = vmax.f32 %v2426_v53, 0.0  ;;  %v2427_v56 = vadd.f32 %v2425_v54, %v8801_v35  ;;  %v8187_v54 = vld [vmem:[%s8507_s24 + $0x20] sm:$0xff]  }
 0x51f   : > { %2430 = vst.msk [vmem:[#allocation2 + $0x2] sm:$0xff] %vm1075_vm2, %v2428_v55  ;;  %v2429_v57 = vmax.f32 %v2427_v56, 0.0 }
 0x521   : > { %2431 = vst.msk [vmem:[#allocation2 + $0xa] sm:$0xff] %vm1075_vm2, %v2429_v57  ;;  %v8188_v57 = vld [vmem:[%s8507_s24 + $0x30] sm:$0xff]  }
 0x526   : > { %v2445_v58 = vld [vmem:[#allocation2 + $0x1] sm:$0xff] }
 0x527   : > { %v2442_v63 = vld [vmem:[#allocation2] sm:$0xff] }
 0x528   : > { %v2446_v61 = vld [vmem:[#allocation2 + $0x9] sm:$0xff] }
 0x529   : > { %v2443_v0 = vld [vmem:[#allocation2 + $0x8] sm:$0xff]  ;;  %v2447_v2 = vpack.c.bf16 %v2446_v61, %v2445_v58  ;;  %v8190_v61 = vld [vmem:[%s8507_s24 + $0x38] sm:$0xff]  }
 0x52a   : > { %v2444_v3 = vpack.c.bf16 %v2443_v0, %v2442_v63  ;;  %v2549_v62 = vld [vmem:[#allocation2 + $0xa] sm:$0xff]  ;;  %v2548_v4 = vld [vmem:[#allocation2 + $0x2] sm:$0xff] }
 0x52b   : > { %7507 = vmatmul.mubr.msk.bf16.vlgmr.msra.gmra.mrb[44].mxu0 %vm1075_vm2, %v2447_v2  ;;  %v2603_v35 = vld [vmem:[#allocation2 + $0x3] sm:$0xff]  ;;  %v2604_v21 = vld [vmem:[#allocation2 + $0xb] sm:$0xff]  ;;  %v2550_v6 = vpack.c.bf16 %v2549_v62, %v2548_v4 }
 0x52c   : > { %7513 = vmatmul.mubr.msk.bf16.vlgmr.msra.gmra.mrb[44].mxu1 %vm1075_vm2, %v2444_v3  ;;  %7517 = vmatpush3.bf16.msra.mxu0 %v8180_v59  ;;  %v2605_v8 = vpack.c.bf16 %v2604_v21, %v2603_v35  ;;  %v2658_v9 = vld [vmem:[#allocation2 + $0x4] sm:$0xff]  ;;  %v2659_v10 = vld [vmem:[#allocation2 + $0xc] sm:$0xff] }
 0x52d   : > { %7523 = vmatpush3.bf16.msra.mxu1 %v8181_v60  ;;  %7518 = vmatprep.mubr.msk.bf16.mxu0 %vm8442_vm0, %v8441_v1  ;;  %v2660_v7 = vpack.c.bf16 %v2659_v10, %v2658_v9  ;;  %v8189_v60 = vld [vmem:[%s8507_s24 + $0x28] sm:$0xff]   ;;  %v8191_v2 = vld [vmem:[%s8507_s24 + $0x40] sm:$0xff]  }
 0x52e   : > { %7524 = vmatprep.mubr.msk.bf16.mxu1 %vm8442_vm0, %v8441_v1  ;;  %7528 = vmatprep.subr.bf16.mxu0 %v8441_v1  ;;  %v8192_v35 = vld [vmem:[%s8507_s24 + $0x48] sm:$0xff]  }
 0x52f   : > { %7534 = vmatprep.subr.bf16.mxu1 %v8441_v1  ;;  %v8196_v9 = vld [vmem:[%s9500_s6 + $0x8] sm:$0xff]  }
 0x533   : > { %7519 = vmatmul.mubr.msk.bf16.vlgmr.msra.gmra.mrb[48].mxu0 %vm1075_vm2, %v2550_v6  ;;  %v8194_v6 = vld [vmem:[%s9500_s6] sm:$0xff]  }
 0x534   : > { %7525 = vmatmul.mubr.msk.bf16.vlgmr.msra.gmra.mrb[48].mxu1 %vm1075_vm2, %v2605_v8  ;;  %7529 = vmatpush3.bf16.msra.mxu0 %v8182_v5  ;;  %v8193_v5 = vld [vmem:[%s9500_s6 + $0x10] sm:$0xff]   ;;  %v8195_v8 = vld [vmem:[%s9500_s6 + $0x18] sm:$0xff]  }
 0x535   : > { %7530 = vmatprep.mubr.msk.bf16.mxu0 %vm8442_vm0, %v8441_v1  ;;  %7542 = vmatprep.subr.bf16.mxu0 %v8441_v1 }
 0x536   : > { %7538 = vmatprep.mubr.msk.bf16.mxu1 %vm8442_vm0, %v8441_v1  ;;  %7535 = vmatpush3.bf16.msra.mxu1 %v8183_v11 }
 0x537   : > { %7536 = vmatprep.subr.bf16.mxu1 %v8441_v1 }
 0x53a   : > { %7537 = vmatpush3.bf16.msra.mxu1 %v8185_v13 }
 0x53b   : > { %7531 = vmatmul.mubr.msk.bf16.vlgmr.msra.gmra.mrb[52].mxu0 %vm1075_vm2, %v2660_v7  ;;  %7550 = vmatprep.subr.bf16.mxu1 %v8441_v1  ;;  %vm5950_vm2 = vcmask 15360  }
 0x53c   : > { %7546 = vmatprep.mubr.msk.bf16.mxu0 %vm8442_vm0, %v8441_v1  ;;  %7543 = vmatpush3.bf16.msra.mxu0 %v8184_v12 }
 0x53d   : > { %7544 = vmatprep.subr.bf16.mxu0 %v8441_v1 }
 0x540   : > { %7545 = vmatpush3.bf16.msra.mxu0 %v8186_v14 }
 0x541   : > { %7558 = vmatprep.subr.bf16.mxu0 %v8441_v1 }
 0x5fe   : > { %v2491_v15 = vpop.f32.mrb[44].mxu0 }
 0x5ff   : > { %v2541_v16 = vpop.f32.mrb[44].mxu1  ;;  %v7508_v18 = vpop.f32.mrb[45].mxu0 }
 0x600   : > { %v2542_v17 = vadd.f32 %v2541_v16, %v2491_v15  ;;  %v7514_v19 = vpop.f32.mrb[45].mxu1  ;;  %v2494_v38 = vpop.f32.mrb[46].mxu0 }
 0x601   : > { %v2544_v20 = vpop.f32.mrb[46].mxu1  ;;  %v7509_v23 = vpop.f32.mrb[47].mxu0 }
 0x602   : > { %v2545_v22 = vadd.f32 %v2544_v20, %v2494_v38  ;;  %v7515_v24 = vpop.f32.mrb[47].mxu1 }
 0x606   : > { %v2594_v25 = vpop.f32.mrb[48].mxu0 }
 0x607   : > { %v2649_v26 = vpop.f32.mrb[48].mxu1  ;;  %v2601_v27 = vadd.f32 %v2594_v25, %v2542_v17  ;;  %v7520_v28 = vpop.f32.mrb[49].mxu0 }
 0x608   : > { %v7526_v29 = vpop.f32.mrb[49].mxu1  ;;  %v2597_v30 = vpop.f32.mrb[50].mxu0 }
 0x609   : > { %v2652_v31 = vpop.f32.mrb[50].mxu1  ;;  %v2656_v32 = vadd.f32 %v2649_v26, %v2601_v27  ;;  %v2602_v33 = vadd.f32 %v2597_v30, %v2545_v22  ;;  %v7521_v34 = vpop.f32.mrb[51].mxu0  ;;  %v8935_v29 = vld [vmem:[%s8512_s30] ss:$0 sm:$0xff] }
 0x60a   : > { %v7527_v36 = vpop.f32.mrb[51].mxu1 }
 0x60b   : > { %v2657_v37 = vadd.f32 %v2652_v31, %v2602_v33 }
 0x60e   : > { %v2704_v39 = vpop.f32.mrb[52].mxu0 }
 0x60f   : > { %v2711_v41 = vadd.f32 %v2704_v39, %v2656_v32  ;;  %v7532_v42 = vpop.f32.mrb[53].mxu0 }
 0x610   : > { %v2707_v43 = vpop.f32.mrb[54].mxu0 }
 0x611   : > { %v2720_v44 = vadd.f32 %v6848_v40, %v2711_v41  ;;  %v2712_v45 = vadd.f32 %v2707_v43, %v2657_v37  ;;  %v7533_v46 = vpop.f32.mrb[55].mxu0  ;;  %v8197_v37 = vld [vmem:[%s9500_s6 + $0x20] sm:$0xff]   ;;  %v8198_v41 = vld [vmem:[%s9500_s6 + $0x30] sm:$0xff]  }
 0x613   : > { %v2722_v47 = vmax.f32 %v2720_v44, 0.0  ;;  %v2721_v48 = vadd.f32 %v6848_v40, %v2712_v45  ;;  %v8199_v44 = vld [vmem:[%s9500_s6 + $0x28] sm:$0xff]   ;;  %v8200_v45 = vld [vmem:[%s9500_s6 + $0x38] sm:$0xff]  }
 0x615   : > { %v2725_v49 = vrot.slane %v2722_v47, 1  ;;  %v2723_v50 = vmax.f32 %v2721_v48, 0.0  ;;  %v8201_v48 = vld [vmem:[%s9500_s6 + $0x40] sm:$0xff]  }
 0x617   : > { %v2727_v51 = vmax.f32 %v2722_v47, %v2725_v49  ;;  %v2737_v52 = vrot.slane %v2723_v50, 1 }
 0x619   : > { %2729 = vst.msk [vmem:[#allocation4 + $0x2] sm:$0x1] %vm2728_vm6, %v2727_v51  ;;  %v2739_v53 = vmax.f32 %v2723_v50, %v2737_v52 }
 0x61a   : > { %2731 = vst.msk [vmem:[#allocation4 + $0x1] sm:$0x4] %vm2730_vm7, %v2727_v51 }
 0x61b   : > { %2733 = vst.msk [vmem:[#allocation4] sm:$0x10] %vm2732_vm8, %v2727_v51  ;;  %2742 = vst.msk [vmem:[#allocation4 + $0x4] sm:$0x10] %vm2732_vm8, %v2739_v53 }
 0x61c   : > { %2735 = vst.msk [vmem:[#allocation4 - $0x1] sm:$0x40] %vm2734_vm9, %v2727_v51  ;;  %2743 = vst.msk [vmem:[#allocation4 + $0x3] sm:$0x40] %vm2734_vm9, %v2739_v53  ;;  %v8202_v51 = vld [vmem:[%s9500_s6 + $0x48] sm:$0xff]  }
 0x61d   : > { %2740 = vst.msk [vmem:[#allocation4 + $0x6] sm:$0x1] %vm2728_vm6, %v2739_v53 }
 0x61e   : > { %2741 = vst.msk [vmem:[#allocation4 + $0x5] sm:$0x4] %vm2730_vm7, %v2739_v53 }
 0x625   : > { %v2766_v55 = vld [vmem:[#allocation4 + $0x1] sm:$0xff] }
 0x626   : > { %v2764_v56 = vld [vmem:[#allocation4] sm:$0xff]  ;;  %v2767_v58 = vpack.c.bf16 %v2766_v55, %v2766_v55  ;;  %v8204_v55 = vld [vmem:[%s8507_s24] sm:$0xff]  }
 0x627   : > { %v2765_v59 = vpack.c.bf16 %v2764_v56, %v2764_v56  ;;  %v8907_v63 = vld [vmem:[#allocation4 + $0x2] sm:$0xff] }
 0x628   : > { %7539 = vmatmul.mubr.msk.bf16.vlgmr.msra.gmra.mrb[52].mxu1 %vm1083_vm4, %v2767_v58  ;;  %v2936_v0 = vld [vmem:[#allocation4 + $0x3] sm:$0xff]  ;;  %v2879_v3 = vpack.c.bf16 %v8907_v63, %v8907_v63 }
 0x629   : > { %7547 = vmatmul.mubr.msk.bf16.vlgmr.msra.gmra.mrb[56].mxu0 %vm1083_vm4, %v2765_v59  ;;  %7551 = vmatpush3.bf16.msra.mxu1 %v8187_v54  ;;  %v2937_v62 = vpack.c.bf16 %v2936_v0, %v2936_v0  ;;  %v2994_v21 = vld [vmem:[#allocation4 + $0x4] sm:$0xff] }
 0x62a   : > { %7559 = vmatpush3.bf16.msra.mxu0 %v8188_v57  ;;  %7552 = vmatprep.subr.bf16.mxu1 %v8441_v1  ;;  %v2995_v4 = vpack.c.bf16 %v2994_v21, %v2994_v21  ;;  %v8203_v54 = vld [vmem:[%s8507_s24 + $0x10] sm:$0xff]   ;;  %v8205_v56 = vld [vmem:[%s8507_s24 + $0x18] sm:$0xff]   ;;  %v8206_v57 = vld [vmem:[%s8507_s24 + $0x8] sm:$0xff]  }
 0x62b   : > { %7560 = vmatprep.subr.bf16.mxu0 %v8441_v1  ;;  %7554 = vmatprep.mubr.msk.bf16.mxu1 %vm8442_vm0, %v8441_v1 }
 0x62c   : > { %7562 = vmatprep.mubr.msk.bf16.mxu0 %vm8442_vm0, %v8441_v1 }
 0x62d   : > { %7553 = vmatpush3.bf16.msra.mxu1 %v8189_v60 }
 0x62e   : > { %7561 = vmatpush3.bf16.msra.mxu0 %v8190_v61  ;;  %7566 = vmatprep.subr.bf16.mxu1 %v8441_v1 }
 0x62f   : > { %7574 = vmatprep.subr.bf16.mxu0 %v8441_v1 }
 0x630   : > { %7555 = vmatmul.mubr.msk.bf16.vlgmr.msra.gmra.mrb[56].mxu1 %vm1083_vm4, %v2879_v3 }
 0x631   : > { %7563 = vmatmul.mubr.msk.bf16.vlgmr.msra.gmra.mrb[60].mxu0 %vm1083_vm4, %v2937_v62  ;;  %7567 = vmatpush3.bf16.msra.mxu1 %v8191_v2 }
 0x632   : > { %7570 = vmatprep.mubr.msk.bf16.mxu1 %vm8442_vm0, %v8441_v1  ;;  %7568 = vmatprep.subr.bf16.mxu1 %v8441_v1 }
 0x633   : > { %7578 = vmatprep.mubr.msk.bf16.mxu0 %vm8442_vm0, %v8441_v1  ;;  %7575 = vmatpush3.bf16.msra.mxu0 %v8193_v5 }
 0x634   : > { %7576 = vmatprep.subr.bf16.mxu0 %v8441_v1 }
 0x635   : > { %7569 = vmatpush3.bf16.msra.mxu1 %v8192_v35 }
 0x636   : > { %7582 = vmatprep.subr.bf16.mxu1 %v8441_v1 }
 0x637   : > { %7577 = vmatpush3.bf16.msra.mxu0 %v8195_v8 }
 0x638   : > { %7571 = vmatmul.mubr.msk.bf16.vlgmr.msra.gmra.mrb[60].mxu1 %vm1083_vm4, %v2995_v4  ;;  %7590 = vmatprep.subr.bf16.mxu0 %v8441_v1 }
 0x639   : > { %7586 = vmatprep.mubr.msk.bf16.mxu1 %vm8442_vm0, %v8441_v1  ;;  %7583 = vmatpush3.bf16.msra.mxu1 %v8194_v6 }
 0x63a   : > { %7584 = vmatprep.subr.bf16.mxu1 %v8441_v1 }
 0x63d   : > { %7585 = vmatpush3.bf16.msra.mxu1 %v8196_v9 }
 0x63e   : > { %7598 = vmatprep.subr.bf16.mxu1 %v8441_v1 }
 0x6fb   : > { %v2817_v10 = vpop.f32.mrb[52].mxu1 }
 0x6fc   : > { %v2872_v7 = vpop.f32.mrb[56].mxu0  ;;  %v7540_v12 = vpop.f32.mrb[53].mxu1 }
 0x6fd   : > { %v2873_v11 = vadd.f32 %v2872_v7, %v2817_v10  ;;  %v7548_v13 = vpop.f32.mrb[57].mxu0  ;;  %v2820_v14 = vpop.f32.mrb[54].mxu1 }
 0x6fe   : > { %v2875_v15 = vpop.f32.mrb[58].mxu0  ;;  %v7541_v16 = vpop.f32.mrb[55].mxu1  ;;  %v8975_v14 = vld [vmem:[%s9507_s12] ss:$0 sm:$0xff] }
 0x6ff   : > { %v7549_v17 = vpop.f32.mrb[59].mxu0 }
 0x703   : > { %v2929_v18 = vpop.f32.mrb[56].mxu1 }
 0x704   : > { %v2987_v19 = vpop.f32.mrb[60].mxu0  ;;  %v2935_v38 = vadd.f32 %v2929_v18, %v2873_v11  ;;  %v7556_v20 = vpop.f32.mrb[57].mxu1 }
 0x705   : > { %v7564_v22 = vpop.f32.mrb[61].mxu0  ;;  %v2932_v23 = vpop.f32.mrb[58].mxu1 }
 0x706   : > { %v2990_v24 = vpop.f32.mrb[62].mxu0  ;;  %v2993_v25 = vadd.f32 %v2987_v19, %v2935_v38  ;;  %v7557_v26 = vpop.f32.mrb[59].mxu1  ;;  %v8207_v22 = vld [vmem:[%s8507_s24 + $0x20] sm:$0xff]  }
 0x707   : > { %v7565_v27 = vpop.f32.mrb[63].mxu0 }
 0x70b   : > { %v3045_v28 = vpop.f32.mrb[60].mxu1 }
 0x70c   : > { %v3051_v30 = vadd.f32 %v3045_v28, %v2993_v25  ;;  %v7572_v31 = vpop.f32.mrb[61].mxu1  ;;  %v8208_v25 = vld [vmem:[%s8507_s24 + $0x30] sm:$0xff]   ;;  %v8209_v28 = vld [vmem:[%s8507_s24 + $0x28] sm:$0xff]  }
 0x70d   : > { %v3048_v32 = vpop.f32.mrb[62].mxu1 }
 0x70e   : > { %v3059_v33 = vadd.f32 %v8935_v29, %v3051_v30  ;;  %v7573_v34 = vpop.f32.mrb[63].mxu1  ;;  %v8210_v30 = vld [vmem:[%s8507_s24 + $0x38] sm:$0xff]   ;;  %v8211_v32 = vld [vmem:[%s8507_s24 + $0x40] sm:$0xff]  }
 0x710   : > { %v3060_v36 = vmax.f32 %v3059_v33, 0.0 }
 0x712   : > { %3061 = vst.msk [vmem:[#allocation5 + $0x2] sm:$0xff] %vm1083_vm4, %v3060_v36  ;;  %v8212_v36 = vld [vmem:[%s8507_s24 + $0x48] sm:$0xff]  }
 0x719   : > { %v3085_v39 = vld [vmem:[#allocation5 + $0x1] sm:$0xff] }
 0x71a   : > { %v3083_v40 = vld [vmem:[#allocation5] sm:$0xff]  ;;  %v3086_v42 = vpack.c.bf16 %v3085_v39, %v3085_v39 }
 0x71b   : > { %v3084_v43 = vpack.c.bf16 %v3083_v40, %v3083_v40  ;;  %v3197_v46 = vld [vmem:[#allocation5 + $0x2] sm:$0xff]  ;;  %v8213_v40 = vld [vmem:[%s9500_s6 + $0x10] sm:$0xff]  }
 0x71c   : > { %7579 = vmatmul.mubr.msk.bf16.vlgmr.msra.gmra.mrb[64].mxu0 %vm1083_vm4, %v3086_v42  ;;  %v3255_v47 = vld [vmem:[#allocation5 + $0x3] sm:$0xff]  ;;  %v3198_v49 = vpack.c.bf16 %v3197_v46, %v3197_v46  ;;  %v8215_v42 = vld [vmem:[%s9500_s6 + $0x18] sm:$0xff]  }
 0x71d   : > { %7587 = vmatmul.mubr.msk.bf16.vlgmr.msra.gmra.mrb[64].mxu1 %vm1083_vm4, %v3084_v43  ;;  %7591 = vmatpush3.bf16.msra.mxu0 %v8197_v37  ;;  %v3256_v50 = vpack.c.bf16 %v3255_v47, %v3255_v47  ;;  %v3313_v52 = vld [vmem:[#allocation5 + $0x4] sm:$0xff] }
 0x71e   : > { %7599 = vmatpush3.bf16.msra.mxu1 %v8198_v41  ;;  %7592 = vmatprep.subr.bf16.mxu0 %v8441_v1  ;;  %v3314_v53 = vpack.c.bf16 %v3313_v52, %v3313_v52  ;;  %v8214_v41 = vld [vmem:[%s9500_s6] sm:$0xff]   ;;  %v8216_v43 = vld [vmem:[%s9500_s6 + $0x8] sm:$0xff]  }
 0x71f   : > { %7600 = vmatprep.subr.bf16.mxu1 %v8441_v1  ;;  %7594 = vmatprep.mubr.msk.bf16.mxu0 %vm8442_vm0, %v8441_v1 }
 0x720   : > { %7602 = vmatprep.mubr.msk.bf16.mxu1 %vm8442_vm0, %v8441_v1 }
 0x721   : > { %7593 = vmatpush3.bf16.msra.mxu0 %v8199_v44 }
 0x722   : > { %7601 = vmatpush3.bf16.msra.mxu1 %v8200_v45  ;;  %7606 = vmatprep.subr.bf16.mxu0 %v8441_v1 }
 0x723   : > { %7614 = vmatprep.subr.bf16.mxu1 %v8441_v1 }
 0x724   : > { %7595 = vmatmul.mubr.msk.bf16.vlgmr.msra.gmra.mrb[68].mxu0 %vm1083_vm4, %v3198_v49 }
 0x725   : > { %7603 = vmatmul.mubr.msk.bf16.vlgmr.msra.gmra.mrb[68].mxu1 %vm1083_vm4, %v3256_v50  ;;  %7607 = vmatpush3.bf16.msra.mxu0 %v8201_v48 }
 0x726   : > { %7610 = vmatprep.mubr.msk.bf16.mxu0 %vm8442_vm0, %v8441_v1  ;;  %7608 = vmatprep.subr.bf16.mxu0 %v8441_v1 }
 0x727   : > { %7618 = vmatprep.mubr.msk.bf16.mxu1 %vm8442_vm0, %v8441_v1  ;;  %7615 = vmatpush3.bf16.msra.mxu1 %v8203_v54 }
 0x728   : > { %7616 = vmatprep.subr.bf16.mxu1 %v8441_v1 }
 0x729   : > { %7609 = vmatpush3.bf16.msra.mxu0 %v8202_v51 }
 0x72a   : > { %7622 = vmatprep.subr.bf16.mxu0 %v8441_v1 }
 0x72b   : > { %7617 = vmatpush3.bf16.msra.mxu1 %v8205_v56 }
 0x72c   : > { %7611 = vmatmul.mubr.msk.bf16.vlgmr.msra.gmra.mrb[72].mxu0 %vm1083_vm4, %v3314_v53  ;;  %7630 = vmatprep.subr.bf16.mxu1 %v8441_v1 }
 0x72d   : > { %7626 = vmatprep.mubr.msk.bf16.mxu0 %vm8442_vm0, %v8441_v1  ;;  %7623 = vmatpush3.bf16.msra.mxu0 %v8204_v55 }
 0x72e   : > { %7624 = vmatprep.subr.bf16.mxu0 %v8441_v1 }
 0x731   : > { %7625 = vmatpush3.bf16.msra.mxu0 %v8206_v57 }
 0x732   : > { %7638 = vmatprep.subr.bf16.mxu0 %v8441_v1 }
 0x7ef   : > { %v3136_v58 = vpop.f32.mrb[64].mxu0 }
 0x7f0   : > { %v3191_v59 = vpop.f32.mrb[64].mxu1  ;;  %v7580_v61 = vpop.f32.mrb[65].mxu0 }
 0x7f1   : > { %v3192_v60 = vadd.f32 %v3191_v59, %v3136_v58  ;;  %v7588_v0 = vpop.f32.mrb[65].mxu1  ;;  %v3139_v2 = vpop.f32.mrb[66].mxu0 }
 0x7f2   : > { %v3194_v3 = vpop.f32.mrb[66].mxu1  ;;  %v7581_v62 = vpop.f32.mrb[67].mxu0 }
 0x7f3   : > { %v7589_v35 = vpop.f32.mrb[67].mxu1 }
 0x7f7   : > { %v3248_v21 = vpop.f32.mrb[68].mxu0 }
 0x7f8   : > { %v3306_v4 = vpop.f32.mrb[68].mxu1  ;;  %v3254_v5 = vadd.f32 %v3248_v21, %v3192_v60  ;;  %v7596_v6 = vpop.f32.mrb[69].mxu0 }
 0x7f9   : > { %v7604_v8 = vpop.f32.mrb[69].mxu1  ;;  %v3251_v9 = vpop.f32.mrb[70].mxu0  ;;  %v8217_v6 = vld [vmem:[%s9500_s6 + $0x20] sm:$0xff]  }
 0x7fa   : > { %v3309_v10 = vpop.f32.mrb[70].mxu1  ;;  %v3312_v7 = vadd.f32 %v3306_v4, %v3254_v5  ;;  %v7597_v11 = vpop.f32.mrb[71].mxu0 }
 0x7fb   : > { %v7605_v12 = vpop.f32.mrb[71].mxu1  ;;  %v8218_v10 = vld [vmem:[%s9500_s6 + $0x30] sm:$0xff]  }
 0x7fc   : > { %v8219_v12 = vld [vmem:[%s9500_s6 + $0x28] sm:$0xff]  }
 0x7ff   : > { %v3364_v13 = vpop.f32.mrb[72].mxu0 }
 0x800   : > { %v3370_v15 = vadd.f32 %v3364_v13, %v3312_v7  ;;  %v7612_v16 = vpop.f32.mrb[73].mxu0  ;;  %v8220_v13 = vld [vmem:[%s9500_s6 + $0x38] sm:$0xff]  }
 0x801   : > { %v3367_v17 = vpop.f32.mrb[74].mxu0  ;;  %v8221_v16 = vld [vmem:[%s9500_s6 + $0x40] sm:$0xff]  }
 0x802   : > { %v3378_v18 = vadd.f32 %v8975_v14, %v3370_v15  ;;  %v7613_v19 = vpop.f32.mrb[75].mxu0 }
 0x803   : > { %v8222_v19 = vld [vmem:[%s9500_s6 + $0x48] sm:$0xff]   ;;  %s1073_s6 = scalar_lea.vmem %s9515_s5, %s8684_s11  ;;  %s9516_s5 = sld [smem:[#allocation26_spill]] }
 0x804   : > { %v3379_v38 = vadd.f32 %v3378_v18, %v8907_v63  ;;  %s9518_s11 = sld [smem:[#allocation25_spill]] }
 0x806   : > { %v3380_v20 = vmax.f32 %v3379_v38, 0.0 }
 0x808   : > { %3381 = vst.msk [vmem:[#allocation4 + $0x2] sm:$0xff] %vm1083_vm4, %v3380_v20 }
 0x80f   : > { %v3404_v23 = vld [vmem:[#allocation4 + $0x1] sm:$0xff] }
 0x810   : > { %v3402_v24 = vld [vmem:[#allocation4] sm:$0xff]  ;;  %v3405_v26 = vpack.c.bf16 %v3404_v23, %v3404_v23  ;;  %v8224_v23 = vld [vmem:[%s9508_s23] sm:$0xff]  }
 0x811   : > { %v3403_v27 = vpack.c.bf16 %v3402_v24, %v3402_v24  ;;  %v8992_v63 = vld [vmem:[#allocation4 + $0x2] sm:$0xff] }
 0x812   : > { %7619 = vmatmul.mubr.msk.bf16.vlgmr.msra.gmra.mrb[72].mxu1 %vm1083_vm4, %v3405_v26  ;;  %v3574_v31 = vld [vmem:[#allocation4 + $0x3] sm:$0xff]  ;;  %v3517_v33 = vpack.c.bf16 %v8992_v63, %v8992_v63 }
 0x813   : > { %7627 = vmatmul.mubr.msk.bf16.vlgmr.msra.gmra.mrb[76].mxu0 %vm1083_vm4, %v3403_v27  ;;  %7631 = vmatpush3.bf16.msra.mxu1 %v8207_v22  ;;  %v3575_v34 = vpack.c.bf16 %v3574_v31, %v3574_v31  ;;  %v3632_v37 = vld [vmem:[#allocation4 + $0x4] sm:$0xff] }
 0x814   : > { %7639 = vmatpush3.bf16.msra.mxu0 %v8208_v25  ;;  %7632 = vmatprep.subr.bf16.mxu1 %v8441_v1  ;;  %v3633_v39 = vpack.c.bf16 %v3632_v37, %v3632_v37  ;;  %v8223_v22 = vld [vmem:[%s9508_s23 + $0x10] sm:$0xff]   ;;  %v8225_v24 = vld [vmem:[%s9508_s23 + $0x18] sm:$0xff]   ;;  %v8226_v25 = vld [vmem:[%s9508_s23 + $0x8] sm:$0xff]  }
 0x815   : > { %7640 = vmatprep.subr.bf16.mxu0 %v8441_v1  ;;  %7634 = vmatprep.mubr.msk.bf16.mxu1 %vm8442_vm0, %v8441_v1 }
 0x816   : > { %7642 = vmatprep.mubr.msk.bf16.mxu0 %vm8442_vm0, %v8441_v1 }
 0x817   : > { %7633 = vmatpush3.bf16.msra.mxu1 %v8209_v28 }
 0x818   : > { %7641 = vmatpush3.bf16.msra.mxu0 %v8210_v30  ;;  %7646 = vmatprep.subr.bf16.mxu1 %v8441_v1 }
 0x819   : > { %7654 = vmatprep.subr.bf16.mxu0 %v8441_v1 }
 0x81a   : > { %7635 = vmatmul.mubr.msk.bf16.vlgmr.msra.gmra.mrb[76].mxu1 %vm1083_vm4, %v3517_v33 }
 0x81b   : > { %7643 = vmatmul.mubr.msk.bf16.vlgmr.msra.gmra.mrb[80].mxu0 %vm1083_vm4, %v3575_v34  ;;  %7647 = vmatpush3.bf16.msra.mxu1 %v8211_v32 }
 0x81c   : > { %7650 = vmatprep.mubr.msk.bf16.mxu1 %vm8442_vm0, %v8441_v1  ;;  %7648 = vmatprep.subr.bf16.mxu1 %v8441_v1 }
 0x81d   : > { %7658 = vmatprep.mubr.msk.bf16.mxu0 %vm8442_vm0, %v8441_v1  ;;  %7655 = vmatpush3.bf16.msra.mxu0 %v8213_v40 }
 0x81e   : > { %7656 = vmatprep.subr.bf16.mxu0 %v8441_v1 }
 0x81f   : > { %7649 = vmatpush3.bf16.msra.mxu1 %v8212_v36 }
 0x820   : > { %7662 = vmatprep.subr.bf16.mxu1 %v8441_v1 }
 0x821   : > { %7657 = vmatpush3.bf16.msra.mxu0 %v8215_v42 }
 0x822   : > { %7651 = vmatmul.mubr.msk.bf16.vlgmr.msra.gmra.mrb[80].mxu1 %vm1083_vm4, %v3633_v39  ;;  %7670 = vmatprep.subr.bf16.mxu0 %v8441_v1 }
 0x823   : > { %7666 = vmatprep.mubr.msk.bf16.mxu1 %vm8442_vm0, %v8441_v1  ;;  %7663 = vmatpush3.bf16.msra.mxu1 %v8214_v41 }
 0x824   : > { %7664 = vmatprep.subr.bf16.mxu1 %v8441_v1 }
 0x827   : > { %7665 = vmatpush3.bf16.msra.mxu1 %v8216_v43 }
 0x828   : > { %7678 = vmatprep.subr.bf16.mxu1 %v8441_v1 }
 0x8e5   : > { %v3455_v44 = vpop.f32.mrb[72].mxu1 }
 0x8e6   : > { %v3510_v45 = vpop.f32.mrb[76].mxu0  ;;  %v7620_v47 = vpop.f32.mrb[73].mxu1 }
 0x8e7   : > { %v3511_v46 = vadd.f32 %v3510_v45, %v3455_v44  ;;  %v7628_v48 = vpop.f32.mrb[77].mxu0  ;;  %v3458_v49 = vpop.f32.mrb[74].mxu1 }
 0x8e8   : > { %v3513_v50 = vpop.f32.mrb[78].mxu0  ;;  %v7621_v51 = vpop.f32.mrb[75].mxu1 }
 0x8e9   : > { %v7629_v52 = vpop.f32.mrb[79].mxu0 }
 0x8ed   : > { %v3567_v53 = vpop.f32.mrb[76].mxu1 }
 0x8ee   : > { %v3625_v54 = vpop.f32.mrb[80].mxu0  ;;  %v3573_v55 = vadd.f32 %v3567_v53, %v3511_v46  ;;  %v7636_v56 = vpop.f32.mrb[77].mxu1 }
 0x8ef   : > { %v7644_v57 = vpop.f32.mrb[81].mxu0  ;;  %v3570_v58 = vpop.f32.mrb[78].mxu1  ;;  %v8227_v56 = vld [vmem:[%s9508_s23 + $0x20] sm:$0xff]  }
 0x8f0   : > { %v3628_v59 = vpop.f32.mrb[82].mxu0  ;;  %v3631_v60 = vadd.f32 %v3625_v54, %v3573_v55  ;;  %v7637_v61 = vpop.f32.mrb[79].mxu1 }
 0x8f1   : > { %v7645_v0 = vpop.f32.mrb[83].mxu0  ;;  %v8228_v59 = vld [vmem:[%s9508_s23 + $0x30] sm:$0xff]  }
 0x8f2   : > { %v8230_v0 = vld [vmem:[%s9508_s23 + $0x38] sm:$0xff]  }
 0x8f5   : > { %v3683_v2 = vpop.f32.mrb[80].mxu1 }
 0x8f6   : > { %v3689_v3 = vadd.f32 %v3683_v2, %v3631_v60  ;;  %v7652_v62 = vpop.f32.mrb[81].mxu1 }
 0x8f7   : > { %v3686_v35 = vpop.f32.mrb[82].mxu1 }
 0x8f8   : > { %v3697_v21 = vadd.f32 %v8935_v29, %v3689_v3  ;;  %v7653_v4 = vpop.f32.mrb[83].mxu1  ;;  %v8231_v3 = vld [vmem:[%s9508_s23 + $0x40] sm:$0xff]  }
 0x8fa   : > { %v3698_v5 = vmax.f32 %v3697_v21, 0.0  ;;  %v8232_v21 = vld [vmem:[%s9508_s23 + $0x48] sm:$0xff]  }
 0x8fc   : > { %3699 = vst.msk [vmem:[#allocation5 + $0x2] sm:$0xff] %vm1083_vm4, %v3698_v5 }
 0x903   : > { %v3723_v8 = vld [vmem:[#allocation5 + $0x1] sm:$0xff] }
 0x904   : > { %v3721_v9 = vld [vmem:[#allocation5] sm:$0xff]  ;;  %v3724_v7 = vpack.c.bf16 %v3723_v8, %v3723_v8 }
 0x905   : > { %v3722_v11 = vpack.c.bf16 %v3721_v9, %v3721_v9  ;;  %v3835_v29 = vld [vmem:[#allocation5 + $0x2] sm:$0xff] }
 0x906   : > { %7659 = vmatmul.mubr.msk.bf16.vlgmr.msra.gmra.mrb[84].mxu0 %vm1083_vm4, %v3724_v7  ;;  %v3893_v15 = vld [vmem:[#allocation5 + $0x3] sm:$0xff]  ;;  %v3836_v17 = vpack.c.bf16 %v3835_v29, %v3835_v29  ;;  %v8237_v7 = vld [vmem:[%s9509_s28 + $0x30] sm:$0xff]  }
 0x907   : > { %7667 = vmatmul.mubr.msk.bf16.vlgmr.msra.gmra.mrb[84].mxu1 %vm1083_vm4, %v3722_v11  ;;  %7671 = vmatpush3.bf16.msra.mxu0 %v8217_v6  ;;  %v3894_v18 = vpack.c.bf16 %v3893_v15, %v3893_v15  ;;  %v3951_v38 = vld [vmem:[#allocation5 + $0x4] sm:$0xff]  ;;  %v8238_v11 = vld [vmem:[%s9509_s28 + $0x10] sm:$0xff]  }
 0x908   : > { %7679 = vmatpush3.bf16.msra.mxu1 %v8218_v10  ;;  %7672 = vmatprep.subr.bf16.mxu0 %v8441_v1  ;;  %v3952_v20 = vpack.c.bf16 %v3951_v38, %v3951_v38  ;;  %v8233_v6 = vld [vmem:[%s9509_s28 + $0x20] sm:$0xff]   ;;  %v8235_v9 = vld [vmem:[%s9509_s28 + $0x28] sm:$0xff]  }
 0x909   : > { %7680 = vmatprep.subr.bf16.mxu1 %v8441_v1  ;;  %7674 = vmatprep.mubr.msk.bf16.mxu0 %vm8442_vm0, %v8441_v1  ;;  %v8234_v8 = vld [vmem:[%s9509_s28] sm:$0xff]   ;;  %v8236_v10 = vld [vmem:[%s9509_s28 + $0x8] sm:$0xff]  }
 0x90a   : > { %7682 = vmatprep.mubr.msk.bf16.mxu1 %vm8442_vm0, %v8441_v1 }
 0x90b   : > { %7673 = vmatpush3.bf16.msra.mxu0 %v8219_v12  ;;  %v8239_v12 = vld [vmem:[%s9509_s28 + $0x38] sm:$0xff]  }
 0x90c   : > { %7681 = vmatpush3.bf16.msra.mxu1 %v8220_v13  ;;  %7686 = vmatprep.subr.bf16.mxu0 %v8441_v1  ;;  %v8240_v13 = vld [vmem:[%s9509_s28 + $0x18] sm:$0xff]  }
 0x90d   : > { %7694 = vmatprep.subr.bf16.mxu1 %v8441_v1 }
 0x90e   : > { %7675 = vmatmul.mubr.msk.bf16.vlgmr.msra.gmra.mrb[88].mxu0 %vm1083_vm4, %v3836_v17 }
 0x90f   : > { %7683 = vmatmul.mubr.msk.bf16.vlgmr.msra.gmra.mrb[88].mxu1 %vm1083_vm4, %v3894_v18  ;;  %7687 = vmatpush3.bf16.msra.mxu0 %v8221_v16 }
 0x910   : > { %7690 = vmatprep.mubr.msk.bf16.mxu0 %vm8442_vm0, %v8441_v1  ;;  %7688 = vmatprep.subr.bf16.mxu0 %v8441_v1 }
 0x911   : > { %7698 = vmatprep.mubr.msk.bf16.mxu1 %vm8442_vm0, %v8441_v1  ;;  %7695 = vmatpush3.bf16.msra.mxu1 %v8223_v22 }
 0x912   : > { %7696 = vmatprep.subr.bf16.mxu1 %v8441_v1 }
 0x913   : > { %7689 = vmatpush3.bf16.msra.mxu0 %v8222_v19 }
 0x914   : > { %7702 = vmatprep.subr.bf16.mxu0 %v8441_v1 }
 0x915   : > { %7697 = vmatpush3.bf16.msra.mxu1 %v8225_v24 }
 0x916   : > { %7691 = vmatmul.mubr.msk.bf16.vlgmr.msra.gmra.mrb[92].mxu0 %vm1083_vm4, %v3952_v20  ;;  %7710 = vmatprep.subr.bf16.mxu1 %v8441_v1 }
 0x917   : > { %7706 = vmatprep.mubr.msk.bf16.mxu0 %vm8442_vm0, %v8441_v1  ;;  %7703 = vmatpush3.bf16.msra.mxu0 %v8224_v23 }
 0x918   : > { %7704 = vmatprep.subr.bf16.mxu0 %v8441_v1 }
 0x91b   : > { %7705 = vmatpush3.bf16.msra.mxu0 %v8226_v25 }
 0x91c   : > { %7718 = vmatprep.subr.bf16.mxu0 %v8441_v1 }
 0x9d9   : > { %v3774_v26 = vpop.f32.mrb[84].mxu0 }
 0x9da   : > { %v3829_v27 = vpop.f32.mrb[84].mxu1  ;;  %v7660_v30 = vpop.f32.mrb[85].mxu0 }
 0x9db   : > { %v3830_v28 = vadd.f32 %v3829_v27, %v3774_v26  ;;  %v7668_v31 = vpop.f32.mrb[85].mxu1  ;;  %v3777_v32 = vpop.f32.mrb[86].mxu0 }
 0x9dc   : > { %v3832_v33 = vpop.f32.mrb[86].mxu1  ;;  %v7661_v34 = vpop.f32.mrb[87].mxu0 }
 0x9dd   : > { %v7669_v36 = vpop.f32.mrb[87].mxu1 }
 0x9de   : > { %v6928_v36 = vld [vmem:[%s9510_s1] ss:$0 sm:$0xff]  ;;  %s9511_s1 = sld [smem:[#allocation22_spill]] }
 0x9e1   : > { %v3886_v37 = vpop.f32.mrb[88].mxu0 }
 0x9e2   : > { %v3944_v39 = vpop.f32.mrb[88].mxu1  ;;  %v3892_v40 = vadd.f32 %v3886_v37, %v3830_v28  ;;  %v7676_v41 = vpop.f32.mrb[89].mxu0 }
 0x9e3   : > { %v7684_v42 = vpop.f32.mrb[89].mxu1  ;;  %v3889_v43 = vpop.f32.mrb[90].mxu0 }
 0x9e4   : > { %v3947_v44 = vpop.f32.mrb[90].mxu1  ;;  %v3950_v45 = vadd.f32 %v3944_v39, %v3892_v40  ;;  %v7677_v46 = vpop.f32.mrb[91].mxu0 }
 0x9e5   : > { %v7685_v47 = vpop.f32.mrb[91].mxu1  ;;  %v8241_v46 = vld [vmem:[%s9509_s28 + $0x40] sm:$0xff]  }
 0x9e9   : > { %v4002_v48 = vpop.f32.mrb[92].mxu0 }
 0x9ea   : > { %v4008_v49 = vadd.f32 %v4002_v48, %v3950_v45  ;;  %v7692_v50 = vpop.f32.mrb[93].mxu0 }
 0x9eb   : > { %v4005_v51 = vpop.f32.mrb[94].mxu0 }
 0x9ec   : > { %v4016_v52 = vadd.f32 %v8975_v14, %v4008_v49  ;;  %v7693_v53 = vpop.f32.mrb[95].mxu0  ;;  %v8229_v14 = vld [vmem:[%s9508_s23 + $0x28] sm:$0xff]   ;;  %v8242_v49 = vld [vmem:[%s9509_s28 + $0x60] sm:$0xff]  }
 0x9ed   : > { %v8244_v53 = vld [vmem:[%s9509_s28 + $0x68] sm:$0xff]  }
 0x9ee   : > { %v4017_v54 = vadd.f32 %v4016_v52, %v8992_v63  ;;  %v8243_v52 = vld [vmem:[%s9509_s28 + $0x48] sm:$0xff]  }
 0x9f0   : > { %v4018_v55 = vmax.f32 %v4017_v54, 0.0  ;;  %v8245_v54 = vld [vmem:[%s9509_s28 + $0x50] sm:$0xff]  }
 0x9f2   : > { %4019 = vst.msk [vmem:[#allocation4 + $0x2] sm:$0xff] %vm1083_vm4, %v4018_v55  ;;  %v8246_v55 = vld [vmem:[%s9509_s28 + $0x70] sm:$0xff]  }
 0x9f9   : > { %v4042_v57 = vld [vmem:[#allocation4 + $0x1] sm:$0xff] }
 0x9fa   : > { %v4040_v58 = vld [vmem:[#allocation4] sm:$0xff]  ;;  %v4043_v60 = vpack.c.bf16 %v4042_v57, %v4042_v57  ;;  %v8248_v57 = vld [vmem:[%s9509_s28 + $0x78] sm:$0xff]  }
 0x9fb   : > { %v4041_v61 = vpack.c.bf16 %v4040_v58, %v4040_v58  ;;  %v4154_v63 = vld [vmem:[#allocation4 + $0x2] sm:$0xff] }
 0x9fc   : > { %7699 = vmatmul.mubr.msk.bf16.vlgmr.msra.gmra.mrb[92].mxu1 %vm1083_vm4, %v4043_v60  ;;  %v4212_v2 = vld [vmem:[#allocation4 + $0x3] sm:$0xff]  ;;  %v4155_v62 = vpack.c.bf16 %v4154_v63, %v4154_v63  ;;  %v8249_v60 = vld [vmem:[%s9509_s28 + $0x80] sm:$0xff]  }
 0x9fd   : > { %7707 = vmatmul.mubr.msk.bf16.vlgmr.msra.gmra.mrb[96].mxu0 %vm1083_vm4, %v4041_v61  ;;  %7711 = vmatpush3.bf16.msra.mxu1 %v8227_v56  ;;  %v4213_v35 = vpack.c.bf16 %v4212_v2, %v4212_v2  ;;  %v4270_v4 = vld [vmem:[#allocation4 + $0x4] sm:$0xff] }
 0x9fe   : > { %7719 = vmatpush3.bf16.msra.mxu0 %v8228_v59  ;;  %7712 = vmatprep.subr.bf16.mxu1 %v8441_v1  ;;  %v4271_v5 = vpack.c.bf16 %v4270_v4, %v4270_v4  ;;  %v8247_v56 = vld [vmem:[%s9509_s28 + $0x58] sm:$0xff]   ;;  %v8251_v63 = vld [vmem:[%s9509_s28 + $0x90] sm:$0xff]   ;;  %v8255_v4 = vld [vmem:[%s9511_s1 + $0x28] sm:$0xff]  }
 0x9ff   : > { %7720 = vmatprep.subr.bf16.mxu0 %v8441_v1  ;;  %7714 = vmatprep.mubr.msk.bf16.mxu1 %vm8442_vm0, %v8441_v1  ;;  %v8252_v2 = vld [vmem:[%s9509_s28 + $0x98] sm:$0xff]  }
 0xa00   : > { %7722 = vmatprep.mubr.msk.bf16.mxu0 %vm8442_vm0, %v8441_v1 }
 0xa01   : > { %7713 = vmatpush3.bf16.msra.mxu1 %v8229_v14 }
 0xa02   : > { %7721 = vmatpush3.bf16.msra.mxu0 %v8230_v0  ;;  %7726 = vmatprep.subr.bf16.mxu1 %v8441_v1  ;;  %v8250_v0 = vld [vmem:[%s9509_s28 + $0x88] sm:$0xff]  }
 0xa03   : > { %7734 = vmatprep.subr.bf16.mxu0 %v8441_v1 }
 0xa04   : > { %7715 = vmatmul.mubr.msk.bf16.vlgmr.msra.gmra.mrb[96].mxu1 %vm1083_vm4, %v4155_v62 }
 0xa05   : > { %7723 = vmatmul.mubr.msk.bf16.vlgmr.msra.gmra.mrb[100].mxu0 %vm1083_vm4, %v4213_v35  ;;  %7727 = vmatpush3.bf16.msra.mxu1 %v8231_v3  ;;  %v8253_v35 = vld [vmem:[%s9511_s1 + $0x20] sm:$0xff]  }
 0xa06   : > { %7730 = vmatprep.mubr.msk.bf16.mxu1 %vm8442_vm0, %v8441_v1  ;;  %7728 = vmatprep.subr.bf16.mxu1 %v8441_v1 }
 0xa07   : > { %7742 = vmatprep.mubr.msk.bf16.mxu0 %vm8442_vm0, %v8441_v1  ;;  %7735 = vmatpush3.bf16.msra.mxu0 %v8233_v6  ;;  %v8257_v6 = vld [vmem:[%s9511_s1 + $0x30] sm:$0xff]  }
 0xa08   : > { %7736 = vmatprep.subr.bf16.mxu0 %v8441_v1 }
 0xa09   : > { %7729 = vmatpush3.bf16.msra.mxu1 %v8232_v21  ;;  %v8254_v21 = vld [vmem:[%s9511_s1] sm:$0xff]  }
 0xa0a   : > { %7746 = vmatprep.subr.bf16.mxu1 %v8441_v1 }
 0xa0b   : > { %7737 = vmatpush3.bf16.msra.mxu0 %v8235_v9  ;;  %v8259_v9 = vld [vmem:[%s9511_s1 + $0x38] sm:$0xff]  }
 0xa0c   : > { %7731 = vmatmul.mubr.msk.bf16.vlgmr.msra.gmra.mrb[100].mxu1 %vm1083_vm4, %v4271_v5  ;;  %7738 = vmatprep.subr.bf16.mxu0 %v8441_v1  ;;  %v8256_v5 = vld [vmem:[%s9511_s1 + $0x8] sm:$0xff]  }
 0xa0d   : > { %7754 = vmatprep.mubr.msk.bf16.mxu1 %vm8442_vm0, %v8441_v1  ;;  %7747 = vmatpush3.bf16.msra.mxu1 %v8234_v8  ;;  %v8258_v8 = vld [vmem:[%s9511_s1 + $0x10] sm:$0xff]  }
 0xa0e   : > { %7748 = vmatprep.subr.bf16.mxu1 %v8441_v1 }
 0xa0f   : > { %7739 = vmatpush3.bf16.msra.mxu0 %v8237_v7 }
 0xa10   : > { %7740 = vmatprep.subr.bf16.mxu0 %v8441_v1 }
 0xa11   : > { %7749 = vmatpush3.bf16.msra.mxu1 %v8236_v10  ;;  %v8260_v10 = vld [vmem:[%s9511_s1 + $0x18] sm:$0xff]  }
 0xa12   : > { %7750 = vmatprep.subr.bf16.mxu1 %v8441_v1 }
 0xa13   : > { %7741 = vmatpush3.bf16.msra.mxu0 %v8239_v12 }
 0xa14   : > { %7758 = vmatprep.subr.bf16.mxu0 %v8441_v1 }
 0xa15   : > { %7751 = vmatpush3.bf16.msra.mxu1 %v8238_v11 }
 0xa16   : > { %7752 = vmatprep.subr.bf16.mxu1 %v8441_v1 }
 0xa19   : > { %7753 = vmatpush3.bf16.msra.mxu1 %v8240_v13 }
 0xa1a   : > { %7770 = vmatprep.subr.bf16.mxu1 %v8441_v1 }
 0xacf   : > { %v4093_v29 = vpop.f32.mrb[92].mxu1 }
 0xad0   : > { %v4148_v15 = vpop.f32.mrb[96].mxu0  ;;  %v7700_v17 = vpop.f32.mrb[93].mxu1 }
 0xad1   : > { %v4149_v16 = vadd.f32 %v4148_v15, %v4093_v29  ;;  %v7708_v18 = vpop.f32.mrb[97].mxu0  ;;  %v4096_v19 = vpop.f32.mrb[94].mxu1 }
 0xad2   : > { %v4151_v38 = vpop.f32.mrb[98].mxu0  ;;  %v7701_v20 = vpop.f32.mrb[95].mxu1 }
 0xad3   : > { %v7709_v22 = vpop.f32.mrb[99].mxu0 }
 0xad7   : > { %v4205_v23 = vpop.f32.mrb[96].mxu1 }
 0xad8   : > { %v4263_v24 = vpop.f32.mrb[100].mxu0  ;;  %v4211_v25 = vadd.f32 %v4205_v23, %v4149_v16  ;;  %v7716_v26 = vpop.f32.mrb[97].mxu1 }
 0xad9   : > { %v7724_v27 = vpop.f32.mrb[101].mxu0  ;;  %v4208_v28 = vpop.f32.mrb[98].mxu1 }
 0xada   : > { %v4266_v30 = vpop.f32.mrb[102].mxu0  ;;  %v4269_v31 = vadd.f32 %v4263_v24, %v4211_v25  ;;  %v7717_v32 = vpop.f32.mrb[99].mxu1 }
 0xadb   : > { %v7725_v33 = vpop.f32.mrb[103].mxu0 }
 0xadf   : > { %v4321_v34 = vpop.f32.mrb[100].mxu1 }
 0xae0   : > { %v4327_v37 = vadd.f32 %v4321_v34, %v4269_v31  ;;  %v7732_v39 = vpop.f32.mrb[101].mxu1  ;;  %v9163_v31 = vld [vmem:[%s9512_s3] ss:$0 sm:$0xff]  ;;  %s9513_s3 = sld [smem:[#allocation23_spill]] }
 0xae1   : > { %v4324_v40 = vpop.f32.mrb[102].mxu1 }
 0xae2   : > { %v4335_v41 = vadd.f32 %v6928_v36, %v4327_v37  ;;  %v7733_v42 = vpop.f32.mrb[103].mxu1  ;;  %v8261_v40 = vld [vmem:[%s9511_s1 + $0x40] sm:$0xff]  }
 0xae4   : > { %v4336_v43 = vmax.f32 %v4335_v41, 0.0 }
 0xae6   : > { %v4338_v44 = vrot.slane %v4336_v43, 1 }
 0xae8   : > { %v4340_v45 = vmax.f32 %v4336_v43, %v4338_v44  ;;  %v8262_v43 = vld [vmem:[%s9511_s1 + $0x60] sm:$0xff]  }
 0xaea   : > { %4342 = vst.msk [vmem:[#allocation6 + $0x2] sm:$0x1] %vm4341_vm11, %v4340_v45 }
 0xaeb   : > { %4344 = vst.msk [vmem:[#allocation6 + $0x1] sm:$0x4] %vm4343_vm12, %v4340_v45 }
 0xaec   : > { %4346 = vst.msk [vmem:[#allocation6] sm:$0x10] %vm4345_vm13, %v4340_v45 }
 0xaed   : > { %4348 = vst.msk [vmem:[#allocation6 - $0x1] sm:$0x40] %vm4347_vm14, %v4340_v45 }
 0xaf2   : > { %v4389_v48 = vld [vmem:[#allocation6] sm:$0xf] }
 0xaf3   : > { %v4391_v47 = vld [vmem:[#allocation6 + $0x1] sm:$0xf]  ;;  %v4390_v51 = vpack.c.bf16 %v4389_v48, %v4389_v48 }
 0xaf4   : > { %v4392_v50 = vpack.c.bf16 %v4391_v47, %v4391_v47  ;;  %v4527_v58 = vld [vmem:[#allocation6 + $0x2] sm:$0xf]  ;;  %v8264_v47 = vld [vmem:[%s9511_s1 + $0x68] sm:$0xff]  }
 0xaf5   : > { %7755 = vmatmul.mubr.msk.bf16.vlgmr.msra.gmra.mrb[104].mxu1 %vm1089_vm10, %v4390_v51  ;;  %v4597_v59 = vld [vmem:[#allocation6 + $0x3] sm:$0xf]  ;;  %v4528_v61 = vpack.c.bf16 %v4527_v58, %v4527_v58  ;;  %v8268_v51 = vld [vmem:[%s9511_s1 + $0x78] sm:$0xff]  }
 0xaf6   : > { %7743 = vmatmul.mubr.msk.bf16.vlgmr.msra.gmra.mrb[104].mxu0 %vm1089_vm10, %v4392_v50  ;;  %7771 = vmatpush3.bf16.msra.mxu1 %v8242_v49  ;;  %v4598_v14 = vpack.c.bf16 %v4597_v59, %v4597_v59  ;;  %v4667_v3 = vld [vmem:[#allocation6 + $0x4] sm:$0xf]  ;;  %v8267_v50 = vld [vmem:[%s9511_s1 + $0x58] sm:$0xff]  }
 0xaf7   : > { %7759 = vmatpush3.bf16.msra.mxu0 %v8241_v46  ;;  %7772 = vmatprep.subr.bf16.mxu1 %v8441_v1  ;;  %v4668_v62 = vpack.c.bf16 %v4667_v3, %v4667_v3  ;;  %v8263_v46 = vld [vmem:[%s9511_s1 + $0x48] sm:$0xff]   ;;  %v8265_v48 = vld [vmem:[%s9511_s1 + $0x50] sm:$0xff]   ;;  %v8272_v59 = vld [vmem:[%s9511_s1 + $0x98] sm:$0xff]  }
 0xaf8   : > { %7760 = vmatprep.subr.bf16.mxu0 %v8441_v1  ;;  %7766 = vmatprep.mubr.msk.bf16.mxu0 %vm8442_vm0, %v8441_v1  ;;  %v8266_v49 = vld [vmem:[%s9511_s1 + $0x70] sm:$0xff]  }
 0xaf9   : > { %7778 = vmatprep.mubr.msk.bf16.mxu1 %vm8442_vm0, %v8441_v1  ;;  %v8271_v58 = vld [vmem:[%s9511_s1 + $0x90] sm:$0xff]  }
 0xafa   : > { %7773 = vmatpush3.bf16.msra.mxu1 %v8244_v53  ;;  %v8277_v3 = vld [vmem:[%s9509_s28 + $0x30] sm:$0xff]  }
 0xafb   : > { %7761 = vmatpush3.bf16.msra.mxu0 %v8243_v52  ;;  %7774 = vmatprep.subr.bf16.mxu1 %v8441_v1 }
 0xafc   : > { %7762 = vmatprep.subr.bf16.mxu0 %v8441_v1 }
 0xafe   : > { %7775 = vmatpush3.bf16.msra.mxu1 %v8246_v55 }
 0xaff   : > { %7763 = vmatpush3.bf16.msra.mxu0 %v8245_v54  ;;  %7776 = vmatprep.subr.bf16.mxu1 %v8441_v1  ;;  %v8269_v54 = vld [vmem:[%s9511_s1 + $0x80] sm:$0xff]  }
 0xb00   : > { %7764 = vmatprep.subr.bf16.mxu0 %v8441_v1 }
 0xb02   : > { %7777 = vmatpush3.bf16.msra.mxu1 %v8248_v57  ;;  %v8270_v57 = vld [vmem:[%s9511_s1 + $0x88] sm:$0xff]  }
 0xb03   : > { %7765 = vmatpush3.bf16.msra.mxu0 %v8247_v56  ;;  %7794 = vmatprep.subr.bf16.mxu1 %v8441_v1 }
 0xb04   : > { %7782 = vmatprep.subr.bf16.mxu0 %v8441_v1 }
 0xb05   : > { %7779 = vmatmul.mubr.msk.bf16.vlgmr.msra.gmra.mrb[108].mxu1 %vm1089_vm10, %v4598_v14  ;;  %v8273_v14 = vld [vmem:[%s9509_s28 + $0x20] sm:$0xff]  }
 0xb06   : > { %7767 = vmatmul.mubr.msk.bf16.vlgmr.msra.gmra.mrb[108].mxu0 %vm1089_vm10, %v4528_v61  ;;  %7802 = vmatprep.mubr.msk.bf16.mxu1 %vm8442_vm0, %v8441_v1 }
 0xb07   : > { %7783 = vmatpush3.bf16.msra.mxu0 %v8249_v60  ;;  %7790 = vmatprep.mubr.msk.bf16.mxu0 %vm8442_vm0, %v8441_v1 }
 0xb08   : > { %7784 = vmatprep.subr.bf16.mxu0 %v8441_v1  ;;  %7795 = vmatpush3.bf16.msra.mxu1 %v8253_v35  ;;  %v8279_v35 = vld [vmem:[%s9509_s28 + $0x38] sm:$0xff]  }
 0xb09   : > { %7796 = vmatprep.subr.bf16.mxu1 %v8441_v1 }
 0xb0b   : > { %7785 = vmatpush3.bf16.msra.mxu0 %v8250_v0  ;;  %v8274_v0 = vld [vmem:[%s9509_s28] sm:$0xff]  }
 0xb0c   : > { %7786 = vmatprep.subr.bf16.mxu0 %v8441_v1  ;;  %7797 = vmatpush3.bf16.msra.mxu1 %v8255_v4 }
 0xb0d   : > { %7798 = vmatprep.subr.bf16.mxu1 %v8441_v1 }
 0xb0f   : > { %7787 = vmatpush3.bf16.msra.mxu0 %v8251_v63  ;;  %v8275_v63 = vld [vmem:[%s9509_s28 + $0x28] sm:$0xff]  }
 0xb10   : > { %7788 = vmatprep.subr.bf16.mxu0 %v8441_v1  ;;  %7799 = vmatpush3.bf16.msra.mxu1 %v8257_v6 }
 0xb11   : > { %7800 = vmatprep.subr.bf16.mxu1 %v8441_v1 }
 0xb13   : > { %7789 = vmatpush3.bf16.msra.mxu0 %v8252_v2  ;;  %v8276_v2 = vld [vmem:[%s9509_s28 + $0x8] sm:$0xff]  }
 0xb14   : > { %7806 = vmatprep.subr.bf16.mxu0 %v8441_v1  ;;  %7801 = vmatpush3.bf16.msra.mxu1 %v8259_v9 }
 0xb15   : > { %7818 = vmatprep.subr.bf16.mxu1 %v8441_v1 }
 0xb16   : > { %7791 = vmatmul.mubr.msk.bf16.vlgmr.msra.gmra.mrb[112].mxu0 %vm1089_vm10, %v4668_v62  ;;  %v8278_v62 = vld [vmem:[%s9509_s28 + $0x10] sm:$0xff]  }
 0xb17   : > { %7814 = vmatprep.mubr.msk.bf16.mxu0 %vm8442_vm0, %v8441_v1  ;;  %7807 = vmatpush3.bf16.msra.mxu0 %v8254_v21  ;;  %v8280_v21 = vld [vmem:[%s9509_s28 + $0x18] sm:$0xff]  }
 0xb18   : > { %7808 = vmatprep.subr.bf16.mxu0 %v8441_v1 }
 0xb1b   : > { %7809 = vmatpush3.bf16.msra.mxu0 %v8256_v5 }
 0xb1c   : > { %7810 = vmatprep.subr.bf16.mxu0 %v8441_v1 }
 0xb1f   : > { %7811 = vmatpush3.bf16.msra.mxu0 %v8258_v8 }
 0xb20   : > { %7812 = vmatprep.subr.bf16.mxu0 %v8441_v1 }
 0xb23   : > { %7813 = vmatpush3.bf16.msra.mxu0 %v8260_v10 }
 0xb24   : > { %7830 = vmatprep.subr.bf16.mxu0 %v8441_v1 }
 0xbc8   : > { %v4521_v11 = vpop.f32.mrb[104].mxu1 }
 0xbc9   : > { %v4454_v7 = vpop.f32.mrb[104].mxu0  ;;  %v7756_v29 = vpop.f32.mrb[105].mxu1 }
 0xbca   : > { %v4522_v12 = vadd.f32 %v4521_v11, %v4454_v7  ;;  %v7744_v13 = vpop.f32.mrb[105].mxu0  ;;  %v4524_v16 = vpop.f32.mrb[106].mxu1 }
 0xbcb   : > { %v4457_v15 = vpop.f32.mrb[106].mxu0  ;;  %v7757_v18 = vpop.f32.mrb[107].mxu1 }
 0xbcc   : > { %v7745_v17 = vpop.f32.mrb[107].mxu0 }
 0xbd8   : > { %v4660_v38 = vpop.f32.mrb[108].mxu1 }
 0xbd9   : > { %v4590_v19 = vpop.f32.mrb[108].mxu0  ;;  %v7780_v23 = vpop.f32.mrb[109].mxu1 }
 0xbda   : > { %v4596_v20 = vadd.f32 %v4590_v19, %v4522_v12  ;;  %v7768_v22 = vpop.f32.mrb[109].mxu0  ;;  %v4663_v25 = vpop.f32.mrb[110].mxu1 }
 0xbdb   : > { %v4593_v24 = vpop.f32.mrb[110].mxu0  ;;  %v7781_v28 = vpop.f32.mrb[111].mxu1 }
 0xbdc   : > { %v4666_v26 = vadd.f32 %v4660_v38, %v4596_v20  ;;  %v7769_v27 = vpop.f32.mrb[111].mxu0  ;;  %v9223_v24 = vld [vmem:[%s9513_s3] ss:$0 sm:$0xff]  ;;  %s9514_s3 = sld [smem:[#allocation24_spill]] }
 0xbe9   : > { %v4730_v30 = vpop.f32.mrb[112].mxu0 }
 0xbea   : > { %v4736_v32 = vadd.f32 %v4730_v30, %v4666_v26  ;;  %v7792_v33 = vpop.f32.mrb[113].mxu0 }
 0xbeb   : > { %v4733_v34 = vpop.f32.mrb[114].mxu0 }
 0xbec   : > { %v4744_v36 = vadd.f32 %v9163_v31, %v4736_v32  ;;  %v7793_v37 = vpop.f32.mrb[115].mxu0  ;;  %v4748_v32 = vld [vmem:[#allocation6 + $0x2] sm:$0xf] }
 0xbee   : > { %v4745_v39 = vmax.f32 %v4744_v36, 0.0  ;;  %v8281_v36 = vld [vmem:[%s9509_s28 + $0x40] sm:$0xff]  }
 0xbf0   : > { %4747 = vst.msk [vmem:[#allocation7 + $0x2] sm:$0xf] %vm4746_vm15, %v4745_v39 }
 0xbf7   : > { %v4791_v41 = vld [vmem:[#allocation7 + $0x1] sm:$0xf] }
 0xbf8   : > { %v4789_v42 = vld [vmem:[#allocation7] sm:$0xf]  ;;  %v4792_v44 = vpack.c.bf16 %v4791_v41, %v4791_v41  ;;  %v5067_v60 = vld [vmem:[#allocation7 + $0x4] sm:$0xf] }
 0xbf9   : > { %v4790_v45 = vpack.c.bf16 %v4789_v42, %v4789_v42  ;;  %v4927_v52 = vld [vmem:[#allocation7 + $0x2] sm:$0xf]  ;;  %v5068_v61 = vpack.c.bf16 %v5067_v60, %v5067_v60  ;;  %v8294_v60 = vld [vmem:[%s9511_s1] sm:$0xff]  }
 0xbfa   : > { %7803 = vmatmul.mubr.msk.bf16.vlgmr.msra.gmra.mrb[112].mxu1 %vm1089_vm10, %v4792_v44  ;;  %v4997_v53 = vld [vmem:[#allocation7 + $0x3] sm:$0xf]  ;;  %v4928_v55 = vpack.c.bf16 %v4927_v52, %v4927_v52  ;;  %v8284_v44 = vld [vmem:[%s9509_s28 + $0x68] sm:$0xff]  }
 0xbfb   : > { %7815 = vmatmul.mubr.msk.bf16.vlgmr.msra.gmra.mrb[116].mxu0 %vm1089_vm10, %v4790_v45  ;;  %7819 = vmatpush3.bf16.msra.mxu1 %v8261_v40  ;;  %v4998_v56 = vpack.c.bf16 %v4997_v53, %v4997_v53  ;;  %v8282_v40 = vld [vmem:[%s9509_s28 + $0x60] sm:$0xff]   ;;  %v8285_v45 = vld [vmem:[%s9509_s28 + $0x50] sm:$0xff]  }
 0xbfc   : > { %7831 = vmatpush3.bf16.msra.mxu0 %v8262_v43  ;;  %7820 = vmatprep.subr.bf16.mxu1 %v8441_v1  ;;  %v8283_v43 = vld [vmem:[%s9509_s28 + $0x48] sm:$0xff]  }
 0xbfd   : > { %7832 = vmatprep.subr.bf16.mxu0 %v8441_v1  ;;  %7826 = vmatprep.mubr.msk.bf16.mxu1 %vm8442_vm0, %v8441_v1 }
 0xbfe   : > { %7838 = vmatprep.mubr.msk.bf16.mxu0 %vm8442_vm0, %v8441_v1 }
 0xbff   : > { %7821 = vmatpush3.bf16.msra.mxu1 %v8263_v46  ;;  %v8286_v46 = vld [vmem:[%s9509_s28 + $0x70] sm:$0xff]  }
 0xc00   : > { %7833 = vmatpush3.bf16.msra.mxu0 %v8264_v47  ;;  %7822 = vmatprep.subr.bf16.mxu1 %v8441_v1  ;;  %v8287_v47 = vld [vmem:[%s9509_s28 + $0x58] sm:$0xff]  }
 0xc01   : > { %7834 = vmatprep.subr.bf16.mxu0 %v8441_v1 }
 0xc03   : > { %7823 = vmatpush3.bf16.msra.mxu1 %v8265_v48  ;;  %v8288_v48 = vld [vmem:[%s9509_s28 + $0x78] sm:$0xff]  }
 0xc04   : > { %7835 = vmatpush3.bf16.msra.mxu0 %v8266_v49  ;;  %7824 = vmatprep.subr.bf16.mxu1 %v8441_v1 }
 0xc05   : > { %7836 = vmatprep.subr.bf16.mxu0 %v8441_v1 }
 0xc07   : > { %7825 = vmatpush3.bf16.msra.mxu1 %v8267_v50 }
 0xc08   : > { %7837 = vmatpush3.bf16.msra.mxu0 %v8268_v51  ;;  %7842 = vmatprep.subr.bf16.mxu1 %v8441_v1  ;;  %v8289_v51 = vld [vmem:[%s9509_s28 + $0x80] sm:$0xff]  }
 0xc09   : > { %7854 = vmatprep.subr.bf16.mxu0 %v8441_v1 }
 0xc0a   : > { %7827 = vmatmul.mubr.msk.bf16.vlgmr.msra.gmra.mrb[116].mxu1 %vm1089_vm10, %v4928_v55  ;;  %v8291_v55 = vld [vmem:[%s9509_s28 + $0x90] sm:$0xff]  }
 0xc0b   : > { %7839 = vmatmul.mubr.msk.bf16.vlgmr.msra.gmra.mrb[120].mxu0 %vm1089_vm10, %v4998_v56  ;;  %7843 = vmatpush3.bf16.msra.mxu1 %v8269_v54  ;;  %v8290_v54 = vld [vmem:[%s9509_s28 + $0x88] sm:$0xff]   ;;  %v8292_v56 = vld [vmem:[%s9509_s28 + $0x98] sm:$0xff]  }
 0xc0c   : > { %7850 = vmatprep.mubr.msk.bf16.mxu1 %vm8442_vm0, %v8441_v1  ;;  %7844 = vmatprep.subr.bf16.mxu1 %v8441_v1 }
 0xc0d   : > { %7862 = vmatprep.mubr.msk.bf16.mxu0 %vm8442_vm0, %v8441_v1  ;;  %7855 = vmatpush3.bf16.msra.mxu0 %v8273_v14  ;;  %v8296_v14 = vld [vmem:[%s9511_s1 + $0x8] sm:$0xff]  }
 0xc0e   : > { %7856 = vmatprep.subr.bf16.mxu0 %v8441_v1 }
 0xc0f   : > { %7845 = vmatpush3.bf16.msra.mxu1 %v8270_v57 }
 0xc10   : > { %7846 = vmatprep.subr.bf16.mxu1 %v8441_v1 }
 0xc11   : > { %7857 = vmatpush3.bf16.msra.mxu0 %v8275_v63  ;;  %v8298_v63 = vld [vmem:[%s9511_s1 + $0x10] sm:$0xff]  }
 0xc12   : > { %7858 = vmatprep.subr.bf16.mxu0 %v8441_v1 }
 0xc13   : > { %7847 = vmatpush3.bf16.msra.mxu1 %v8271_v58 }
 0xc14   : > { %7848 = vmatprep.subr.bf16.mxu1 %v8441_v1 }
 0xc15   : > { %7859 = vmatpush3.bf16.msra.mxu0 %v8277_v3  ;;  %v8300_v3 = vld [vmem:[%s9511_s1 + $0x18] sm:$0xff]  }
 0xc16   : > { %7860 = vmatprep.subr.bf16.mxu0 %v8441_v1 }
 0xc17   : > { %7849 = vmatpush3.bf16.msra.mxu1 %v8272_v59  ;;  %v8293_v59 = vld [vmem:[%s9511_s1 + $0x20] sm:$0xff]  }
 0xc18   : > { %7866 = vmatprep.subr.bf16.mxu1 %v8441_v1 }
 0xc19   : > { %7861 = vmatpush3.bf16.msra.mxu0 %v8279_v35 }
 0xc1a   : > { %7851 = vmatmul.mubr.msk.bf16.vlgmr.msra.gmra.mrb[120].mxu1 %vm1089_vm10, %v5068_v61  ;;  %7878 = vmatprep.subr.bf16.mxu0 %v8441_v1  ;;  %v8295_v61 = vld [vmem:[%s9511_s1 + $0x28] sm:$0xff]  }
 0xc1b   : > { %7874 = vmatprep.mubr.msk.bf16.mxu1 %vm8442_vm0, %v8441_v1  ;;  %7867 = vmatpush3.bf16.msra.mxu1 %v8274_v0  ;;  %v8297_v0 = vld [vmem:[%s9511_s1 + $0x30] sm:$0xff]  }
 0xc1c   : > { %7868 = vmatprep.subr.bf16.mxu1 %v8441_v1 }
 0xc1f   : > { %7869 = vmatpush3.bf16.msra.mxu1 %v8276_v2  ;;  %v8299_v2 = vld [vmem:[%s9511_s1 + $0x38] sm:$0xff]  }
 0xc20   : > { %7870 = vmatprep.subr.bf16.mxu1 %v8441_v1 }
 0xc23   : > { %7871 = vmatpush3.bf16.msra.mxu1 %v8278_v62 }
 0xc24   : > { %7872 = vmatprep.subr.bf16.mxu1 %v8441_v1 }
 0xc27   : > { %7873 = vmatpush3.bf16.msra.mxu1 %v8280_v21 }
 0xc28   : > { %7890 = vmatprep.subr.bf16.mxu1 %v8441_v1 }
 0xccd   : > { %v4854_v4 = vpop.f32.mrb[112].mxu1 }
 0xcce   : > { %v4921_v5 = vpop.f32.mrb[116].mxu0  ;;  %v7804_v8 = vpop.f32.mrb[113].mxu1 }
 0xccf   : > { %v4922_v6 = vadd.f32 %v4921_v5, %v4854_v4  ;;  %v7816_v9 = vpop.f32.mrb[117].mxu0  ;;  %v4857_v10 = vpop.f32.mrb[114].mxu1 }
 0xcd0   : > { %v4924_v7 = vpop.f32.mrb[118].mxu0  ;;  %v7805_v11 = vpop.f32.mrb[115].mxu1 }
 0xcd1   : > { %v7817_v12 = vpop.f32.mrb[119].mxu0 }
 0xcdd   : > { %v4990_v13 = vpop.f32.mrb[116].mxu1 }
 0xcde   : > { %v5060_v29 = vpop.f32.mrb[120].mxu0  ;;  %v4996_v15 = vadd.f32 %v4990_v13, %v4922_v6  ;;  %v7828_v16 = vpop.f32.mrb[117].mxu1 }
 0xcdf   : > { %v7840_v17 = vpop.f32.mrb[121].mxu0  ;;  %v4993_v18 = vpop.f32.mrb[118].mxu1 }
 0xce0   : > { %v5063_v19 = vpop.f32.mrb[122].mxu0  ;;  %v5066_v38 = vadd.f32 %v5060_v29, %v4996_v15  ;;  %v7829_v20 = vpop.f32.mrb[119].mxu1 }
 0xce1   : > { %v7841_v22 = vpop.f32.mrb[123].mxu0 }
 0xced   : > { %v5130_v23 = vpop.f32.mrb[120].mxu1 }
 0xcee   : > { %v5136_v25 = vadd.f32 %v5130_v23, %v5066_v38  ;;  %v7852_v26 = vpop.f32.mrb[121].mxu1 }
 0xcef   : > { %v5133_v27 = vpop.f32.mrb[122].mxu1 }
 0xcf0   : > { %v5144_v28 = vadd.f32 %v9223_v24, %v5136_v25  ;;  %v7853_v30 = vpop.f32.mrb[123].mxu1 }
 0xcf2   : > { %v5145_v33 = vadd.f32 %v5144_v28, %v4748_v32  ;;  %v8301_v28 = vld [vmem:[%s9511_s1 + $0x40] sm:$0xff]  }
 0xcf4   : > { %v5146_v34 = vmax.f32 %v5145_v33, 0.0  ;;  %v8302_v33 = vld [vmem:[%s9511_s1 + $0x60] sm:$0xff]  }
 0xcf6   : > { %5147 = vst.msk [vmem:[#allocation6 + $0x2] sm:$0xf] %vm4746_vm15, %v5146_v34 }
 0xcfd   : > { %v5190_v37 = vld [vmem:[#allocation6 + $0x1] sm:$0xf] }
 0xcfe   : > { %v5188_v39 = vld [vmem:[#allocation6] sm:$0xf]  ;;  %v5191_v41 = vpack.c.bf16 %v5190_v37, %v5190_v37  ;;  %v5466_v57 = vld [vmem:[#allocation6 + $0x4] sm:$0xf]  ;;  %v8304_v37 = vld [vmem:[%s9511_s1 + $0x68] sm:$0xff]  }
 0xcff   : > { %v5189_v42 = vpack.c.bf16 %v5188_v39, %v5188_v39  ;;  %v5326_v49 = vld [vmem:[#allocation6 + $0x2] sm:$0xf]  ;;  %v5467_v58 = vpack.c.bf16 %v5466_v57, %v5466_v57  ;;  %v8313_v57 = vld [vmem:[%s9516_s5] sm:$0xff]  }
 0xd00   : > { %7863 = vmatmul.mubr.msk.bf16.vlgmr.msra.gmra.mrb[124].mxu0 %vm1089_vm10, %v5191_v41  ;;  %v5396_v50 = vld [vmem:[#allocation6 + $0x3] sm:$0xf]  ;;  %v5327_v52 = vpack.c.bf16 %v5326_v49, %v5326_v49  ;;  %v8307_v41 = vld [vmem:[%s9511_s1 + $0x58] sm:$0xff]  }
 0xd01   : > { %7875 = vmatmul.mubr.msk.bf16.vlgmr.msra.gmra.mrb[124].mxu1 %vm1089_vm10, %v5189_v42  ;;  %7879 = vmatpush3.bf16.msra.mxu0 %v8281_v36  ;;  %v5397_v53 = vpack.c.bf16 %v5396_v50, %v5396_v50  ;;  %v8305_v39 = vld [vmem:[%s9511_s1 + $0x50] sm:$0xff]   ;;  %v8308_v42 = vld [vmem:[%s9511_s1 + $0x78] sm:$0xff]   ;;  %v8310_v50 = vld [vmem:[%s9511_s1 + $0x88] sm:$0xff]  }
 0xd02   : > { %7891 = vmatpush3.bf16.msra.mxu1 %v8282_v40  ;;  %7880 = vmatprep.subr.bf16.mxu0 %v8441_v1  ;;  %v8306_v40 = vld [vmem:[%s9511_s1 + $0x70] sm:$0xff]  }
 0xd03   : > { %7892 = vmatprep.subr.bf16.mxu1 %v8441_v1  ;;  %7886 = vmatprep.mubr.msk.bf16.mxu0 %vm8442_vm0, %v8441_v1 }
 0xd04   : > { %7898 = vmatprep.mubr.msk.bf16.mxu1 %vm8442_vm0, %v8441_v1 }
 0xd05   : > { %7881 = vmatpush3.bf16.msra.mxu0 %v8283_v43  ;;  %v5948_v43 = vld [vmem:[%s9514_s3] sm:$0x1]  ;;  %s9519_s3 = sld [smem:[#allocation30_spill]] }
 0xd06   : > { %7893 = vmatpush3.bf16.msra.mxu1 %v8284_v44  ;;  %7882 = vmatprep.subr.bf16.mxu0 %v8441_v1  ;;  %v5956_v49 = vsel %vm5954_vm1, %v5948_v43, 0 }
 0xd07   : > { %7894 = vmatprep.subr.bf16.mxu1 %v8441_v1 }
 0xd09   : > { %7883 = vmatpush3.bf16.msra.mxu0 %v8285_v45 }
 0xd0a   : > { %7895 = vmatpush3.bf16.msra.mxu1 %v8286_v46  ;;  %7884 = vmatprep.subr.bf16.mxu0 %v8441_v1  ;;  %v8309_v46 = vld [vmem:[%s9511_s1 + $0x80] sm:$0xff]  }
 0xd0b   : > { %7896 = vmatprep.subr.bf16.mxu1 %v8441_v1  ;;  %v8322_v43 = vld [vmem:[%s9519_s3 + $0x38] sm:$0xff]  }
 0xd0d   : > { %7885 = vmatpush3.bf16.msra.mxu0 %v8287_v47 }
 0xd0e   : > { %7897 = vmatpush3.bf16.msra.mxu1 %v8288_v48  ;;  %7902 = vmatprep.subr.bf16.mxu0 %v8441_v1 }
 0xd0f   : > { %7914 = vmatprep.subr.bf16.mxu1 %v8441_v1 }
 0xd10   : > { %7887 = vmatmul.mubr.msk.bf16.vlgmr.msra.gmra.mrb[128].mxu0 %vm1089_vm10, %v5327_v52 }
 0xd11   : > { %7899 = vmatmul.mubr.msk.bf16.vlgmr.msra.gmra.mrb[128].mxu1 %vm1089_vm10, %v5397_v53  ;;  %7903 = vmatpush3.bf16.msra.mxu0 %v8289_v51  ;;  %v5946_v51 = vld [vmem:[%s1073_s6] sm:$0x1]  ;;  %v8311_v53 = vld [vmem:[%s9511_s1 + $0x90] sm:$0xff]   ;;  %s9517_s6 = sld [smem:[#allocation28_spill]] }
 0xd12   : > { %7910 = vmatprep.mubr.msk.bf16.mxu0 %vm8442_vm0, %v8441_v1  ;;  %7904 = vmatprep.subr.bf16.mxu0 %v8441_v1  ;;  %v5947_v52 = vpack.c.bf16 %v5946_v51, %v5946_v51 }
 0xd13   : > { %7922 = vmatprep.mubr.msk.bf16.mxu1 %vm8442_vm0, %v8441_v1  ;;  %7915 = vmatpush3.bf16.msra.mxu1 %v8293_v59 }
 0xd14   : > { %7916 = vmatprep.subr.bf16.mxu1 %v8441_v1 }
 0xd15   : > { %7905 = vmatpush3.bf16.msra.mxu0 %v8290_v54  ;;  %v8312_v54 = vld [vmem:[%s9511_s1 + $0x98] sm:$0xff]  }
 0xd16   : > { %7906 = vmatprep.subr.bf16.mxu0 %v8441_v1 }
 0xd17   : > { %7917 = vmatpush3.bf16.msra.mxu1 %v8295_v61  ;;  %v8327_v59 = vld [vmem:[%s9517_s6] sm:$0xff]  }
 0xd18   : > { %7918 = vmatprep.subr.bf16.mxu1 %v8441_v1 }
 0xd19   : > { %7907 = vmatpush3.bf16.msra.mxu0 %v8291_v55 }
 0xd1a   : > { %7908 = vmatprep.subr.bf16.mxu0 %v8441_v1 }
 0xd1b   : > { %7919 = vmatpush3.bf16.msra.mxu1 %v8297_v0 }
 0xd1c   : > { %7920 = vmatprep.subr.bf16.mxu1 %v8441_v1 }
 0xd1d   : > { %7909 = vmatpush3.bf16.msra.mxu0 %v8292_v56 }
 0xd1e   : > { %7926 = vmatprep.subr.bf16.mxu0 %v8441_v1 }
 0xd1f   : > { %7921 = vmatpush3.bf16.msra.mxu1 %v8299_v2 }
 0xd20   : > { %7911 = vmatmul.mubr.msk.bf16.vlgmr.msra.gmra.mrb[132].mxu0 %vm1089_vm10, %v5467_v58  ;;  %7938 = vmatprep.subr.bf16.mxu1 %v8441_v1  ;;  %v8314_v58 = vld [vmem:[%s9516_s5 + $0x8] sm:$0xff]   ;;  %s9523_s5 = sld [smem:[#allocation33_spill]] }
 0xd21   : > { %7934 = vmatprep.mubr.msk.bf16.mxu0 %vm8442_vm0, %v8441_v1  ;;  %7927 = vmatpush3.bf16.msra.mxu0 %v8294_v60  ;;  %v8328_v60 = vld [vmem:[%s9517_s6 + $0x8] sm:$0xff]  }
 0xd22   : > { %7928 = vmatprep.subr.bf16.mxu0 %v8441_v1 }
 0xd25   : > { %7929 = vmatpush3.bf16.msra.mxu0 %v8296_v14 }
 0xd26   : > { %7930 = vmatprep.subr.bf16.mxu0 %v8441_v1 }
 0xd29   : > { %7931 = vmatpush3.bf16.msra.mxu0 %v8298_v63 }
 0xd2a   : > { %7932 = vmatprep.subr.bf16.mxu0 %v8441_v1 }
 0xd2d   : > { %7933 = vmatpush3.bf16.msra.mxu0 %v8300_v3 }
 0xd2e   : > { %7950 = vmatprep.subr.bf16.mxu0 %v8441_v1 }
 0xdd3   : > { %v5253_v62 = vpop.f32.mrb[124].mxu0 }
 0xdd4   : > { %v5320_v35 = vpop.f32.mrb[124].mxu1  ;;  %v7864_v4 = vpop.f32.mrb[125].mxu0 }
 0xdd5   : > { %v5321_v21 = vadd.f32 %v5320_v35, %v5253_v62  ;;  %v7876_v5 = vpop.f32.mrb[125].mxu1  ;;  %v5256_v6 = vpop.f32.mrb[126].mxu0 }
 0xdd6   : > { %v5323_v8 = vpop.f32.mrb[126].mxu1  ;;  %v7865_v9 = vpop.f32.mrb[127].mxu0 }
 0xdd7   : > { %v7877_v10 = vpop.f32.mrb[127].mxu1 }
 0xde3   : > { %v5389_v7 = vpop.f32.mrb[128].mxu0 }
 0xde4   : > { %v5459_v11 = vpop.f32.mrb[128].mxu1  ;;  %v5395_v12 = vadd.f32 %v5389_v7, %v5321_v21  ;;  %v7888_v13 = vpop.f32.mrb[129].mxu0 }
 0xde5   : > { %v7900_v29 = vpop.f32.mrb[129].mxu1  ;;  %v5392_v15 = vpop.f32.mrb[130].mxu0 }
 0xde6   : > { %v5462_v16 = vpop.f32.mrb[130].mxu1  ;;  %v5465_v17 = vadd.f32 %v5459_v11, %v5395_v12  ;;  %v7889_v18 = vpop.f32.mrb[131].mxu0  ;;  %v5949_v29 = vld [vmem:[%s9518_s11] sm:$0x1]  ;;  %s9520_s11 = sld [smem:[#allocation27_spill]] }
 0xde7   : > { %v7901_v19 = vpop.f32.mrb[131].mxu1 }
 0xdf3   : > { %v5529_v38 = vpop.f32.mrb[132].mxu0 }
 0xdf4   : > { %v5535_v20 = vadd.f32 %v5529_v38, %v5465_v17  ;;  %v7912_v22 = vpop.f32.mrb[133].mxu0 }
 0xdf5   : > { %v5532_v23 = vpop.f32.mrb[134].mxu0 }
 0xdf6   : > { %v5543_v25 = vadd.f32 %v9163_v31, %v5535_v20  ;;  %v7913_v26 = vpop.f32.mrb[135].mxu0  ;;  %v8303_v31 = vld [vmem:[%s9511_s1 + $0x48] sm:$0xff]   ;;  %v8315_v20 = vld [vmem:[%s9519_s3] sm:$0xff]   ;;  %s9521_s1 = sld [smem:[#allocation31_spill]] }
 0xdf8   : > { %v5544_v27 = vmax.f32 %v5543_v25, 0.0  ;;  %v8316_v25 = vld [vmem:[%s9519_s3 + $0x8] sm:$0xff]  }
 0xdfa   : > { %5545 = vst.msk [vmem:[#allocation7 + $0x2] sm:$0xf] %vm4746_vm15, %v5544_v27 }
 0xe01   : > { %v5589_v30 = vld [vmem:[#allocation7 + $0x1] sm:$0xf] }
 0xe02   : > { %v5587_v32 = vld [vmem:[#allocation7] sm:$0xf]  ;;  %v5590_v34 = vpack.c.bf16 %v5589_v30, %v5589_v30  ;;  %v5865_v55 = vld [vmem:[#allocation7 + $0x4] sm:$0xf] }
 0xe03   : > { %v5588_v36 = vpack.c.bf16 %v5587_v32, %v5587_v32  ;;  %v5725_v44 = vld [vmem:[#allocation7 + $0x2] sm:$0xf]  ;;  %v5866_v56 = vpack.c.bf16 %v5865_v55, %v5865_v55 }
 0xe04   : > { %7923 = vmatmul.mubr.msk.bf16.vlgmr.msra.gmra.mrb[132].mxu1 %vm1089_vm10, %v5590_v34  ;;  %v5795_v45 = vld [vmem:[#allocation7 + $0x3] sm:$0xf]  ;;  %v5726_v47 = vpack.c.bf16 %v5725_v44, %v5725_v44  ;;  %v8317_v34 = vld [vmem:[%s9519_s3 + $0x10] sm:$0xff]  }
 0xe05   : > { %7935 = vmatmul.mubr.msk.bf16.vlgmr.msra.gmra.mrb[136].mxu0 %vm1089_vm10, %v5588_v36  ;;  %7939 = vmatpush3.bf16.msra.mxu1 %v8301_v28  ;;  %v5796_v48 = vpack.c.bf16 %v5795_v45, %v5795_v45  ;;  %v8323_v45 = vld [vmem:[%s9519_s3 + $0x60] sm:$0xff]  }
 0xe06   : > { %7951 = vmatpush3.bf16.msra.mxu0 %v8302_v33  ;;  %7940 = vmatprep.subr.bf16.mxu1 %v8441_v1  ;;  %v5546_v33 = vld [vmem:[#allocation6 + $0x2] sm:$0xf] }
 0xe07   : > { %7952 = vmatprep.subr.bf16.mxu0 %v8441_v1  ;;  %7946 = vmatprep.mubr.msk.bf16.mxu1 %vm8442_vm0, %v8441_v1 }
 0xe08   : > { %7958 = vmatprep.mubr.msk.bf16.mxu0 %vm8442_vm0, %v8441_v1 }
 0xe09   : > { %7941 = vmatpush3.bf16.msra.mxu1 %v8303_v31 }
 0xe0a   : > { %7953 = vmatpush3.bf16.msra.mxu0 %v8304_v37  ;;  %7942 = vmatprep.subr.bf16.mxu1 %v8441_v1  ;;  %v8318_v37 = vld [vmem:[%s9519_s3 + $0x18] sm:$0xff]  }
 0xe0b   : > { %7954 = vmatprep.subr.bf16.mxu0 %v8441_v1 }
 0xe0d   : > { %7943 = vmatpush3.bf16.msra.mxu1 %v8305_v39  ;;  %v8319_v39 = vld [vmem:[%s9519_s3 + $0x20] sm:$0xff]  }
 0xe0e   : > { %7955 = vmatpush3.bf16.msra.mxu0 %v8306_v40  ;;  %7944 = vmatprep.subr.bf16.mxu1 %v8441_v1 }
 0xe0f   : > { %7956 = vmatprep.subr.bf16.mxu0 %v8441_v1 }
 0xe11   : > { %7945 = vmatpush3.bf16.msra.mxu1 %v8307_v41  ;;  %v8320_v41 = vld [vmem:[%s9519_s3 + $0x28] sm:$0xff]  }
 0xe12   : > { %7957 = vmatpush3.bf16.msra.mxu0 %v8308_v42  ;;  %7962 = vmatprep.subr.bf16.mxu1 %v8441_v1  ;;  %v8321_v42 = vld [vmem:[%s9519_s3 + $0x30] sm:$0xff]  }
 0xe13   : > { %7974 = vmatprep.subr.bf16.mxu0 %v8441_v1 }
 0xe14   : > { %7947 = vmatmul.mubr.msk.bf16.vlgmr.msra.gmra.mrb[136].mxu1 %vm1089_vm10, %v5726_v47  ;;  %v8324_v47 = vld [vmem:[%s9519_s3 + $0x68] sm:$0xff]  }
 0xe15   : > { %7959 = vmatmul.mubr.msk.bf16.vlgmr.msra.gmra.mrb[140].mxu0 %vm1089_vm10, %v5796_v48  ;;  %7963 = vmatpush3.bf16.msra.mxu1 %v8309_v46  ;;  %v8325_v48 = vld [vmem:[%s9519_s3 + $0x70] sm:$0xff]  }
 0xe16   : > { %7975 = vmatpush3.bf16.msra.mxu0 %v5956_v49  ;;  %7964 = vmatprep.subr.bf16.mxu1 %v8441_v1  ;;  %v8326_v49 = vld [vmem:[%s9519_s3 + $0x78] sm:$0xff]  }
 0xe17   : > { %7976 = vmatprep.mubr.msk.bf16.mxu0 %vm8442_vm0, %v8441_v1  ;;  %7970 = vmatprep.mubr.msk.bf16.mxu1 %vm8442_vm0, %v8441_v1 }
 0xe18   : > { %7988 = vmatprep.subr.bf16.mxu0 %v8441_v1 }
 0xe19   : > { %7965 = vmatpush3.bf16.msra.mxu1 %v8310_v50 }
 0xe1a   : > { %7966 = vmatprep.subr.bf16.mxu1 %v8441_v1 }
 0xe1d   : > { %7977 = vmatmul.mubr.msk.bf16.vlgmr.msra.gmra.mrb[144].mxu0 %vm5950_vm2, %v5947_v52  ;;  %7967 = vmatpush3.bf16.msra.mxu1 %v8311_v53  ;;  %v8329_v52 = vld [vmem:[%s9517_s6 + $0x10] sm:$0xff]   ;;  %v8330_v53 = vld [vmem:[%s9517_s6 + $0x18] sm:$0xff]  }
 0xe1e   : > { %7996 = vmatprep.mubr.msk.bf16.mxu0 %vm8442_vm0, %v8441_v1  ;;  %7968 = vmatprep.subr.bf16.mxu1 %v8441_v1 }
 0xe1f   : > { %7989 = vmatpush3.bf16.msra.mxu0 %v8327_v59 }
 0xe20   : > { %7990 = vmatprep.subr.bf16.mxu0 %v8441_v1 }
 0xe21   : > { %7969 = vmatpush3.bf16.msra.mxu1 %v8312_v54  ;;  %v6004_v54 = vld [vmem:[%s9520_s11] sm:$0x1]  ;;  %s9522_s11 = sld [smem:[#allocation29_spill]] }
 0xe22   : > { %7980 = vmatprep.subr.bf16.mxu1 %v8441_v1 }
 0xe23   : > { %7991 = vmatpush3.bf16.msra.mxu0 %v8328_v60 }
 0xe24   : > { %7971 = vmatmul.mubr.msk.bf16.vlgmr.msra.gmra.mrb[140].mxu1 %vm1089_vm10, %v5866_v56  ;;  %7992 = vmatprep.subr.bf16.mxu0 %v8441_v1 }
 0xe25   : > { %7984 = vmatprep.mubr.msk.bf16.mxu1 %vm8442_vm0, %v8441_v1  ;;  %7981 = vmatpush3.bf16.msra.mxu1 %v8313_v57 }
 0xe26   : > { %7982 = vmatprep.subr.bf16.mxu1 %v8441_v1 }
 0xe27   : > { %7993 = vmatpush3.bf16.msra.mxu0 %v8329_v52 }
 0xe28   : > { %7994 = vmatprep.subr.bf16.mxu0 %v8441_v1 }
 0xe29   : > { %7983 = vmatpush3.bf16.msra.mxu1 %v8314_v58 }
 0xe2a   : > { %8000 = vmatprep.subr.bf16.mxu1 %v8441_v1 }
 0xe2b   : > { %7995 = vmatpush3.bf16.msra.mxu0 %v8330_v53 }
 0xe2c   : > { %8012 = vmatprep.subr.bf16.mxu0 %v8441_v1 }
 0xed7   : > { %v5652_v61 = vpop.f32.mrb[132].mxu1 }
 0xed8   : > { %v5719_v14 = vpop.f32.mrb[136].mxu0  ;;  %v7924_v63 = vpop.f32.mrb[133].mxu1 }
 0xed9   : > { %v5720_v0 = vadd.f32 %v5719_v14, %v5652_v61  ;;  %v7936_v2 = vpop.f32.mrb[137].mxu0  ;;  %v5655_v3 = vpop.f32.mrb[134].mxu1  ;;  %v8331_v61 = vld [vmem:[%s9521_s1] sm:$0xff]   ;;  %v8333_v63 = vld [vmem:[%s9521_s1 + $0x10] sm:$0xff]  }
 0xeda   : > { %v5722_v62 = vpop.f32.mrb[138].mxu0  ;;  %v7925_v35 = vpop.f32.mrb[135].mxu1 }
 0xedb   : > { %v7937_v21 = vpop.f32.mrb[139].mxu0 }
 0xee7   : > { %v5788_v4 = vpop.f32.mrb[136].mxu1 }
 0xee8   : > { %v5858_v5 = vpop.f32.mrb[140].mxu0  ;;  %v5794_v6 = vadd.f32 %v5788_v4, %v5720_v0  ;;  %v7948_v8 = vpop.f32.mrb[137].mxu1  ;;  %v8332_v0 = vld [vmem:[%s9521_s1 + $0x8] sm:$0xff]  }
 0xee9   : > { %v7960_v9 = vpop.f32.mrb[141].mxu0  ;;  %v5791_v10 = vpop.f32.mrb[138].mxu1 }
 0xeea   : > { %v5861_v7 = vpop.f32.mrb[142].mxu0  ;;  %v5864_v11 = vadd.f32 %v5858_v5, %v5794_v6  ;;  %v7949_v12 = vpop.f32.mrb[139].mxu1 }
 0xeeb   : > { %v7961_v13 = vpop.f32.mrb[143].mxu0  ;;  %v6070_v12 = vld [vmem:[%s9522_s11] sm:$0x1]  ;;  %s9524_s11 = sld [smem:[#allocation32_spill]] }
 0xef0   : > { %v5992_v15 = vpop.f32.mrb[144].mxu0 }
 0xef1   : > { %v5993_v16 = vadd.f32 %v5992_v15, %v5949_v29  ;;  %v7978_v17 = vpop.f32.mrb[145].mxu0 }
 0xef2   : > { %v5995_v18 = vpop.f32.mrb[146].mxu0  ;;  %v8335_v17 = vld [vmem:[%s9519_s3 + $0x40] sm:$0xff]  }
 0xef3   : > { %v5998_v19 = vmax.f32 %v5993_v16, 0.0  ;;  %v7979_v38 = vpop.f32.mrb[147].mxu0 }
 0xef4   : > { %v8336_v38 = vld [vmem:[%s9519_s3 + $0x48] sm:$0xff]  }
 0xef5   : > { %v5999_v22 = vpack.c.bf16 %v5998_v19, %v5998_v19 }
 0xef7   : > { %7985 = vmatmul.mubr.msk.bf16.vlgmr.msra.gmra.mrb[144].mxu1 %vm1083_vm4, %v5999_v22  ;;  %v5928_v23 = vpop.f32.mrb[140].mxu1  ;;  %v8338_v22 = vld [vmem:[%s9519_s3 + $0x58] sm:$0xff]  }
 0xef8   : > { %8001 = vmatpush3.bf16.msra.mxu1 %v8315_v20  ;;  %8008 = vmatprep.mubr.msk.bf16.mxu1 %vm8442_vm0, %v8441_v1  ;;  %v5934_v26 = vadd.f32 %v5928_v23, %v5864_v11  ;;  %v7972_v27 = vpop.f32.mrb[141].mxu1  ;;  %v8334_v11 = vld [vmem:[%s9521_s1 + $0x18] sm:$0xff]   ;;  %v8337_v20 = vld [vmem:[%s9519_s3 + $0x50] sm:$0xff]   ;;  %s7073_s1 = sshll.u32 %s8645_s0, 4  ;;  %s8443_s0 = smov [#allocation8]  }
 0xef9   : > { %8002 = vmatprep.subr.bf16.mxu1 %v8441_v1  ;;  %v5931_v28 = vpop.f32.mrb[142].mxu1  ;;  %v8340_v27 = vld [vmem:[%s9523_s5 + $0x8] sm:$0xff]   ;;  %s9421_s6 = scalar_lea.hbm %s8622_s13, %s7073_s1  ;;  %s8347_s9 = sshll.u32 %s8443_s0, 4  ;;  %s8348_s9 = int_to_ptr.vmem [resolvable:$false] %s8347_s9 }
 0xefa   : > { %v5942_v30 = vadd.f32 %v9223_v24, %v5934_v26  ;;  %v7973_v32 = vpop.f32.mrb[143].mxu1  ;;  %v8339_v26 = vld [vmem:[%s9523_s5] sm:$0xff]   ;;  %s8349_s12 = scalar_lea.vmem %s8348_s9, 32 }
 0xefc   : > { %8003 = vmatpush3.bf16.msra.mxu1 %v8316_v25  ;;  %v5943_v36 = vadd.f32 %v5942_v30, %v5546_v33 }
 0xefd   : > { %8004 = vmatprep.subr.bf16.mxu1 %v8441_v1 }
 0xefe   : > { %v5944_v31 = vmax.f32 %v5943_v36, 0.0 }
 0xf00   : > { %8005 = vmatpush3.bf16.msra.mxu1 %v8317_v34  ;;  %5945 = vst.msk [vmem:[#allocation6 + $0x2] sm:$0xf] %vm4746_vm15, %v5944_v31 }
 0xf01   : > { %8006 = vmatprep.subr.bf16.mxu1 %v8441_v1 }
 0xf04   : > { %8007 = vmatpush3.bf16.msra.mxu1 %v8318_v37 }
 0xf05   : > { %8024 = vmatprep.subr.bf16.mxu1 %v8441_v1 }
 0xf07   : > { %v6179_v24 = vld [vmem:[#allocation6 + $0x2] sm:$0x1]  ;;  %v6315_v44 = vld [vmem:[#allocation6 + $0x3] sm:$0x1]  ;;  %v6455_v50 = vld [vmem:[#allocation6 + $0x5] sm:$0x1] }
 0xf08   : > { %v6180_v40 = vpack.c.bf16 %v6179_v24, %v6179_v24  ;;  %v6316_v46 = vpack.c.bf16 %v6315_v44, %v6315_v44  ;;  %v6456_v51 = vpack.c.bf16 %v6455_v50, %v6455_v50  ;;  %v6385_v23 = vld [vmem:[#allocation6 + $0x4] sm:$0x1] }
 0xf09   : > { %v6386_v25 = vpack.c.bf16 %v6385_v23, %v6385_v23 }
 0xf0a   : > { %8009 = vmatmul.mubr.msk.bf16.vlgmr.msra.gmra.mrb[148].mxu1 %vm1089_vm10, %v6180_v40 }
 0xf0b   : > { %8025 = vmatpush3.bf16.msra.mxu1 %v8319_v39  ;;  %8032 = vmatprep.mubr.msk.bf16.mxu1 %vm8442_vm0, %v8441_v1  ;;  %v6525_v39 = vld [vmem:[%s9524_s11] sm:$0x1]  ;;  %s1059_s11 = sand.u32 1, %s8397_s16  }
 0xf0c   : > { %8026 = vmatprep.subr.bf16.mxu1 %v8441_v1  ;;  %s1060_s3 = scalar_lea.vmem [#allocation8], %s1059_s11  ;;  %s6654_s8 = scalar_lea.sflag [#allocation9], %s1059_s11 }
 0xf0d   : > { %s6666_s5 = sshll.u32 %s1060_s3, 4  ;;  %s9423_s5 = int_to_ptr.vmem [resolvable:$true] %s6666_s5 }
 0xf0e   : > { %p8350_p0 = scmp.lt.s32.totalorder %s9423_s5, %s8348_s9 }
 0xf0f   : > { %8027 = vmatpush3.bf16.msra.mxu1 %v8320_v41 }
 0xf10   : > { %8028 = vmatprep.subr.bf16.mxu1 %v8441_v1 }
 0xf13   : > { %8029 = vmatpush3.bf16.msra.mxu1 %v8321_v42 }
 0xf14   : > { %8030 = vmatprep.subr.bf16.mxu1 %v8441_v1 }
 0xf17   : > { %8031 = vmatpush3.bf16.msra.mxu1 %v8322_v43 }
 0xf18   : > { %8048 = vmatprep.subr.bf16.mxu1 %v8441_v1 }
 0xf1a   : > { %8033 = vmatmul.mubr.msk.bf16.vlgmr.msra.gmra.mrb[152].mxu1 %vm1089_vm10, %v6316_v46  ;;  %v8341_v46 = vld [vmem:[%s8612_s27] sm:$0xff]  }
 0xf1b   : > { %8049 = vmatpush3.bf16.msra.mxu1 %v8323_v45  ;;  %8056 = vmatprep.mubr.msk.bf16.mxu1 %vm8442_vm0, %v8441_v1 }
 0xf1c   : > { %8050 = vmatprep.subr.bf16.mxu1 %v8441_v1 }
 0xf1f   : > { %8051 = vmatpush3.bf16.msra.mxu1 %v8324_v47  ;;  %v8342_v47 = vld [vmem:[%s8612_s27 + $0x8] sm:$0xff]  }
 0xf20   : > { %8052 = vmatprep.subr.bf16.mxu1 %v8441_v1 }
 0xf23   : > { %8053 = vmatpush3.bf16.msra.mxu1 %v8325_v48  ;;  %v6533_v48 = vld [vmem:[%s8607_s20] sm:$0x1] }
 0xf24   : > { %8054 = vmatprep.subr.bf16.mxu1 %v8441_v1 }
 0xf27   : > { %8055 = vmatpush3.bf16.msra.mxu1 %v8326_v49 }
 0xf28   : > { %8068 = vmatprep.subr.bf16.mxu1 %v8441_v1 }
 0xf2a   : > { %8057 = vmatmul.mubr.msk.bf16.vlgmr.msra.gmra.mrb[156].mxu1 %vm1089_vm10, %v6456_v51 }
 0xf2b   : > { %8072 = vmatprep.mubr.msk.bf16.mxu1 %vm8442_vm0, %v8441_v1  ;;  %8069 = vmatpush3.bf16.msra.mxu1 %v8341_v46 }
 0xf2c   : > { %8070 = vmatprep.subr.bf16.mxu1 %v8441_v1 }
 0xf2f   : > { %8071 = vmatpush3.bf16.msra.mxu1 %v8342_v47 }
 0xfca   : > { %v6054_v55 = vpop.f32.mrb[144].mxu1 }
 0xfcb   : > { %v6055_v56 = vadd.f32 %v6054_v55, %v6004_v54  ;;  %v7986_v57 = vpop.f32.mrb[145].mxu1 }
 0xfcc   : > { %v6057_v58 = vpop.f32.mrb[146].mxu1 }
 0xfcd   : > { %v6060_v59 = vmax.f32 %v6055_v56, 0.0  ;;  %v7987_v60 = vpop.f32.mrb[147].mxu1  ;;  %v6595_v56 = vld [vmem:[%s9525_s4] sm:$0x1]  ;;  %s8343_s4 = scalar_lea.vmem %s9423_s5, 16 }
 0xfce   : > { %p8344_p11 = scmp.ne.s32.totalorder %s9423_s5, %s8343_s4  ;;  %p8351_p1 = scmp.lt.s32.totalorder %s8349_s12, %s8343_s4 }
 0xfcf   : > { %v6061_v14 = vpack.c.bf16 %v6060_v59, %v6060_v59 }
 0xfd0   : > { %p8345_p12 = pnand %p8344_p11, %p8662_p5  ;;  %p8352_p2 = por %p8351_p1, %p8350_p0 }
 0xfd1   : > { %7997 = vmatmul.mubr.msk.bf16.vlgmr.msra.gmra.mrb[148].mxu0 %vm1089_vm10, %v6061_v14 }
 0xfd2   : > { %8013 = vmatpush3.bf16.msra.mxu0 %v8331_v61  ;;  %8020 = vmatprep.mubr.msk.bf16.mxu0 %vm8442_vm0, %v8441_v1  ;;  %p8346_p13 = pneg %p8345_p12 }
 0xfd3   : > { %8014 = vmatprep.subr.bf16.mxu0 %v8441_v1 }
 0xfd4   : > { %p8353_p3 = pnand %p8352_p2, %p8346_p13 }
 0xfd6   : > { %8015 = vmatpush3.bf16.msra.mxu0 %v8332_v0 }
 0xfd7   : > { %8016 = vmatprep.subr.bf16.mxu0 %v8441_v1 }
 0xfda   : > { %8017 = vmatpush3.bf16.msra.mxu0 %v8333_v63 }
 0xfdb   : > { %8018 = vmatprep.subr.bf16.mxu0 %v8441_v1 }
 0xfdd   : > { %v6242_v2 = vpop.f32.mrb[148].mxu1 }
 0xfde   : > { %v8010_v3 = vpop.f32.mrb[149].mxu1  ;;  %8019 = vmatpush3.bf16.msra.mxu0 %v8334_v11 }
 0xfdf   : > { %v6245_v62 = vpop.f32.mrb[150].mxu1  ;;  %8036 = vmatprep.subr.bf16.mxu0 %v8441_v1 }
 0xfe0   : > { %v8011_v35 = vpop.f32.mrb[151].mxu1 }
 0xfed   : > { %v6378_v21 = vpop.f32.mrb[152].mxu1 }
 0xfee   : > { %v8034_v4 = vpop.f32.mrb[153].mxu1 }
 0xfef   : > { %v6381_v5 = vpop.f32.mrb[154].mxu1 }
 0xff0   : > { %v8035_v6 = vpop.f32.mrb[155].mxu1 }
 0xffd   : > { %v6518_v8 = vpop.f32.mrb[156].mxu1 }
 0xffe   : > { %v8058_v9 = vpop.f32.mrb[157].mxu1 }
 0xfff   : > { %v6521_v10 = vpop.f32.mrb[158].mxu1 }
0x1000   : > { %v8059_v7 = vpop.f32.mrb[159].mxu1 }
0x10a4   : > { %v6132_v13 = vpop.f32.mrb[148].mxu0 }
0x10a5   : > { %v6133_v29 = vadd.f32 %v6132_v13, %v6070_v12  ;;  %v7998_v15 = vpop.f32.mrb[149].mxu0 }
0x10a6   : > { %v6135_v16 = vpop.f32.mrb[150].mxu0 }
0x10a7   : > { %v6170_v18 = vpack.c.bf16 %v6133_v29, %v6133_v29  ;;  %v7999_v19 = vpop.f32.mrb[151].mxu0 }
0x10a9   : > { %8021 = vmatmul.mubr.msk.bf16.vlgmr.msra.gmra.mrb[152].mxu0 %vm1089_vm10, %v6170_v18 }
0x10aa   : > { %8037 = vmatpush3.bf16.msra.mxu0 %v8335_v17  ;;  %8044 = vmatprep.mubr.msk.bf16.mxu0 %vm8442_vm0, %v8441_v1 }
0x10ab   : > { %8038 = vmatprep.subr.bf16.mxu0 %v8441_v1 }
0x10ae   : > { %8039 = vmatpush3.bf16.msra.mxu0 %v8336_v38 }
0x10af   : > { %8040 = vmatprep.subr.bf16.mxu0 %v8441_v1 }
0x10b2   : > { %8041 = vmatpush3.bf16.msra.mxu0 %v8337_v20 }
0x10b3   : > { %8042 = vmatprep.subr.bf16.mxu0 %v8441_v1 }
0x10b6   : > { %8043 = vmatpush3.bf16.msra.mxu0 %v8338_v22 }
0x10b7   : > { %8060 = vmatprep.subr.bf16.mxu0 %v8441_v1 }
0x10b9   : > { %8045 = vmatmul.mubr.msk.bf16.vlgmr.msra.gmra.mrb[156].mxu0 %vm1089_vm10, %v6386_v25 }
0x10ba   : > { %8064 = vmatprep.mubr.msk.bf16.mxu0 %vm8442_vm0, %v8441_v1  ;;  %8061 = vmatpush3.bf16.msra.mxu0 %v8339_v26  ;;  %vm6651_vm0 = vcmask 8192  }
0x10bb   : > { %8062 = vmatprep.subr.bf16.mxu0 %v8441_v1 }
0x10be   : > { %8063 = vmatpush3.bf16.msra.mxu0 %v8340_v27 }
0x117c   : > { %v6309_v28 = vpop.f32.mrb[152].mxu0 }
0x117d   : > { %v6310_v30 = vadd.f32 %v6309_v28, %v6242_v2  ;;  %v8022_v32 = vpop.f32.mrb[153].mxu0 }
0x117e   : > { %v6312_v33 = vpop.f32.mrb[154].mxu0 }
0x117f   : > { %v8023_v34 = vpop.f32.mrb[155].mxu0  ;;  %v6384_v36 = vadd.f32 %v6378_v21, %v6310_v30 }
0x118c   : > { %v6448_v31 = vpop.f32.mrb[156].mxu0 }
0x118d   : > { %v6454_v37 = vadd.f32 %v6448_v31, %v6384_v36  ;;  %v8046_v24 = vpop.f32.mrb[157].mxu0 }
0x118e   : > { %v6451_v40 = vpop.f32.mrb[158].mxu0 }
0x118f   : > { %v6524_v41 = vadd.f32 %v6518_v8, %v6454_v37  ;;  %v8047_v42 = vpop.f32.mrb[159].mxu0 }
0x1191   : > { %v6526_v43 = vadd.f32 %v6525_v39, %v6524_v41 }
0x1193   : > { %v6527_v44 = vmax.f32 %v6526_v43, 0.0 }
0x1195   : > { %v6528_v45 = vpack.c.bf16 %v6527_v44, %v6527_v44 }
0x1197   : > { %8065 = vmatmul.mubr.msk.bf16.vlgmr.msra.gmra.mrb[160].mxu0 %vm1083_vm4, %v6528_v45 }
0x126a   : > { %v6583_v49 = vpop.f32.mrb[160].mxu0 }
0x126b   : > { %v6584_v50 = vadd.f32 %v6583_v49, %v6533_v48  ;;  %v8066_v51 = vpop.f32.mrb[161].mxu0 }
0x126c   : > { %v6586_v52 = vpop.f32.mrb[162].mxu0 }
0x126d   : > { %v6589_v53 = vmax.f32 %v6584_v50, 0.0  ;;  %v8067_v54 = vpop.f32.mrb[163].mxu0 }
0x126f   : > { %v6590_v55 = vpack.c.bf16 %v6589_v53, %v6589_v53 }
0x1271   : > { %8073 = vmatmul.mubr.msk.bf16.vlgmr.msra.gmra.mrb[160].mxu1 %vm1083_vm4, %v6590_v55 }
0x1344   : > { %v6645_v1 = vpop.f32.mrb[160].mxu1 }
0x1345   : > { %v6646_v57 = vadd.f32 %v6645_v1, %v6595_v56  ;;  %v8074_v58 = vpop.f32.mrb[161].mxu1 }
0x1346   : > { %v6648_v59 = vpop.f32.mrb[162].mxu1 }
0x1347   : > { %v8075_v60 = vpop.f32.mrb[163].mxu1  ;;  %6652 = vst.msk [vmem:[%s1060_s3] sm:$0x1] %vm6651_vm0, %v6646_v57 }
0x1348   : > { %8356 = shalt.err (!%p8353_p3)
}
0x1349   : > { %s8357_s1 = scalar_lea.hbm %s9421_s6, 16  ;;  %s8361_s3 = scalar_lea.hbm %s8622_s13, 32 }
0x134a   : > { %p8358_p4 = scmp.ne.s32.totalorder %s9421_s6, %s8357_s1  ;;  %p8362_p9 = scmp.lt.u32.totalorder %s9421_s6, %s8622_s13 }
0x134b   : > { %p8363_p10 = scmp.lt.u32.totalorder %s8361_s3, %s8357_s1  ;;  %p8365_p12 = scmp.lt.u32.totalorder %s8357_s1, %s9421_s6 }
0x134c   : > { %p8359_p7 = pnand %p8358_p4, %p8662_p5 }
0x134d   : > { %p8364_p11 = por %p8363_p10, %p8362_p9 }
0x134e   : > { %p8360_p8 = pneg %p8359_p7 }
0x134f   : > { %p8366_p0 = por %p8365_p12, %p8364_p11 }
0x1351   : > { %p8367_p13 = pnand %p8366_p0, %p8360_p8 }
0x1353   : > { %8370 = shalt.err (!%p8367_p13)
}
0x1354   : > { %8076 = dma.vmem_to_hbm [thread:$0]  (%p8662_p5), %s9423_s5, 16, %s9421_s6, %s6654_s8  }
0x1355 PF: > { %p8082_p1 = scmp.ge.s32.totalorder %s8405_s22, 2  ;;  %s6678_s9 = sand.u32 1, %s8393_s15  }
0x1356   : > { %s6679_s12 = scalar_lea.sflag [#allocation9], %s6678_s9 }
0x1357   : > { %p8079_p2 = pnand %p8082_p1, %p8666_p6 }
0x1359   : > { %8388 = dma.done.wait (!%p8079_p2), %s6679_s12, 16  }
0x135a   : > { %8390 = vsyncadd (!%p8079_p2), %s6679_s12, 4294967280  ;;  %p79_p3 = scmp.ge.s32.totalorder %s8649_s26, 4   ;;  %s9526_s15 = smov %s8397_s16 }
0x135b   : > { %s9527_s16 = smov %s8401_s18  ;;  %s9528_s18 = smov %s8660_s2 }
0x135c   : > { %s9529_s22 = smov %s8649_s26  ;;  %81 = sbr.rel (!%p79_p3) target bundleno = 73 (0x49), region = 231 }
0x1363   :  { %6683 = vsyncpa [#allocation9], 1 }
0x1364   :  { %6685 = vsyncpa [#allocation9 + $0x1], 1 }

</bundles_post_ra>
